<compile_context>
chip_gen: v6e
topology: v6e:2x2x1
jax: 0.10.0
libtpu: 0.0.40
codegen_flags: <defaults>
</compile_context>

<pallas_src>
import functools
import math

import jax
import jax.numpy as jnp
from jax.experimental import pallas as pl
from jax.experimental.pallas import tpu as pltpu


def _block_attn_kernel(xq_ref, xkv_ref, wq_ref, wk_ref, wv_ref,
                       bq_ref, bk_ref, bv_ref, wo_ref, bo_ref,
                       o_ref,
                       q_s, m_s, l_s, acc_s, y_acc,
                       *, compute_dtype):
    hi = pl.program_id(2)   # head index
    ki = pl.program_id(3)   # kv-tile index (innermost, "arbitrary")
    nh = pl.num_programs(2)
    nk = pl.num_programs(3)

    # ---- init the fused out_proj accumulator once per (b, q-tile) ----
    @pl.when((hi == 0) & (ki == 0))
    def _():
        y_acc[...] = jnp.broadcast_to(bo_ref[...], y_acc.shape)

    # ---- per-(b, q-tile, head): project Q once, reset online-softmax state ----
    @pl.when(ki == 0)
    def _():
        xq = xq_ref[0]                                                    # (tq, C) bf16
        q = jnp.dot(xq, wq_ref[0], preferred_element_type=jnp.float32) + bq_ref[0]
        q_s[...] = q.astype(compute_dtype)                                # scale folded in Wq/bq
        m_s[...] = jnp.full_like(m_s, -jnp.inf)
        l_s[...] = jnp.zeros_like(l_s)
        acc_s[...] = jnp.zeros_like(acc_s)

    # ---- K/V projection for this kv tile & head (bf16 operands, f32 accumulate) ----
    xkv = xkv_ref[0]                                                      # (tk, C) bf16
    k = (jnp.dot(xkv, wk_ref[0], preferred_element_type=jnp.float32)
         + bk_ref[0]).astype(compute_dtype)                               # (tk, Dh)
    v = (jnp.dot(xkv, wv_ref[0], preferred_element_type=jnp.float32)
         + bv_ref[0]).astype(compute_dtype)                               # (tk, Dh)

    # ---- online-softmax flash step ----
    s = jax.lax.dot_general(q_s[...], k, (((1,), (1,)), ((), ())),
                            preferred_element_type=jnp.float32)           # (tq, tk)
    m_prev = m_s[...]
    m_new = jnp.maximum(m_prev, jnp.max(s, axis=-1, keepdims=True))
    alpha = jnp.exp(m_prev - m_new)
    p = jnp.exp(s - m_new)
    l_s[...] = alpha * l_s[...] + jnp.sum(p, axis=-1, keepdims=True)
    acc_s[...] = alpha * acc_s[...] + jnp.dot(p.astype(compute_dtype), v,
                                              preferred_element_type=jnp.float32)
    m_s[...] = m_new

    # ---- end of kv loop for this head: normalize and fuse out_proj (per-head accumulation) ----
    @pl.when(ki == nk - 1)
    def _():
        head_out = acc_s[...] * pl.reciprocal(l_s[...], approx=True)      # (tq, Dh) f32
        y_acc[...] += jnp.dot(head_out.astype(compute_dtype), wo_ref[0],
                              preferred_element_type=jnp.float32)         # (tq, C)

    # ---- last head, last kv tile: write the lane-dense output block ----
    @pl.when((ki == nk - 1) & (hi == nh - 1))
    def _():
        o_ref[0] = y_acc[...].astype(o_ref.dtype)


def block_attention_pallas(x_nchw, in_proj_w, in_proj_b, out_proj_w, out_proj_b, n_head,
                           compute_dtype=jnp.bfloat16):
    b, c, h, w = x_nchw.shape
    assert c % n_head == 0
    s = h * w
    dh = c // n_head

    # einops 'b c h w -> b (h w) c', fused with the bf16 cast for the MXU operands
    # (single XLA pass; halves the kernel's HBM read traffic for x).
    x = x_nchw.reshape(b, c, s).swapaxes(1, 2).astype(compute_dtype)      # (B, S, C)

    scale = 1.0 / math.sqrt(dh)

    # Per-head weight slices prepared on the host (no lane slicing inside the kernel).
    # PyTorch in_proj_weight rows: [0:C]=Wq, [C:2C]=Wk, [2C:3C]=Wv ; qkv = x @ W^T + b.
    wq_h = (in_proj_w[:c].reshape(n_head, dh, c).transpose(0, 2, 1) * scale).astype(compute_dtype)
    wk_h = in_proj_w[c:2 * c].reshape(n_head, dh, c).transpose(0, 2, 1).astype(compute_dtype)
    wv_h = in_proj_w[2 * c:].reshape(n_head, dh, c).transpose(0, 2, 1).astype(compute_dtype)
    bq_h = (in_proj_b[:c].reshape(n_head, 1, dh) * scale).astype(jnp.float32)
    bk_h = in_proj_b[c:2 * c].reshape(n_head, 1, dh).astype(jnp.float32)
    bv_h = in_proj_b[2 * c:].reshape(n_head, 1, dh).astype(jnp.float32)
    # out_proj: y = concat_h(head_h) @ Wo^T + bo == sum_h head_h @ Wo[:, h*Dh:(h+1)*Dh]^T
    wo_h = out_proj_w.reshape(c, n_head, dh).transpose(1, 2, 0).astype(compute_dtype)  # (H, Dh, C)
    bo = out_proj_b.reshape(1, c).astype(jnp.float32)

    # 128-aligned tiles when possible; otherwise fall back to the full (untiled) sequence.
    # TODO(synk): pad S to a multiple of 128 and mask padded keys for large non-aligned S.
    tq = 128 if s % 128 == 0 else s
    tk = 128 if s % 128 == 0 else s
    nq = s // tq
    nk = s // tk

    kernel = functools.partial(_block_attn_kernel, compute_dtype=compute_dtype)

    out = pl.pallas_call(
        kernel,
        out_shape=jax.ShapeDtypeStruct((b, s, c), x_nchw.dtype),
        grid_spec=pltpu.PrefetchScalarGridSpec(
            num_scalar_prefetch=0,
            grid=(b, nq, n_head, nk),
            in_specs=[
                pl.BlockSpec((1, tq, c), lambda bi, qi, hi, ki: (bi, qi, 0)),   # x (query side)
                pl.BlockSpec((1, tk, c), lambda bi, qi, hi, ki: (bi, ki, 0)),   # x (key/value side)
                pl.BlockSpec((1, c, dh), lambda bi, qi, hi, ki: (hi, 0, 0)),    # Wq per head
                pl.BlockSpec((1, c, dh), lambda bi, qi, hi, ki: (hi, 0, 0)),    # Wk per head
                pl.BlockSpec((1, c, dh), lambda bi, qi, hi, ki: (hi, 0, 0)),    # Wv per head
                pl.BlockSpec((1, 1, dh), lambda bi, qi, hi, ki: (hi, 0, 0)),    # bq per head
                pl.BlockSpec((1, 1, dh), lambda bi, qi, hi, ki: (hi, 0, 0)),    # bk per head
                pl.BlockSpec((1, 1, dh), lambda bi, qi, hi, ki: (hi, 0, 0)),    # bv per head
                pl.BlockSpec((1, dh, c), lambda bi, qi, hi, ki: (hi, 0, 0)),    # Wo per head
                pl.BlockSpec((1, c), lambda bi, qi, hi, ki: (0, 0)),            # out bias
            ],
            out_specs=pl.BlockSpec((1, tq, c), lambda bi, qi, hi, ki: (bi, qi, 0)),
            scratch_shapes=[
                pltpu.VMEM((tq, dh), compute_dtype),    # q tile (scaled, bf16)
                pltpu.VMEM((tq, 1), jnp.float32),       # m (running max)
                pltpu.VMEM((tq, 1), jnp.float32),       # l (running denom)
                pltpu.VMEM((tq, dh), jnp.float32),      # acc (unnormalized head output)
                pltpu.VMEM((tq, c), jnp.float32),       # fused out_proj accumulator
            ],
        ),
        compiler_params=pltpu.CompilerParams(
            dimension_semantics=("parallel", "parallel", "arbitrary", "arbitrary"),
            vmem_limit_bytes=32 * 1024 * 1024,
        ),
    )(x, x, wq_h, wk_h, wv_h, bq_h, bk_h, bv_h, wo_h, bo)

    # einops 'b (h w) c -> b c h w'
    return out.swapaxes(1, 2).reshape(b, c, h, w)


def block_attention_reference(x_nchw, in_proj_w, in_proj_b, out_proj_w, out_proj_b, n_head):
    """Pure-JAX f32 reference of torch.nn.MultiheadAttention(batch_first=True) self-attention."""
    b, c, h, w = x_nchw.shape
    s = h * w
    dh = c // n_head
    x = x_nchw.reshape(b, c, s).swapaxes(1, 2)                        # (B, S, C)
    qkv = jnp.einsum("bsc,dc->bsd", x, in_proj_w) + in_proj_b         # (B, S, 3C)
    q, k, v = qkv[..., :c], qkv[..., c:2 * c], qkv[..., 2 * c:]
    q = q.reshape(b, s, n_head, dh).transpose(0, 2, 1, 3)
    k = k.reshape(b, s, n_head, dh).transpose(0, 2, 1, 3)
    v = v.reshape(b, s, n_head, dh).transpose(0, 2, 1, 3)
    scores = jnp.einsum("bhqd,bhkd->bhqk", q, k) / math.sqrt(dh)
    p = jax.nn.softmax(scores, axis=-1)
    o = jnp.einsum("bhqk,bhkd->bhqd", p, v)
    o = o.transpose(0, 2, 1, 3).reshape(b, s, c)
    y = jnp.einsum("bsc,dc->bsd", o, out_proj_w) + out_proj_b
    return y.swapaxes(1, 2).reshape(b, c, h, w)


if __name__ == "__main__":
    # Small-but-aligned shapes: S = 16*16 = 256 (two 128-token tiles), head_dim = 128.
    in_channel = 256
    n_head = 2
    h = w = 16
    batch = 2

    key = jax.random.PRNGKey(0)
    kx, k1, k2, k3, k4 = jax.random.split(key, 5)

    x = jax.random.normal(kx, (batch, in_channel, h, w), dtype=jnp.float32)
    in_proj_w = 0.05 * jax.random.normal(k1, (3 * in_channel, in_channel), dtype=jnp.float32)
    in_proj_b = 0.02 * jax.random.normal(k2, (3 * in_channel,), dtype=jnp.float32)
    out_proj_w = 0.05 * jax.random.normal(k3, (in_channel, in_channel), dtype=jnp.float32)
    out_proj_b = 0.02 * jax.random.normal(k4, (in_channel,), dtype=jnp.float32)

    y = block_attention_pallas(x, in_proj_w, in_proj_b, out_proj_w, out_proj_b, n_head)
    y = jax.block_until_ready(y)

    y_ref = block_attention_reference(x, in_proj_w, in_proj_b, out_proj_w, out_proj_b, n_head)
    assert y.shape == x.shape

    # bf16 MXU operands (f32 accumulation) -> loosened tolerance vs the f32 reference.
    diff = (y - y_ref).astype(jnp.float32)
    rel_l2 = jnp.linalg.norm(diff) / jnp.linalg.norm(y_ref.astype(jnp.float32))
    max_rel = jnp.max(jnp.abs(diff)) / jnp.max(jnp.abs(y_ref))
    assert float(rel_l2) < 2e-2 and float(max_rel) < 1e-1, (float(rel_l2), float(max_rel))

    print("KERNEL_OK")
</pallas_src>

<mosaic_0001>
module attributes {stable_mosaic.version = 11 : i64} {
  func.func @_block_attn_kernel(%arg0: i32, %arg1: i32, %arg2: i32, %arg3: i32, %arg4: memref<1x128x256xbf16, #tpu.memory_space<vmem>>, %arg5: memref<1x128x256xbf16, #tpu.memory_space<vmem>>, %arg6: memref<1x256x128xbf16, #tpu.memory_space<vmem>>, %arg7: memref<1x256x128xbf16, #tpu.memory_space<vmem>>, %arg8: memref<1x256x128xbf16, #tpu.memory_space<vmem>>, %arg9: memref<1x1x128xf32, #tpu.memory_space<vmem>>, %arg10: memref<1x1x128xf32, #tpu.memory_space<vmem>>, %arg11: memref<1x1x128xf32, #tpu.memory_space<vmem>>, %arg12: memref<1x128x256xbf16, #tpu.memory_space<vmem>>, %arg13: memref<1x256xf32, #tpu.memory_space<vmem>>, %arg14: memref<1x128x256xf32, #tpu.memory_space<vmem>>, %arg15: memref<128x128xbf16, #tpu.memory_space<vmem>>, %arg16: memref<128x1xf32, #tpu.memory_space<vmem>>, %arg17: memref<128x1xf32, #tpu.memory_space<vmem>>, %arg18: memref<128x128xf32, #tpu.memory_space<vmem>>, %arg19: memref<128x256xf32, #tpu.memory_space<vmem>>) attributes {dimension_semantics = [#tpu.dimension_semantics<parallel>, #tpu.dimension_semantics<parallel>, #tpu.dimension_semantics<arbitrary>, #tpu.dimension_semantics<arbitrary>], iteration_bounds = array<i64: 2, 2, 2, 2>, scalar_prefetch = 0 : i64, scratch_operands = 5 : i64, tpu.core_type = #tpu.core_type<tc>, window_params = [{transform_indices = @transform_0, window_bounds = array<i64: 1, 128, 256>}, {transform_indices = @transform_1, window_bounds = array<i64: 1, 128, 256>}, {transform_indices = @transform_2, window_bounds = array<i64: 1, 256, 128>}, {transform_indices = @transform_3, window_bounds = array<i64: 1, 256, 128>}, {transform_indices = @transform_4, window_bounds = array<i64: 1, 256, 128>}, {transform_indices = @transform_5, window_bounds = array<i64: 1, 1, 128>}, {transform_indices = @transform_6, window_bounds = array<i64: 1, 1, 128>}, {transform_indices = @transform_7, window_bounds = array<i64: 1, 1, 128>}, {transform_indices = @transform_8, window_bounds = array<i64: 1, 128, 256>}, {pipeline_mode = #tpu.pipeline_mode<synchronous>, transform_indices = @transform_9, window_bounds = array<i64: 1, 256>}, {transform_indices = @transform_10, window_bounds = array<i64: 1, 128, 256>}]} {
    %c0_i32 = arith.constant 0 : i32
    %0 = arith.cmpi eq, %arg2, %c0_i32 : i32
    %c0_i32_0 = arith.constant 0 : i32
    %1 = arith.cmpi eq, %arg3, %c0_i32_0 : i32
    %2 = arith.andi %0, %1 : i1
    %3 = arith.extui %2 : i1 to i32
    %c0_i32_1 = arith.constant 0 : i32
    %4 = arith.cmpi ne, %3, %c0_i32_1 : i32
    scf.if %4 {
      %c0_41 = arith.constant 0 : index
      %c0_42 = arith.constant 0 : index
      %59 = vector.load %arg13[%c0_41, %c0_42] : memref<1x256xf32, #tpu.memory_space<vmem>>, vector<1x256xf32>
      %60 = vector.shape_cast %59 : vector<1x256xf32> to vector<1x256xf32>
      %61 = vector.broadcast %60 : vector<1x256xf32> to vector<128x256xf32>
      %c0_43 = arith.constant 0 : index
      %c0_44 = arith.constant 0 : index
      %62 = vector.load %arg19[%c0_43, %c0_44] : memref<128x256xf32, #tpu.memory_space<vmem>>, vector<128x256xf32>
      tpu.vector_store %arg19[%c0_43, %c0_44], %61 {strides = array<i32>} : memref<128x256xf32, #tpu.memory_space<vmem>>, vector<128x256xf32>,
    } else {
    }
    %c0_i32_2 = arith.constant 0 : i32
    %5 = arith.cmpi eq, %arg3, %c0_i32_2 : i32
    %6 = arith.extui %5 : i1 to i32
    %c0_i32_3 = arith.constant 0 : i32
    %7 = arith.cmpi ne, %6, %c0_i32_3 : i32
    scf.if %7 {
      %c0_41 = arith.constant 0 : index
      %c0_42 = arith.constant 0 : index
      %c0_43 = arith.constant 0 : index
      %59 = vector.load %arg4[%c0_41, %c0_42, %c0_43] : memref<1x128x256xbf16, #tpu.memory_space<vmem>>, vector<1x128x256xbf16>
      %60 = vector.shape_cast %59 : vector<1x128x256xbf16> to vector<128x256xbf16>
      %c0_44 = arith.constant 0 : index
      %c0_45 = arith.constant 0 : index
      %c0_46 = arith.constant 0 : index
      %61 = vector.load %arg6[%c0_44, %c0_45, %c0_46] : memref<1x256x128xbf16, #tpu.memory_space<vmem>>, vector<1x256x128xbf16>
      %62 = vector.shape_cast %61 : vector<1x256x128xbf16> to vector<256x128xbf16>
      %cst_47 = arith.constant dense<0.000000e+00> : vector<128x128xf32>
      %63 = tpu.matmul %60, %62, %cst_47 {dimension_numbers = #tpu.dot_dimension_numbers<[1], [0], [0], [1], [0, 0, 1, 1], [], []>} : vector<128x256xbf16>, vector<256x128xbf16>, vector<128x128xf32> -> vector<128x128xf32>
      %c0_48 = arith.constant 0 : index
      %c0_49 = arith.constant 0 : index
      %c0_50 = arith.constant 0 : index
      %64 = vector.load %arg9[%c0_48, %c0_49, %c0_50] : memref<1x1x128xf32, #tpu.memory_space<vmem>>, vector<1x1x128xf32>
      %65 = vector.shape_cast %64 : vector<1x1x128xf32> to vector<1x128xf32>
      %66 = vector.broadcast %65 : vector<1x128xf32> to vector<128x128xf32>
      %67 = arith.addf %63, %66 : vector<128x128xf32>
      %68 = arith.truncf %67 : vector<128x128xf32> to vector<128x128xbf16>
      %c0_51 = arith.constant 0 : index
      %c0_52 = arith.constant 0 : index
      %69 = vector.load %arg15[%c0_51, %c0_52] : memref<128x128xbf16, #tpu.memory_space<vmem>>, vector<128x128xbf16>
      tpu.vector_store %arg15[%c0_51, %c0_52], %68 {strides = array<i32>} : memref<128x128xbf16, #tpu.memory_space<vmem>>, vector<128x128xbf16>,
      %cst_53 = arith.constant 0xFF800000 : f32
      %70 = vector.broadcast %cst_53 : f32 to vector<128x1xf32>
      %c0_54 = arith.constant 0 : index
      %c0_55 = arith.constant 0 : index
      %71 = vector.load %arg16[%c0_54, %c0_55] : memref<128x1xf32, #tpu.memory_space<vmem>>, vector<128x1xf32>
      tpu.vector_store %arg16[%c0_54, %c0_55], %70 {strides = array<i32>} : memref<128x1xf32, #tpu.memory_space<vmem>>, vector<128x1xf32>,
      %cst_56 = arith.constant 0.000000e+00 : f32
      %72 = vector.broadcast %cst_56 : f32 to vector<128x1xf32>
      %c0_57 = arith.constant 0 : index
      %c0_58 = arith.constant 0 : index
      %73 = vector.load %arg17[%c0_57, %c0_58] : memref<128x1xf32, #tpu.memory_space<vmem>>, vector<128x1xf32>
      tpu.vector_store %arg17[%c0_57, %c0_58], %72 {strides = array<i32>} : memref<128x1xf32, #tpu.memory_space<vmem>>, vector<128x1xf32>,
      %cst_59 = arith.constant 0.000000e+00 : f32
      %74 = vector.broadcast %cst_59 : f32 to vector<128x128xf32>
      %c0_60 = arith.constant 0 : index
      %c0_61 = arith.constant 0 : index
      %75 = vector.load %arg18[%c0_60, %c0_61] : memref<128x128xf32, #tpu.memory_space<vmem>>, vector<128x128xf32>
      tpu.vector_store %arg18[%c0_60, %c0_61], %74 {strides = array<i32>} : memref<128x128xf32, #tpu.memory_space<vmem>>, vector<128x128xf32>,
    } else {
    }
    %c0 = arith.constant 0 : index
    %c0_4 = arith.constant 0 : index
    %c0_5 = arith.constant 0 : index
    %8 = vector.load %arg5[%c0, %c0_4, %c0_5] : memref<1x128x256xbf16, #tpu.memory_space<vmem>>, vector<1x128x256xbf16>
    %9 = vector.shape_cast %8 : vector<1x128x256xbf16> to vector<128x256xbf16>
    %c0_6 = arith.constant 0 : index
    %c0_7 = arith.constant 0 : index
    %c0_8 = arith.constant 0 : index
    %10 = vector.load %arg7[%c0_6, %c0_7, %c0_8] : memref<1x256x128xbf16, #tpu.memory_space<vmem>>, vector<1x256x128xbf16>
    %11 = vector.shape_cast %10 : vector<1x256x128xbf16> to vector<256x128xbf16>
    %cst = arith.constant dense<0.000000e+00> : vector<128x128xf32>
    %12 = tpu.matmul %9, %11, %cst {dimension_numbers = #tpu.dot_dimension_numbers<[1], [0], [0], [1], [0, 0, 1, 1], [], []>} : vector<128x256xbf16>, vector<256x128xbf16>, vector<128x128xf32> -> vector<128x128xf32>
    %c0_9 = arith.constant 0 : index
    %c0_10 = arith.constant 0 : index
    %c0_11 = arith.constant 0 : index
    %13 = vector.load %arg10[%c0_9, %c0_10, %c0_11] : memref<1x1x128xf32, #tpu.memory_space<vmem>>, vector<1x1x128xf32>
    %14 = vector.shape_cast %13 : vector<1x1x128xf32> to vector<1x128xf32>
    %15 = vector.broadcast %14 : vector<1x128xf32> to vector<128x128xf32>
    %16 = arith.addf %12, %15 : vector<128x128xf32>
    %17 = arith.truncf %16 : vector<128x128xf32> to vector<128x128xbf16>
    %c0_12 = arith.constant 0 : index
    %c0_13 = arith.constant 0 : index
    %c0_14 = arith.constant 0 : index
    %18 = vector.load %arg8[%c0_12, %c0_13, %c0_14] : memref<1x256x128xbf16, #tpu.memory_space<vmem>>, vector<1x256x128xbf16>
    %19 = vector.shape_cast %18 : vector<1x256x128xbf16> to vector<256x128xbf16>
    %cst_15 = arith.constant dense<0.000000e+00> : vector<128x128xf32>
    %20 = tpu.matmul %9, %19, %cst_15 {dimension_numbers = #tpu.dot_dimension_numbers<[1], [0], [0], [1], [0, 0, 1, 1], [], []>} : vector<128x256xbf16>, vector<256x128xbf16>, vector<128x128xf32> -> vector<128x128xf32>
    %c0_16 = arith.constant 0 : index
    %c0_17 = arith.constant 0 : index
    %c0_18 = arith.constant 0 : index
    %21 = vector.load %arg11[%c0_16, %c0_17, %c0_18] : memref<1x1x128xf32, #tpu.memory_space<vmem>>, vector<1x1x128xf32>
    %22 = vector.shape_cast %21 : vector<1x1x128xf32> to vector<1x128xf32>
    %23 = vector.broadcast %22 : vector<1x128xf32> to vector<128x128xf32>
    %24 = arith.addf %20, %23 : vector<128x128xf32>
    %25 = arith.truncf %24 : vector<128x128xf32> to vector<128x128xbf16>
    %c0_19 = arith.constant 0 : index
    %c0_20 = arith.constant 0 : index
    %26 = vector.load %arg15[%c0_19, %c0_20] : memref<128x128xbf16, #tpu.memory_space<vmem>>, vector<128x128xbf16>
    %cst_21 = arith.constant dense<0.000000e+00> : vector<128x128xf32>
    %27 = tpu.matmul %26, %17, %cst_21 {dimension_numbers = #tpu.dot_dimension_numbers<[1], [1], [0], [0], [0, 0, 1, 0], [], []>} : vector<128x128xbf16>, vector<128x128xbf16>, vector<128x128xf32> -> vector<128x128xf32>
    %c0_22 = arith.constant 0 : index
    %c0_23 = arith.constant 0 : index
    %28 = vector.load %arg16[%c0_22, %c0_23] : memref<128x1xf32, #tpu.memory_space<vmem>>, vector<128x1xf32>
    %cst_24 = arith.constant dense<0xFF800000> : vector<128xf32>
    %29 = vector.multi_reduction <maximumf>, %27, %cst_24 [1] : vector<128x128xf32> to vector<128xf32>
    %30 = vector.shape_cast %29 : vector<128xf32> to vector<128x1xf32>
    %31 = arith.maximumf %28, %30 : vector<128x1xf32>
    %32 = arith.subf %28, %31 : vector<128x1xf32>
    %33 = math.exp %32 : vector<128x1xf32>
    %34 = vector.broadcast %31 : vector<128x1xf32> to vector<128x128xf32>
    %35 = arith.subf %27, %34 : vector<128x128xf32>
    %36 = math.exp %35 : vector<128x128xf32>
    %c0_25 = arith.constant 0 : index
    %c0_26 = arith.constant 0 : index
    %37 = vector.load %arg17[%c0_25, %c0_26] : memref<128x1xf32, #tpu.memory_space<vmem>>, vector<128x1xf32>
    %38 = arith.mulf %33, %37 : vector<128x1xf32>
    %cst_27 = arith.constant dense<0.000000e+00> : vector<128xf32>
    %39 = vector.multi_reduction <add>, %36, %cst_27 [1] : vector<128x128xf32> to vector<128xf32>
    %40 = vector.shape_cast %39 : vector<128xf32> to vector<128x1xf32>
    %41 = arith.addf %38, %40 : vector<128x1xf32>
    %c0_28 = arith.constant 0 : index
    %c0_29 = arith.constant 0 : index
    %42 = vector.load %arg17[%c0_28, %c0_29] : memref<128x1xf32, #tpu.memory_space<vmem>>, vector<128x1xf32>
    tpu.vector_store %arg17[%c0_28, %c0_29], %41 {strides = array<i32>} : memref<128x1xf32, #tpu.memory_space<vmem>>, vector<128x1xf32>,
    %c0_30 = arith.constant 0 : index
    %c0_31 = arith.constant 0 : index
    %43 = vector.load %arg18[%c0_30, %c0_31] : memref<128x128xf32, #tpu.memory_space<vmem>>, vector<128x128xf32>
    %44 = vector.broadcast %33 : vector<128x1xf32> to vector<128x128xf32>
    %45 = arith.mulf %44, %43 : vector<128x128xf32>
    %46 = arith.truncf %36 : vector<128x128xf32> to vector<128x128xbf16>
    %cst_32 = arith.constant dense<0.000000e+00> : vector<128x128xf32>
    %47 = tpu.matmul %46, %25, %cst_32 {dimension_numbers = #tpu.dot_dimension_numbers<[1], [0], [0], [1], [0, 0, 1, 1], [], []>} : vector<128x128xbf16>, vector<128x128xbf16>, vector<128x128xf32> -> vector<128x128xf32>
    %48 = arith.addf %45, %47 : vector<128x128xf32>
    %c0_33 = arith.constant 0 : index
    %c0_34 = arith.constant 0 : index
    %49 = vector.load %arg18[%c0_33, %c0_34] : memref<128x128xf32, #tpu.memory_space<vmem>>, vector<128x128xf32>
    tpu.vector_store %arg18[%c0_33, %c0_34], %48 {strides = array<i32>} : memref<128x128xf32, #tpu.memory_space<vmem>>, vector<128x128xf32>,
    %c0_35 = arith.constant 0 : index
    %c0_36 = arith.constant 0 : index
    %50 = vector.load %arg16[%c0_35, %c0_36] : memref<128x1xf32, #tpu.memory_space<vmem>>, vector<128x1xf32>
    tpu.vector_store %arg16[%c0_35, %c0_36], %31 {strides = array<i32>} : memref<128x1xf32, #tpu.memory_space<vmem>>, vector<128x1xf32>,
    %c1_i32 = arith.constant 1 : i32
    %51 = arith.cmpi eq, %arg3, %c1_i32 : i32
    %52 = arith.extui %51 : i1 to i32
    %c0_i32_37 = arith.constant 0 : i32
    %53 = arith.cmpi ne, %52, %c0_i32_37 : i32
    scf.if %53 {
      %c0_41 = arith.constant 0 : index
      %c0_42 = arith.constant 0 : index
      %59 = vector.load %arg18[%c0_41, %c0_42] : memref<128x128xf32, #tpu.memory_space<vmem>>, vector<128x128xf32>
      %c0_43 = arith.constant 0 : index
      %c0_44 = arith.constant 0 : index
      %60 = vector.load %arg17[%c0_43, %c0_44] : memref<128x1xf32, #tpu.memory_space<vmem>>, vector<128x1xf32>
      %61 = tpu.reciprocal %60 {approx = true} : vector<128x1xf32> -> vector<128x1xf32>
      %62 = vector.broadcast %61 : vector<128x1xf32> to vector<128x128xf32>
      %63 = arith.mulf %59, %62 : vector<128x128xf32>
      %c0_45 = arith.constant 0 : index
      %c0_46 = arith.constant 0 : index
      %64 = vector.load %arg19[%c0_45, %c0_46] : memref<128x256xf32, #tpu.memory_space<vmem>>, vector<128x256xf32>
      %65 = arith.truncf %63 : vector<128x128xf32> to vector<128x128xbf16>
      %c0_47 = arith.constant 0 : index
      %c0_48 = arith.constant 0 : index
      %c0_49 = arith.constant 0 : index
      %66 = vector.load %arg12[%c0_47, %c0_48, %c0_49] : memref<1x128x256xbf16, #tpu.memory_space<vmem>>, vector<1x128x256xbf16>
      %67 = vector.shape_cast %66 : vector<1x128x256xbf16> to vector<128x256xbf16>
      %cst_50 = arith.constant dense<0.000000e+00> : vector<128x256xf32>
      %68 = tpu.matmul %65, %67, %cst_50 {dimension_numbers = #tpu.dot_dimension_numbers<[1], [0], [0], [1], [0, 0, 1, 1], [], []>} : vector<128x128xbf16>, vector<128x256xbf16>, vector<128x256xf32> -> vector<128x256xf32>
      %69 = arith.addf %64, %68 : vector<128x256xf32>
      %c0_51 = arith.constant 0 : index
      %c0_52 = arith.constant 0 : index
      %70 = vector.load %arg19[%c0_51, %c0_52] : memref<128x256xf32, #tpu.memory_space<vmem>>, vector<128x256xf32>
      tpu.vector_store %arg19[%c0_51, %c0_52], %69 {strides = array<i32>} : memref<128x256xf32, #tpu.memory_space<vmem>>, vector<128x256xf32>,
    } else {
    }
    %c1_i32_38 = arith.constant 1 : i32
    %54 = arith.cmpi eq, %arg3, %c1_i32_38 : i32
    %c1_i32_39 = arith.constant 1 : i32
    %55 = arith.cmpi eq, %arg2, %c1_i32_39 : i32
    %56 = arith.andi %54, %55 : i1
    %57 = arith.extui %56 : i1 to i32
    %c0_i32_40 = arith.constant 0 : i32
    %58 = arith.cmpi ne, %57, %c0_i32_40 : i32
    scf.if %58 {
      %c0_41 = arith.constant 0 : index
      %c0_42 = arith.constant 0 : index
      %59 = vector.load %arg19[%c0_41, %c0_42] : memref<128x256xf32, #tpu.memory_space<vmem>>, vector<128x256xf32>
      %c0_43 = arith.constant 0 : index
      %c0_44 = arith.constant 0 : index
      %c0_45 = arith.constant 0 : index
      %60 = vector.load %arg14[%c0_43, %c0_44, %c0_45] : memref<1x128x256xf32, #tpu.memory_space<vmem>>, vector<1x128x256xf32>
      %61 = vector.shape_cast %60 : vector<1x128x256xf32> to vector<128x256xf32>
      %62 = vector.shape_cast %59 : vector<128x256xf32> to vector<1x128x256xf32>
      tpu.vector_store %arg14[%c0_43, %c0_44, %c0_45], %62 {strides = array<i32>} : memref<1x128x256xf32, #tpu.memory_space<vmem>>, vector<1x128x256xf32>,
    } else {
    }
    return
  }
  func.func @transform_0(%arg0: i32, %arg1: i32, %arg2: i32, %arg3: i32) -> (i32, i32, i32) {
    %c0_i32 = arith.constant 0 : i32
    %c0_i32_0 = arith.constant 0 : i32
    return %arg0, %arg1, %c0_i32 : i32, i32, i32
  }
  func.func @transform_1(%arg0: i32, %arg1: i32, %arg2: i32, %arg3: i32) -> (i32, i32, i32) {
    %c0_i32 = arith.constant 0 : i32
    %c0_i32_0 = arith.constant 0 : i32
    return %arg0, %arg3, %c0_i32 : i32, i32, i32
  }
  func.func @transform_2(%arg0: i32, %arg1: i32, %arg2: i32, %arg3: i32) -> (i32, i32, i32) {
    %c0_i32 = arith.constant 0 : i32
    %c0_i32_0 = arith.constant 0 : i32
    %c0_i32_1 = arith.constant 0 : i32
    return %arg2, %c0_i32, %c0_i32_0 : i32, i32, i32
  }
  func.func @transform_3(%arg0: i32, %arg1: i32, %arg2: i32, %arg3: i32) -> (i32, i32, i32) {
    %c0_i32 = arith.constant 0 : i32
    %c0_i32_0 = arith.constant 0 : i32
    %c0_i32_1 = arith.constant 0 : i32
    return %arg2, %c0_i32, %c0_i32_0 : i32, i32, i32
  }
  func.func @transform_4(%arg0: i32, %arg1: i32, %arg2: i32, %arg3: i32) -> (i32, i32, i32) {
    %c0_i32 = arith.constant 0 : i32
    %c0_i32_0 = arith.constant 0 : i32
    %c0_i32_1 = arith.constant 0 : i32
    return %arg2, %c0_i32, %c0_i32_0 : i32, i32, i32
  }
  func.func @transform_5(%arg0: i32, %arg1: i32, %arg2: i32, %arg3: i32) -> (i32, i32, i32) {
    %c0_i32 = arith.constant 0 : i32
    %c0_i32_0 = arith.constant 0 : i32
    %c0_i32_1 = arith.constant 0 : i32
    return %arg2, %c0_i32, %c0_i32_0 : i32, i32, i32
  }
  func.func @transform_6(%arg0: i32, %arg1: i32, %arg2: i32, %arg3: i32) -> (i32, i32, i32) {
    %c0_i32 = arith.constant 0 : i32
    %c0_i32_0 = arith.constant 0 : i32
    %c0_i32_1 = arith.constant 0 : i32
    return %arg2, %c0_i32, %c0_i32_0 : i32, i32, i32
  }
  func.func @transform_7(%arg0: i32, %arg1: i32, %arg2: i32, %arg3: i32) -> (i32, i32, i32) {
    %c0_i32 = arith.constant 0 : i32
    %c0_i32_0 = arith.constant 0 : i32
    %c0_i32_1 = arith.constant 0 : i32
    return %arg2, %c0_i32, %c0_i32_0 : i32, i32, i32
  }
  func.func @transform_8(%arg0: i32, %arg1: i32, %arg2: i32, %arg3: i32) -> (i32, i32, i32) {
    %c0_i32 = arith.constant 0 : i32
    %c0_i32_0 = arith.constant 0 : i32
    %c0_i32_1 = arith.constant 0 : i32
    return %arg2, %c0_i32, %c0_i32_0 : i32, i32, i32
  }
  func.func @transform_9(%arg0: i32, %arg1: i32, %arg2: i32, %arg3: i32) -> (i32, i32) {
    %c0_i32 = arith.constant 0 : i32
    %c0_i32_0 = arith.constant 0 : i32
    %c0_i32_1 = arith.constant 0 : i32
    return %c0_i32, %c0_i32_0 : i32, i32
  }
  func.func @transform_10(%arg0: i32, %arg1: i32, %arg2: i32, %arg3: i32) -> (i32, i32, i32) {
    %c0_i32 = arith.constant 0 : i32
    %c0_i32_0 = arith.constant 0 : i32
    return %arg0, %arg1, %c0_i32 : i32, i32, i32
  }
}

</mosaic_0001>

<bundles_post_ra>
// kernel: tpu_custom_call.1
= control target key start
LH: loop header
LB: loop body
LE: loop exit
PB: predicated region body
PF: predicated region fallthrough
CT: control target
= control target key end

     0   :  { %s5861_s0 = inlined_call_operand.hbm [shape: bf16[2,256,256], index: 0, kind: input, shape index: {}]   ;;  %s5862_s1 = inlined_call_operand.hbm [shape: bf16[2,256,256], index: 1, kind: input, shape index: {}]   ;;  %s5863_s2 = inlined_call_operand.hbm [shape: bf16[2,256,128], index: 2, kind: input, shape index: {}]   ;;  %s5864_s3 = inlined_call_operand.hbm [shape: bf16[2,256,128], index: 3, kind: input, shape index: {}]   ;;  %s5865_s4 = inlined_call_operand.hbm [shape: bf16[2,256,128], index: 4, kind: input, shape index: {}]   ;;  %s5866_s5 = inlined_call_operand.vmem [shape: f32[2,1,128], index: 5, kind: input, shape index: {}]   ;;  %s5867_s6 = inlined_call_operand.vmem [shape: f32[2,1,128], index: 6, kind: input, shape index: {}]   ;;  %s5868_s7 = inlined_call_operand.vmem [shape: f32[2,1,128], index: 7, kind: input, shape index: {}]   ;;  %s5869_s8 = inlined_call_operand.hbm [shape: bf16[2,128,256], index: 8, kind: input, shape index: {}]   ;;  %s5870_s9 = inlined_call_operand.vmem [shape: f32[1,256], index: 9, kind: input, shape index: {}]   ;;  %s5871_s10 = inlined_call_operand.hbm [shape: f32[2,256,256], index: 10, kind: output, shape index: {}]  }
   0x1   :  { %5918 = sst [smem:[#allocation51_spill]] %s5861_s0 }
   0x2   :  { %5919 = sst [smem:[#allocation52_spill]] %s5862_s1 }
   0x3   :  { %5920 = sst [smem:[#allocation53_spill]] %s5863_s2 }
   0x4   :  { %5921 = sst [smem:[#allocation54_spill]] %s5864_s3 }
   0x5   :  { %5922 = sst [smem:[#allocation55_spill]] %s5865_s4 }
   0x6   :  { %5923 = sst [smem:[#allocation56_spill]] %s5866_s5 }
   0x7   :  { %5924 = sst [smem:[#allocation57_spill]] %s5867_s6 }
   0x8   :  { %5925 = sst [smem:[#allocation58_spill]] %s5868_s7 }
   0x9   :  { %5926 = sst [smem:[#allocation59_spill]] %s5869_s8 }
   0xa   :  { %5927 = sst [smem:[#allocation60_spill]] %s5870_s9 }
   0xb   :  { %5928 = sst [smem:[#allocation61_spill]] %s5871_s10 }
   0xc   :  { %15 = vsyncpa [#allocation8], 0 }
   0xd   :  { %17 = vsyncpa [#allocation8 + $0x1], 0 }
   0xe   :  { %18 = vsyncpa [#allocation11], 0 }
   0xf   :  { %20 = vsyncpa [#allocation11 + $0x1], 0 }
  0x10   :  { %21 = vsyncpa [#allocation14], 0 }
  0x11   :  { %23 = vsyncpa [#allocation14 + $0x1], 0 }
  0x12   :  { %24 = vsyncpa [#allocation17], 0 }
  0x13   :  { %26 = vsyncpa [#allocation17 + $0x1], 0 }
  0x14   :  { %27 = vsyncpa [#allocation9], 0 }
  0x15   :  { %29 = vsyncpa [#allocation9 + $0x1], 0  ;;  %s4704_s13 = smov 0   ;;  %s4706_s14 = smov 0  }
  0x16   :  { %s4708_s15 = smov 0   ;;  %s4710_s16 = smov 0  }
  0x17   :  { %s4712_s17 = smov 0   ;;  %s4714_s18 = smov 0  }
  0x18   :  { %s4716_s19 = smov 0   ;;  %s4718_s20 = smov 0  }
  0x19   :  { %s4720_s21 = smov 0   ;;  %s4722_s22 = smov 0  }
  0x1a   :  { %s4724_s23 = smov 0   ;;  %s4726_s24 = smov 0  }
  0x1b   :  { %s4728_s25 = smov 0   ;;  %s4730_s26 = smov 0  }
  0x1c   :  { %s4732_s27 = smov 0   ;;  %s4734_s28 = smov 0  }
  0x1d   :  { %s4736_s29 = smov 0   ;;  %s4738_s30 = smov 0  }
  0x1e LB: > { %5929 = sst [smem:[#allocation25_spill]] %s4566_s14  ;;  %s4793_s11 = sadd.s32 4294967295, %s4630_s30   ;;  %s4630_s30 = sphi %s4738_s30, %s35_s30   ;;  %s4626_s29 = sphi %s4736_s29, %s6047_s29   ;;  %s4622_s28 = sphi %s4734_s28, %s6046_s28   ;;  %s4618_s27 = sphi %s4732_s27, %s6035_s27   ;;  %s4614_s26 = sphi %s4730_s26, %s6045_s26   ;;  %s4610_s25 = sphi %s4728_s25, %s6044_s25   ;;  %s4606_s24 = sphi %s4726_s24, %s6032_s24   ;;  %s4602_s23 = sphi %s4724_s23, %s6031_s23   ;;  %s4598_s22 = sphi %s4722_s22, %s6043_s22   ;;  %s4594_s21 = sphi %s4720_s21, %s6042_s21   ;;  %s4590_s20 = sphi %s4718_s20, %s6041_s20   ;;  %s4586_s19 = sphi %s4716_s19, %s6030_s19   ;;  %s4582_s18 = sphi %s4714_s18, %s6040_s18   ;;  %s4578_s17 = sphi %s4712_s17, %s6039_s17   ;;  %s4574_s16 = sphi %s4710_s16, %s6029_s16   ;;  %s4570_s15 = sphi %s4708_s15, %s6028_s15   ;;  %s4566_s14 = sphi %s4706_s14, %s6027_s14   ;;  %s4562_s13 = sphi %s4704_s13, %s6026_s13  }
  0x1f   : > { %5930 = sst [smem:[#allocation26_spill]] %s4570_s15  ;;  %s50_s12 = sadd.s32 1, %s4614_s26 }
  0x20   : > { %5931 = sst [smem:[#allocation27_spill]] %s4578_s17  ;;  %p4796_p0 = scmp.ge.s32.totalorder %s50_s12, 2 }
  0x21   : > { %5932 = sst [smem:[#allocation28_spill]] %s4586_s19  ;;  %p78_p1 = scmp.eq.s32.totalorder %s4630_s30, 0 }
  0x22   : > { %5933 = sst [smem:[#allocation29_spill]] %s4590_s20  ;;  %p5880_p2 = scmp.eq.s32.totalorder %s4793_s11, 0 }
  0x23   : > { %5934 = sst [smem:[#allocation30_spill]] %s4598_s22  ;;  %s6049_s12 = smov (%p4796_p0, %s50_s12), 0 }
  0x24   : > { %5935 = sst [smem:[#allocation31_spill]] %s4602_s23  ;;  %p105_p3 = scmp.ne.s32.totalorder %s4582_s18, %s4578_s17 }
  0x25   : > { %5936 = sst [smem:[#allocation32_spill]] %s4606_s24  ;;  %p111_p4 = scmp.ne.s32.totalorder %s4578_s17, %s4574_s16 }
  0x26   : > { %5937 = sst [smem:[#allocation33_spill]] %s4610_s25  ;;  %p4815_p5 = por %p105_p3, %p78_p1 }
  0x27   : > { %5938 = sst [smem:[#allocation34_spill]] %s4618_s27  ;;  %p4821_p6 = por %p111_p4, %p5880_p2 }
  0x28   : > { %5939 = sst [smem:[#allocation35_spill]] %s4622_s28  ;;  %p5879_p7 = scmp.lt.s32.totalorder %s4630_s30, 16 }
  0x29   : > { %5940 = sst [smem:[#allocation36_spill]] %s4626_s29  ;;  %s5886_s24 = sshll.u32 %s4626_s29, 6 }
  0x2a   : > { %5941 = sst [smem:[#allocation37_spill]] %s4793_s11  ;;  %s5887_s6 = sand.u32 1, %s4630_s30  }
  0x2b   : > { %5943 = sst [smem:[#allocation38_spill]] %s6049_s12  ;;  %s395_s9 = sand.u32 1, %s4582_s18  }
  0x2c   : > { %s5945_s25 = scalar_select %p4821_p6, 1, 0 }
  0x2d   : > { %s3302_s5 = sshll.u32 %s395_s9, 7  ;;  %s3460_s16 = sshll.u32 %s4614_s26, 5 }
  0x2e   : > { %5946 = sst [smem:[#allocation39_spill]] %s5945_s25  ;;  %s404_s22 = sadd.s32 %s3460_s16, %s5886_s24 }
  0x2f   : > { %s3306_s23 = sshll.u32 %s404_s22, 6  ;;  %s397_s17 = scalar_lea.vmem [#allocation10], %s3302_s5 }
  0x30   : > { %s407_s8 = sshll.u32 %s397_s17, 4  ;;  %s5947_s1 = sld [smem:[#allocation52_spill]]  ;;  %s408_s8 = int_to_ptr.vmem [resolvable:$true] %s407_s8 }
  0x31   : > { %p4839_p8 = pnand %p5879_p7, %p4815_p5  ;;  %p3319_p9 = scmp.ge.s32.totalorder %s4630_s30, 1 }
  0x32   : > { %p517_p10 = scmp.lt.s32.totalorder %s4630_s30, 17  ;;  %s4847_s9 = scalar_lea.sflag [#allocation11], %s5887_s6 }
  0x33   : > { %5949 = sst [smem:[#allocation40_spill]] %s4847_s9  ;;  %p4272_p11 = pneg %p4839_p8 }
  0x34   : > { %s4283_s5 = scalar_lea.vmem %s408_s8, 2048  ;;  %s4632_s2 = smov [#allocation10]  }
  0x35   : > { %p4284_p12 = scmp.ne.s32.totalorder %s408_s8, %s4283_s5  ;;  %s4288_s4 = sshll.u32 %s4632_s2, 4  ;;  %s4289_s4 = int_to_ptr.vmem [resolvable:$false] %s4288_s4 }
  0x36   : > { %s406_s0 = scalar_lea.hbm %s5947_s1, %s3306_s23  ;;  %s4290_s7 = scalar_lea.vmem %s4289_s4, 4096 }
  0x37   : > { %p4286_p13 = pnand %p4284_p12, %p4272_p11  ;;  %p4291_p4 = scmp.lt.s32.totalorder %s408_s8, %s4289_s4 }
  0x38   : > { %p4292_p5 = scmp.lt.s32.totalorder %s4290_s7, %s4283_s5 }
  0x39   : > { %p4287_p3 = pneg %p4286_p13 }
  0x3a   : > { %p4293_p7 = por %p4292_p5, %p4291_p4 }
  0x3c   : > { %p4294_p2 = pnand %p4293_p7, %p4287_p3 }
  0x3e   : > { %4297 = shalt.err (!%p4294_p2)
}
  0x3f   : > { %s5881_s17 = smov 128   ;;  %s5883_s22 = smov 8  }
  0x40   : > { %3869 = dma.hbm_to_vmem [thread:$0]  (!%p4839_p8), %s406_s0, 2048, %s408_s8, %s4847_s9, %s5881_s17, %s5881_s17, %s5883_s22  }
  0x41   : > { %p4861_p2 = pnand %p3319_p9, %p517_p10  ;;  %s53_s16 = sadd.s32 1, %s4618_s27 }
  0x42   : > { %s6051_s16 = smov (!%p4796_p0, %s53_s16), %s4618_s27  ;;  %s124_s25 = sadd.s32 1, %s4570_s15 }
  0x43   : > { %s5950_s23 = scalar_select %p4861_p2, 1, 0 }
  0x44   : > { %p131_p7 = scmp.ne.s32.totalorder %s4570_s15, %s4566_s14  ;;  %p55_p11 = scmp.ge.s32.totalorder %s6051_s16, 2 }
  0x45   : > { %5951 = sst [smem:[#allocation41_spill]] %s5950_s23  ;;  %p137_p8 = scmp.ne.s32.totalorder %s4566_s14, %s4562_s13 }
  0x46   : > { %p133_p12 = por %p131_p7, %p78_p1  ;;  %s5885_s0 = sand.u32 1, %s4570_s15  }
  0x47   : > { %s4883_s8 = scalar_select %p55_p11, 0, %s6051_s16  }
  0x48   : > { %p5953_p9 = scmp.eq.s32.totalorder %s4793_s11, 0  ;;  %s4893_s5 = sshll.u32 %s5885_s0, 7 }
  0x49   : > { %5952 = sst [smem:[#allocation42_spill]] %s4883_s8  ;;  %s121_s2 = ssub.s32 %s4618_s27, %s4883_s8 }
  0x4a   : > { %p4887_p10 = por %p137_p8, %p5953_p9  ;;  %s4898_s4 = sshll.u32 %s4618_s27, 11 }
  0x4b   : > { %p122_p0 = scmp.eq.s32.totalorder %s121_s2, 0  ;;  %p5956_p13 = scmp.lt.s32.totalorder %s4630_s30, 16 }
  0x4c   : > { %s5954_s10 = scalar_select %p4887_p10, 1, 0 }
  0x4d   : > { %p4902_p3 = pnand %p5956_p13, %p133_p12  ;;  %s5959_s3 = sld [smem:[#allocation54_spill]] }
  0x4e   : > { %5955 = sst [smem:[#allocation43_spill]] %s5954_s10  ;;  %s442_s24 = scalar_lea.vmem [#allocation13], %s4893_s5 }
  0x4f   : > { %s4907_s7 = scalar_select %p122_p0, %s4570_s15, %s124_s25  }
  0x50   : > { %s449_s6 = sshll.u32 %s442_s24, 4  ;;  %s5960_s1 = sand.u32 1, %s4630_s30   ;;  %s450_s6 = int_to_ptr.vmem [resolvable:$true] %s449_s6 }
  0x51   : > { %5958 = sst [smem:[#allocation44_spill]] %s4907_s7  ;;  %s4916_s8 = scalar_lea.sflag [#allocation14], %s5960_s1 }
  0x52   : > { %5961 = sst [smem:[#allocation45_spill]] %s4916_s8  ;;  %p5890_p4 = pneg %p4902_p3 }
  0x53   : > { %s448_s0 = scalar_lea.hbm %s5959_s3, %s4898_s4  ;;  %s4311_s2 = scalar_lea.vmem %s450_s6, 2048 }
  0x54   : > { %p4312_p5 = scmp.ne.s32.totalorder %s450_s6, %s4311_s2  ;;  %s4635_s25 = smov [#allocation13]  }
  0x55   : > { %s4316_s27 = sshll.u32 %s4635_s25, 4  ;;  %s4317_s27 = int_to_ptr.vmem [resolvable:$false] %s4316_s27 }
  0x56   : > { %p4314_p7 = pnand %p4312_p5, %p5890_p4  ;;  %s4318_s7 = scalar_lea.vmem %s4317_s27, 4096 }
  0x57   : > { %p4319_p12 = scmp.lt.s32.totalorder %s450_s6, %s4317_s27  ;;  %p4320_p9 = scmp.lt.s32.totalorder %s4318_s7, %s4311_s2 }
  0x58   : > { %p4315_p8 = pneg %p4314_p7 }
  0x59   : > { %p4321_p0 = por %p4320_p9, %p4319_p12 }
  0x5b   : > { %p4322_p13 = pnand %p4321_p0, %p4315_p8 }
  0x5d   : > { %4325 = shalt.err (!%p4322_p13)
}
  0x5e   : > { %s5891_s24 = smov 64   ;;  %s5893_s1 = smov 4  }
  0x5f   : > { %3875 = dma.hbm_to_vmem [thread:$0]  (!%p4902_p3), %s448_s0, 2048, %s450_s6, %s4916_s8, %s5891_s24, %s5891_s24, %s5893_s1  }
  0x60   : > { %s3294_s27 = sadd.s32 4294967294, %s4630_s30   ;;  %s57_s17 = sadd.s32 1, %s4622_s28 }
  0x61   : > { %s6053_s17 = smov (!%p55_p11, %s57_s17), %s4622_s28  ;;  %s70_s22 = sadd.s32 1, %s4594_s21 }
  0x62   : > { %p77_p5 = scmp.ne.s32.totalorder %s4594_s21, %s4590_s20  ;;  %p59_p7 = scmp.ge.s32.totalorder %s6053_s17, 2 }
  0x63   : > { %p83_p8 = scmp.ne.s32.totalorder %s4590_s20, %s4586_s19  ;;  %p340_p9 = scmp.eq.s32.totalorder %s4793_s11, 15 }
  0x64   : > { %p4941_p12 = por %p78_p1, %p77_p5  ;;  %s6055_s17 = smov (%p59_p7, %s6053_s17), 0 }
  0x65   : > { %5963 = sst [smem:[#allocation46_spill]] %s6055_s17  ;;  %s5964_s6 = sadd.s32 1, %s4626_s29 }
  0x66   : > { %s6057_s6 = smov (!%p59_p7, %s5964_s6), %s4626_s29  ;;  %s66_s16 = ssub.s32 %s4622_s28, %s6055_s17 }
  0x67   : > { %p5965_p11 = scmp.eq.s32.totalorder %s4793_s11, 0  ;;  %p63_p1 = scmp.ge.s32.totalorder %s6057_s6, 2 }
  0x68   : > { %p4959_p13 = por %p340_p9, %p77_p5  ;;  %p346_p4 = scmp.eq.s32.totalorder %s3294_s27, 15 }
  0x69   : > { %p4955_p0 = por %p5965_p11, %p83_p8  ;;  %s369_s25 = sand.u32 1, %s4594_s21  }
  0x6a   : > { %s5968_s2 = scalar_select %p4959_p13, 1, 0 }
  0x6b   : > { %s5966_s0 = scalar_select %p4955_p0, 1, 0 }
  0x6c   : > { %5969 = sst [smem:[#allocation48_spill]] %s5968_s2  ;;  %s6059_s6 = smov (%p63_p1, %s6057_s6), 0 }
  0x6d   : > { %5967 = sst [smem:[#allocation47_spill]] %s5966_s0  ;;  %p4966_p7 = por %p346_p4, %p83_p8 }
  0x6e   : > { %5970 = sst [smem:[#allocation49_spill]] %s6059_s6  ;;  %s65_s1 = ssub.s32 %s4626_s29, %s6059_s6 }
  0x6f   : > { %s5971_s24 = scalar_select %p4966_p7, 1, 0 }
  0x70   : > { %s3297_s3 = sshll.u32 %s369_s25, 7  ;;  %s67_s17 = sor.u32 %s66_s16, %s65_s1 }
  0x71   : > { %5972 = sst [smem:[#allocation50_spill]] %s5971_s24  ;;  %s5973_s19 = ssub.s32 %s4614_s26, %s6049_s12 }
  0x72   : > { %s95_s10 = sor.u32 %s5973_s19, %s65_s1  ;;  %p68_p5 = scmp.eq.s32.totalorder %s67_s17, 0 }
  0x73   : > { %p96_p9 = scmp.eq.s32.totalorder %s95_s10, 0  ;;  %s3459_s27 = sshll.u32 %s4622_s28, 5 }
  0x74   : > { %s4977_s2 = scalar_select %p68_p5, %s4594_s21, %s70_s22  }
  0x75   : > { %s5974_s14 = sadd.s32 1, %s4582_s18  ;;  %s5975_s0 = sshll.u32 %s4626_s29, 6 }
  0x76   : > { %s4982_s11 = scalar_select %p96_p9, %s4582_s18, %s5974_s14  }
  0x77   : > { %s380_s20 = sadd.s32 %s3459_s27, %s5975_s0  ;;  %s373_s24 = scalar_lea.vmem [#allocation7], %s3297_s3 }
  0x78   : > { %s383_s23 = sshll.u32 %s373_s24, 4  ;;  %s3301_s15 = sshll.u32 %s380_s20, 6  ;;  %s384_s23 = int_to_ptr.vmem [resolvable:$true] %s383_s23 }
  0x79   : > { %s5976_s9 = sld [smem:[#allocation51_spill]]  ;;  %p5977_p4 = scmp.lt.s32.totalorder %s4630_s30, 16 }
  0x7a   : > { %s5979_s14 = sld [smem:[#allocation53_spill]]  ;;  %s421_s22 = scalar_lea.vmem [#allocation12], %s4893_s5 }
  0x7b   : > { %p4993_p8 = pnand %p5977_p4, %p4941_p12  ;;  %s428_s3 = sshll.u32 %s421_s22, 4  ;;  %s429_s3 = int_to_ptr.vmem [resolvable:$true] %s428_s3 }
  0x7c   : > { %s370_s24 = scalar_lea.sflag [#allocation8], %s369_s25  ;;  %s4339_s20 = scalar_lea.vmem %s384_s23, 2048 }
  0x7d   : > { %p4328_p11 = pneg %p4993_p8  ;;  %p4340_p1 = scmp.ne.s32.totalorder %s384_s23, %s4339_s20 }
  0x7f   : > { %s382_s16 = scalar_lea.hbm %s5976_s9, %s3301_s15  ;;  %p4342_p5 = pnand %p4340_p1, %p4328_p11 }
  0x80   : > { %s427_s17 = scalar_lea.hbm %s5979_s14, %s4898_s4  ;;  %s4638_s15 = smov [#allocation7]  }
  0x81   : > { %p4343_p9 = pneg %p4342_p5  ;;  %s4344_s9 = sshll.u32 %s4638_s15, 4  ;;  %s4345_s9 = int_to_ptr.vmem [resolvable:$false] %s4344_s9 }
  0x82   : > { %s4346_s8 = scalar_lea.vmem %s4345_s9, 4096  ;;  %p4347_p12 = scmp.lt.s32.totalorder %s384_s23, %s4345_s9 }
  0x83   : > { %p4348_p4 = scmp.lt.s32.totalorder %s4346_s8, %s4339_s20 }
  0x85   : > { %p4349_p7 = por %p4348_p4, %p4347_p12 }
  0x87   : > { %p4350_p13 = pnand %p4349_p7, %p4343_p9 }
  0x89   : > { %4353 = shalt.err (!%p4350_p13)
}
  0x8a   : > { %s5981_s7 = smov 8   ;;  %s5982_s6 = smov 128  }
  0x8b   : > { %3866 = dma.hbm_to_vmem [thread:$0]  (!%p4993_p8), %s382_s16, 2048, %s384_s23, %s370_s24, %s5982_s6, %s5982_s6, %s5981_s7  }
  0x8c   : > { %s4367_s0 = scalar_lea.vmem %s429_s3, 2048  ;;  %p5983_p1 = pneg %p4902_p3 }
  0x8d   : > { %p4368_p11 = scmp.ne.s32.totalorder %s429_s3, %s4367_s0  ;;  %s4639_s25 = smov [#allocation12]  }
  0x8e   : > { %s4372_s27 = sshll.u32 %s4639_s25, 4  ;;  %s4373_s27 = int_to_ptr.vmem [resolvable:$false] %s4372_s27 }
  0x8f   : > { %p4370_p5 = pnand %p4368_p11, %p5983_p1  ;;  %s4374_s10 = scalar_lea.vmem %s4373_s27, 4096 }
  0x90   : > { %p4375_p7 = scmp.lt.s32.totalorder %s429_s3, %s4373_s27  ;;  %p4376_p13 = scmp.lt.s32.totalorder %s4374_s10, %s4367_s0 }
  0x91   : > { %p4371_p10 = pneg %p4370_p5 }
  0x92   : > { %p4377_p9 = por %p4376_p13, %p4375_p7 }
  0x94   : > { %p4378_p12 = pnand %p4377_p9, %p4371_p10 }
  0x96   : > { %4381 = shalt.err (!%p4378_p12)
}
  0x97   : > { %s5984_s19 = smov 4   ;;  %s5985_s23 = smov 64  }
  0x98   : > { %s5986_s16 = sld [smem:[#allocation40_spill]]  ;;  %s463_s9 = scalar_lea.vmem [#allocation15], %s4893_s5 }
  0x99   : > { %s5987_s20 = sld [smem:[#allocation55_spill]]  ;;  %s470_s8 = sshll.u32 %s463_s9, 4  ;;  %s471_s8 = int_to_ptr.vmem [resolvable:$true] %s470_s8 }
  0x9a   : > { %s4395_s0 = scalar_lea.vmem %s471_s8, 2048  ;;  %p5988_p8 = pmov %p5983_p1 }
  0x9b   : > { %p4396_p10 = scmp.ne.s32.totalorder %s471_s8, %s4395_s0  ;;  %s4640_s25 = smov [#allocation15]  }
  0x9c   : > { %s4400_s27 = sshll.u32 %s4640_s25, 4  ;;  %s4401_s27 = int_to_ptr.vmem [resolvable:$false] %s4400_s27 }
  0x9d   : > { %p4398_p4 = pnand %p4396_p10, %p5988_p8  ;;  %s4402_s10 = scalar_lea.vmem %s4401_s27, 4096 }
  0x9e   : > { %3872 = dma.hbm_to_vmem [thread:$0]  (!%p4902_p3), %s427_s17, 2048, %s429_s3, %s5986_s16, %s5985_s23, %s5985_s23, %s5984_s19  }
  0x9f   : > { %s469_s15 = scalar_lea.hbm %s5987_s20, %s4898_s4  ;;  %p4399_p11 = pneg %p4398_p4 }
  0xa0   : > { %p4403_p1 = scmp.lt.s32.totalorder %s471_s8, %s4401_s27  ;;  %p4404_p5 = scmp.lt.s32.totalorder %s4402_s10, %s4395_s0 }
  0xa2   : > { %p4405_p7 = por %p4404_p5, %p4403_p1 }
  0xa4   : > { %p4406_p13 = pnand %p4405_p7, %p4399_p11 }
  0xa6   : > { %4409 = shalt.err (!%p4406_p13)
}
  0xa7   : > { %s5989_s17 = sld [smem:[#allocation45_spill]]  ;;  %s502_s24 = scalar_lea.vmem [#allocation16], %s4893_s5 }
  0xa8   : > { %s5990_s3 = sld [smem:[#allocation26_spill]]  ;;  %s509_s20 = sshll.u32 %s502_s24, 4  ;;  %s510_s20 = int_to_ptr.vmem [resolvable:$true] %s509_s20 }
  0xa9   : > { %s5991_s14 = sld [smem:[#allocation59_spill]]  ;;  %s4423_s25 = scalar_lea.vmem %s510_s20, 2048 }
  0xaa   : > { %p4424_p9 = scmp.ne.s32.totalorder %s510_s20, %s4423_s25  ;;  %p5993_p12 = pmov %p5988_p8 }
  0xab   : > { %s4641_s27 = smov [#allocation16]  }
  0xac   : > { %p4426_p10 = pnand %p4424_p9, %p5993_p12  ;;  %s4428_s10 = sshll.u32 %s4641_s27, 4  ;;  %s4429_s10 = int_to_ptr.vmem [resolvable:$false] %s4428_s10 }
  0xad   : > { %3878 = dma.hbm_to_vmem [thread:$0]  (!%p4902_p3), %s469_s15, 2048, %s471_s8, %s5989_s17, %s5985_s23, %s5985_s23, %s5984_s19  }
  0xae   : > { %s5992_s9 = sand.u32 1, %s5990_s3   ;;  %p4427_p8 = pneg %p4426_p10 }
  0xaf   : > { %s508_s22 = scalar_lea.hbm %s5991_s14, %s4898_s4  ;;  %s499_s0 = scalar_lea.sflag [#allocation17], %s5992_s9 }
  0xb0   : > { %s4430_s12 = scalar_lea.vmem %s4429_s10, 4096  ;;  %p4431_p4 = scmp.lt.s32.totalorder %s510_s20, %s4429_s10 }
  0xb1   : > { %p4432_p11 = scmp.lt.s32.totalorder %s4430_s12, %s4423_s25 }
  0xb3   : > { %p4433_p1 = por %p4432_p11, %p4431_p4 }
  0xb5   : > { %p4434_p5 = pnand %p4433_p1, %p4427_p8 }
  0xb7   : > { %4437 = shalt.err (!%p4434_p5)
}
  0xb8   : > { %3881 = dma.hbm_to_vmem [thread:$0]  (!%p4902_p3), %s508_s22, 2048, %s510_s20, %s499_s0, %s5982_s6, %s5982_s6, %s5981_s7  }
  0xb9   : > { %521 = sbr.rel (%p4861_p2) target bundleno = 2053 (0x805), region = 60  ;;  %s5995_s4 = sld [smem:[#allocation29_spill]] (!%p4861_p2) }
  0xbf   : > { %s5055_s23 = sand.u32 1, %s5995_s4  }
  0xc0   : > { %s3320_s15 = sshll.u32 %s5055_s23, 7  ;;  %s524_s12 = scalar_lea.sflag [#allocation8], %s5055_s23 }
  0xc1   : > { %s5059_s8 = scalar_lea.vmem [#allocation7], %s3320_s15 }
  0xc2   : > { %4537 = dma.done.wait (%p4955_p0), %s524_s12, 2048  }
  0xc3   : > { %4539 = vsyncadd (%p4955_p0), %s524_s12, 4294965248  ;;  %s5997_s13 = sld [smem:[#allocation37_spill]] }
  0xc4   : > { %s5998_s7 = sld [smem:[#allocation27_spill]] }
  0xc9   : > { %s532_s17 = sand.u32 1, %s5997_s13  }
  0xca   : > { %s534_s3 = sand.u32 1, %s5998_s7   ;;  %s533_s1 = scalar_lea.sflag [#allocation11], %s532_s17 }
  0xcb   : > { %s3321_s16 = sshll.u32 %s534_s3, 7 }
  0xcc   : > { %s5067_s14 = scalar_lea.vmem [#allocation10], %s3321_s16 }
  0xcd   : > { %4541 = dma.done.wait (%p4821_p6), %s533_s1, 2048  }
  0xce   : > { %4543 = vsyncadd (%p4821_p6), %s533_s1, 4294965248  ;;  %s6000_s22 = sld [smem:[#allocation25_spill]] }
  0xcf   : > { %s6001_s24 = sld [smem:[#allocation43_spill]] }
  0xd4   : > { %s543_s20 = sand.u32 1, %s6000_s22  }
  0xd5   : > { %s3322_s9 = sshll.u32 %s543_s20, 7  ;;  %p6002_p2 = scmp.ne.s32.totalorder %s6001_s24, 0 }
  0xd6   : > { %s5074_s0 = scalar_lea.vmem [#allocation12], %s3322_s9 }
  0xd7   : > { %4545 = dma.done.wait (%p6002_p2), %s533_s1, 2048  }
  0xd8   : > { %4547 = vsyncadd (%p6002_p2), %s533_s1, 4294965248  ;;  %s551_s25 = scalar_lea.sflag [#allocation14], %s532_s17  ;;  %s5080_s27 = scalar_lea.vmem [#allocation13], %s3322_s9 }
  0xd9   : > { %4549 = dma.done.wait (%p6002_p2), %s551_s25, 4096  }
  0xda   : > { %4551 = vsyncadd (%p6002_p2), %s551_s25, 4294963200  ;;  %s5086_s10 = scalar_lea.vmem [#allocation15], %s3322_s9  ;;  %s569_s5 = scalar_lea.sflag [#allocation17], %s543_s20 }
  0xdb   : > { %s5088_s4 = scalar_lea.vmem [#allocation16], %s3322_s9 }
  0xdc   : > { %4553 = dma.done.wait (%p6002_p2), %s569_s5, 2048  }
  0xdd   : > { %4555 = vsyncadd (%p6002_p2), %s569_s5, 4294965248  ;;  %s6003_s19 = sld [smem:[#allocation31_spill]]  ;;  %s3326_s12 = sshll.u32 %s5055_s23, 8 }
  0xde   : > { %s6004_s15 = sld [smem:[#allocation30_spill]]  ;;  %s5113_s5 = scalar_lea.vmem [#allocation18], %s3326_s12 }
  0xdf   : > { %s6005_s6 = sld [smem:[#allocation56_spill]] }
  0xe0   : > { %s6006_s1 = sld [smem:[#allocation57_spill]] }
  0xe1   : > { %s6007_s9 = sld [smem:[#allocation58_spill]] }
  0xe3   : > { %p645_p6 = scmp.lt.s32.totalorder %s6003_s19, 1  ;;  %p656_p3 = scmp.eq.s32.totalorder %s6003_s19, 0 }
  0xe4   : > { %p657_p0 = scmp.eq.s32.totalorder %s6004_s15, 0 }
  0xe5   : > { %s6061_s19 = smov (!%p645_p6, %s6003_s19), 1 }
  0xe6   : > { %s647_s17 = scalar_lea.vmem %s6005_s6, %s6061_s19  ;;  %s650_s22 = scalar_lea.vmem %s6006_s1, %s6061_s19 }
  0xe7   : > { %s653_s25 = scalar_lea.vmem %s6007_s9, %s6061_s19  ;;  %p658_p7 = pnand %p657_p0, %p656_p3 }
  0xe8   : > { %s6008_s28 = sld [smem:[#allocation60_spill]] (!%p658_p7) }
  0xe9   : > { %661 = sbr.rel (%p658_p7) target bundleno = 262 (0x106), region = 88 }
  0xee   : > { %v664_v0 = vlaneseq  ;;  %v662_v2 = vld [vmem:[%s6008_s28] sm:$0x3] }
  0xf0   : > { %v665_v1 = vshrl.u32 %v664_v0, 7 }
  0xf2   : > { %v666_v3 = vsub.s32 0, %v665_v1  ;;  %v670_v4 = vsub.s32 1, %v665_v1 }
  0xf4   : > { %v667_v5 = vrot.slane %v662_v2, %v666_v3  ;;  %v671_v6 = vrot.slane %v662_v2, %v670_v4 }
  0xf6   : > { %674 = vst [vmem:[#allocation6 + $0xa8] sm:$0xff] %v667_v5  ;;  %676 = vst [vmem:[#allocation6 + $0x10] sm:$0xff] %v667_v5 }
  0xf7   : > { %678 = vst [vmem:[#allocation6 + $0xc8] sm:$0xff] %v667_v5  ;;  %680 = vst [vmem:[#allocation6 + $0x70] sm:$0xff] %v667_v5 }
  0xf8   : > { %682 = vst [vmem:[#allocation6 + $0x48] sm:$0xff] %v667_v5  ;;  %684 = vst [vmem:[#allocation6 + $0x78] sm:$0xff] %v667_v5 }
  0xf9   : > { %686 = vst [vmem:[#allocation6 + $0xf0] sm:$0xff] %v667_v5  ;;  %688 = vst [vmem:[#allocation6 + $0x30] sm:$0xff] %v667_v5 }
  0xfa   : > { %690 = vst [vmem:[#allocation6 + $0xb8] sm:$0xff] %v667_v5  ;;  %692 = vst [vmem:[#allocation6 + $0xd8] sm:$0xff] %v667_v5 }
  0xfb   : > { %694 = vst [vmem:[#allocation6 + $0x80] sm:$0xff] %v667_v5  ;;  %696 = vst [vmem:[#allocation6 + $0x28] sm:$0xff] %v667_v5 }
  0xfc   : > { %698 = vst [vmem:[#allocation6 + $0x90] sm:$0xff] %v667_v5  ;;  %700 = vst [vmem:[#allocation6 + $0xa0] sm:$0xff] %v667_v5 }
  0xfd   : > { %702 = vst [vmem:[#allocation6 + $0x8] sm:$0xff] %v667_v5  ;;  %704 = vst [vmem:[#allocation6 + $0x60] sm:$0xff] %v667_v5 }
  0xfe   : > { %675 = vst [vmem:[#allocation6 + $0x68] sm:$0xff] %v671_v6  ;;  %677 = vst [vmem:[#allocation6 + $0xc0] sm:$0xff] %v671_v6 }
  0xff   : > { %679 = vst [vmem:[#allocation6 + $0xb0] sm:$0xff] %v671_v6  ;;  %681 = vst [vmem:[#allocation6 + $0x38] sm:$0xff] %v671_v6 }
 0x100   : > { %683 = vst [vmem:[#allocation6 + $0xf8] sm:$0xff] %v671_v6  ;;  %685 = vst [vmem:[#allocation6 + $0x88] sm:$0xff] %v671_v6 }
 0x101   : > { %687 = vst [vmem:[#allocation6 + $0x18] sm:$0xff] %v671_v6  ;;  %689 = vst [vmem:[#allocation6 + $0x50] sm:$0xff] %v671_v6 }
 0x102   : > { %691 = vst [vmem:[#allocation6 + $0xd0] sm:$0xff] %v671_v6  ;;  %693 = vst [vmem:[#allocation6 + $0x58] sm:$0xff] %v671_v6 }
 0x103   : > { %695 = vst [vmem:[#allocation6 + $0x40] sm:$0xff] %v671_v6  ;;  %697 = vst [vmem:[#allocation6] sm:$0xff] %v671_v6 }
 0x104   : > { %699 = vst [vmem:[#allocation6 + $0xe8] sm:$0xff] %v671_v6  ;;  %701 = vst [vmem:[#allocation6 + $0x20] sm:$0xff] %v671_v6 }
 0x105   : > { %703 = vst [vmem:[#allocation6 + $0xe0] sm:$0xff] %v671_v6  ;;  %705 = vst [vmem:[#allocation6 + $0x98] sm:$0xff] %v671_v6 }
 0x106 PF: > { %s6009_s28 = sld [smem:[#allocation30_spill]] }
 0x10c   : > { %p3327_p13 = scmp.ne.s32.totalorder %s6009_s28, 0 }
 0x10e   : > { %708 = sbr.rel (%p3327_p13) target bundleno = 538 (0x21a), region = 92 }
 0x113   : > { %v4042_v7 = vld [vmem:[%s5074_s0 + $0x78] sm:$0xff]   ;;  %v4044_v9 = vld [vmem:[%s5074_s0 + $0x70] sm:$0xff]   ;;  %v4046_v11 = vld [vmem:[%s5074_s0 + $0x68] sm:$0xff]   ;;  %vm1117_vm0 = vcmask 7168   ;;  %v4642_v39 = vmov -inf   ;;  %v4643_v40 = vmov 0.0  }
 0x114   : > { %v4043_v8 = vld [vmem:[%s5074_s0 + $0x38] sm:$0xff]   ;;  %3529 = vmatprep.subr.bf16.mxu0 %v4042_v7  ;;  %3817 = vmatprep.subr.bf16.mxu1 %v4042_v7  ;;  %v4045_v10 = vld [vmem:[%s5074_s0 + $0x30] sm:$0xff]   ;;  %v4047_v12 = vld [vmem:[%s5074_s0 + $0x28] sm:$0xff]   ;;  %1118 = vst.msk [vmem:[#allocation3] sm:$0xff] %vm1117_vm0, %v4642_v39 }
 0x115   : > { %3530 = vmatpush3.bf16.msra.mxu0 %v4043_v8  ;;  %3825 = vmatpush3.bf16.msra.mxu1 %v4043_v8  ;;  %v4048_v13 = vld [vmem:[%s5074_s0 + $0x60] sm:$0xff]   ;;  %v4050_v15 = vld [vmem:[%s5074_s0 + $0x58] sm:$0xff]   ;;  %v4052_v17 = vld [vmem:[%s5074_s0 + $0x50] sm:$0xff]   ;;  %1119 = vst.msk [vmem:[#allocation3 + $0x8] sm:$0xff] %vm1117_vm0, %v4642_v39 }
 0x116   : > { %3531 = vmatprep.subr.bf16.mxu0 %v4044_v9  ;;  %3818 = vmatprep.subr.bf16.mxu1 %v4044_v9  ;;  %v4049_v14 = vld [vmem:[%s5074_s0 + $0x20] sm:$0xff]   ;;  %v4051_v16 = vld [vmem:[%s5074_s0 + $0x18] sm:$0xff]   ;;  %v4053_v20 = vld [vmem:[%s5074_s0 + $0x10] sm:$0xff]   ;;  %1120 = vst.msk [vmem:[#allocation3 + $0x10] sm:$0xff] %vm1117_vm0, %v4642_v39 }
 0x117   : > { %v4060_v18 = vld [vmem:[%s5059_s8 + $0x4] ss:$8 sps:$4 sm:$0xff]   ;;  %v4058_v25 = vld [vmem:[%s5059_s8] ss:$8 sps:$4 sm:$0xff]   ;;  %v4064_v27 = vld [vmem:[%s5059_s8 + $0x14] ss:$8 sps:$4 sm:$0xff]  }
 0x118   : > { %v4063_v19 = vld [vmem:[%s5059_s8 + $0x44] ss:$8 sps:$4 sm:$0xff]   ;;  %972 = vmatprep.mubr.bf16.mxu0 %v4060_v18  ;;  %v4061_v26 = vld [vmem:[%s5059_s8 + $0x40] ss:$8 sps:$4 sm:$0xff]   ;;  %v4066_v28 = vld [vmem:[%s5059_s8 + $0x54] ss:$8 sps:$4 sm:$0xff]  }
 0x119   : > { %3532 = vmatpush3.bf16.msra.mxu0 %v4045_v10  ;;  %3826 = vmatpush3.bf16.msra.mxu1 %v4045_v10  ;;  %v4054_v21 = vld [vmem:[%s5074_s0 + $0x48] sm:$0xff]   ;;  %v4056_v23 = vld [vmem:[%s5074_s0 + $0x40] sm:$0xff]   ;;  %v4068_v29 = vld [vmem:[%s5059_s8 + $0x10] ss:$8 sps:$4 sm:$0xff]   ;;  %1121 = vst.msk [vmem:[#allocation3 + $0x18] sm:$0xff] %vm1117_vm0, %v4642_v39 }
 0x11a   : > { %3533 = vmatprep.subr.bf16.mxu0 %v4046_v11  ;;  %3819 = vmatprep.subr.bf16.mxu1 %v4046_v11  ;;  %v4055_v22 = vld [vmem:[%s5074_s0 + $0x8] sm:$0xff]   ;;  %v4057_v24 = vld [vmem:[%s5074_s0] sm:$0xff]   ;;  %v4069_v30 = vld [vmem:[%s5059_s8 + $0x50] ss:$8 sps:$4 sm:$0xff]   ;;  %1122 = vst.msk [vmem:[#allocation3 + $0x20] sm:$0xff] %vm1117_vm0, %v4642_v39 }
 0x11b   : > { %1004 = vmatprep.mubr.bf16.mxu1 %v4063_v19  ;;  %v4070_v31 = vld [vmem:[%s5059_s8 + $0x24] ss:$8 sps:$4 sm:$0xff]   ;;  %v4074_v33 = vld [vmem:[%s5059_s8 + $0x20] ss:$8 sps:$4 sm:$0xff]   ;;  %v4076_v35 = vld [vmem:[%s5059_s8 + $0x34] ss:$8 sps:$4 sm:$0xff]  }
 0x11c   : > { %v4072_v32 = vld [vmem:[%s5059_s8 + $0x64] ss:$8 sps:$4 sm:$0xff]   ;;  %v4075_v34 = vld [vmem:[%s5059_s8 + $0x60] ss:$8 sps:$4 sm:$0xff]   ;;  %v4078_v36 = vld [vmem:[%s5059_s8 + $0x74] ss:$8 sps:$4 sm:$0xff]  }
 0x11d   : > { %3534 = vmatpush3.bf16.msra.mxu0 %v4047_v12  ;;  %3827 = vmatpush3.bf16.msra.mxu1 %v4047_v12  ;;  %v4080_v37 = vld [vmem:[%s5059_s8 + $0x30] ss:$8 sps:$4 sm:$0xff]   ;;  %1123 = vst.msk [vmem:[#allocation3 + $0x28] sm:$0xff] %vm1117_vm0, %v4642_v39  ;;  %1124 = vst.msk [vmem:[#allocation3 + $0x30] sm:$0xff] %vm1117_vm0, %v4642_v39  ;;  %v5188_v49 = vld [vmem:[%s647_s17] ss:$0 sm:$0xff] }
 0x11e   : > { %3535 = vmatprep.subr.bf16.mxu0 %v4048_v13  ;;  %3820 = vmatprep.subr.bf16.mxu1 %v4048_v13  ;;  %v4081_v38 = vld [vmem:[%s5059_s8 + $0x70] ss:$8 sps:$4 sm:$0xff]   ;;  %1125 = vst.msk [vmem:[#allocation3 + $0x38] sm:$0xff] %vm1117_vm0, %v4642_v39  ;;  %1126 = vst.msk [vmem:[#allocation3 + $0x40] sm:$0xff] %vm1117_vm0, %v4642_v39 }
 0x11f   : > { %1127 = vst.msk [vmem:[#allocation3 + $0x48] sm:$0xff] %vm1117_vm0, %v4642_v39  ;;  %1128 = vst.msk [vmem:[#allocation3 + $0x50] sm:$0xff] %vm1117_vm0, %v4642_v39 }
 0x120   : > { %1129 = vst.msk [vmem:[#allocation3 + $0x58] sm:$0xff] %vm1117_vm0, %v4642_v39  ;;  %1130 = vst.msk [vmem:[#allocation3 + $0x60] sm:$0xff] %vm1117_vm0, %v4642_v39 }
 0x121   : > { %3536 = vmatpush3.bf16.msra.mxu0 %v4049_v14  ;;  %3828 = vmatpush3.bf16.msra.mxu1 %v4049_v14  ;;  %1131 = vst.msk [vmem:[#allocation3 + $0x68] sm:$0xff] %vm1117_vm0, %v4642_v39  ;;  %1132 = vst.msk [vmem:[#allocation3 + $0x70] sm:$0xff] %vm1117_vm0, %v4642_v39 }
 0x122   : > { %3537 = vmatprep.subr.bf16.mxu0 %v4050_v15  ;;  %3821 = vmatprep.subr.bf16.mxu1 %v4050_v15  ;;  %1133 = vst.msk [vmem:[#allocation3 + $0x78] sm:$0xff] %vm1117_vm0, %v4642_v39  ;;  %1134 = vst.msk [vmem:[#allocation4] sm:$0xff] %vm1117_vm0, %v4643_v40 }
 0x123   : > { %1135 = vst.msk [vmem:[#allocation4 + $0x8] sm:$0xff] %vm1117_vm0, %v4643_v40  ;;  %1136 = vst.msk [vmem:[#allocation4 + $0x10] sm:$0xff] %vm1117_vm0, %v4643_v40 }
 0x124   : > { %1137 = vst.msk [vmem:[#allocation4 + $0x18] sm:$0xff] %vm1117_vm0, %v4643_v40  ;;  %1138 = vst.msk [vmem:[#allocation4 + $0x20] sm:$0xff] %vm1117_vm0, %v4643_v40 }
 0x125   : > { %3538 = vmatpush3.bf16.msra.mxu0 %v4051_v16  ;;  %3829 = vmatpush3.bf16.msra.mxu1 %v4051_v16  ;;  %1139 = vst.msk [vmem:[#allocation4 + $0x28] sm:$0xff] %vm1117_vm0, %v4643_v40  ;;  %1140 = vst.msk [vmem:[#allocation4 + $0x30] sm:$0xff] %vm1117_vm0, %v4643_v40 }
 0x126   : > { %3539 = vmatprep.subr.bf16.mxu0 %v4052_v17  ;;  %3822 = vmatprep.subr.bf16.mxu1 %v4052_v17  ;;  %1141 = vst.msk [vmem:[#allocation4 + $0x38] sm:$0xff] %vm1117_vm0, %v4643_v40  ;;  %1142 = vst.msk [vmem:[#allocation4 + $0x40] sm:$0xff] %vm1117_vm0, %v4643_v40 }
 0x127   : > { %1143 = vst.msk [vmem:[#allocation4 + $0x48] sm:$0xff] %vm1117_vm0, %v4643_v40  ;;  %1144 = vst.msk [vmem:[#allocation4 + $0x50] sm:$0xff] %vm1117_vm0, %v4643_v40 }
 0x128   : > { %1145 = vst.msk [vmem:[#allocation4 + $0x58] sm:$0xff] %vm1117_vm0, %v4643_v40  ;;  %1146 = vst.msk [vmem:[#allocation4 + $0x60] sm:$0xff] %vm1117_vm0, %v4643_v40 }
 0x129   : > { %3540 = vmatpush3.bf16.msra.mxu0 %v4053_v20  ;;  %3830 = vmatpush3.bf16.msra.mxu1 %v4053_v20  ;;  %1147 = vst.msk [vmem:[#allocation4 + $0x68] sm:$0xff] %vm1117_vm0, %v4643_v40  ;;  %1148 = vst.msk [vmem:[#allocation4 + $0x70] sm:$0xff] %vm1117_vm0, %v4643_v40 }
 0x12a   : > { %3541 = vmatprep.subr.bf16.mxu0 %v4054_v21  ;;  %3823 = vmatprep.subr.bf16.mxu1 %v4054_v21  ;;  %1149 = vst.msk [vmem:[#allocation4 + $0x78] sm:$0xff] %vm1117_vm0, %v4643_v40  ;;  %1150 = vst [vmem:[#allocation5 + $0x30] sm:$0xff] %v4643_v40 }
 0x12b   : > { %1151 = vst [vmem:[#allocation5] sm:$0xff] %v4643_v40  ;;  %1152 = vst [vmem:[#allocation5 + $0x58] sm:$0xff] %v4643_v40 }
 0x12c   : > { %1153 = vst [vmem:[#allocation5 + $0x18] sm:$0xff] %v4643_v40  ;;  %1154 = vst [vmem:[#allocation5 + $0x50] sm:$0xff] %v4643_v40 }
 0x12d   : > { %3542 = vmatpush3.bf16.msra.mxu0 %v4055_v22  ;;  %3831 = vmatpush3.bf16.msra.mxu1 %v4055_v22  ;;  %1155 = vst [vmem:[#allocation5 + $0x68] sm:$0xff] %v4643_v40  ;;  %1156 = vst [vmem:[#allocation5 + $0x8] sm:$0xff] %v4643_v40 }
 0x12e   : > { %3543 = vmatprep.subr.bf16.mxu0 %v4056_v23  ;;  %3824 = vmatprep.subr.bf16.mxu1 %v4056_v23  ;;  %1157 = vst [vmem:[#allocation5 + $0x48] sm:$0xff] %v4643_v40  ;;  %1158 = vst [vmem:[#allocation5 + $0x40] sm:$0xff] %v4643_v40 }
 0x12f   : > { %1159 = vst [vmem:[#allocation5 + $0x20] sm:$0xff] %v4643_v40  ;;  %1160 = vst [vmem:[#allocation5 + $0x10] sm:$0xff] %v4643_v40 }
 0x130   : > { %1161 = vst [vmem:[#allocation5 + $0x38] sm:$0xff] %v4643_v40  ;;  %1162 = vst [vmem:[#allocation5 + $0x60] sm:$0xff] %v4643_v40 }
 0x131   : > { %3544 = vmatpush3.bf16.msra.mxu0 %v4057_v24  ;;  %3832 = vmatpush3.bf16.msra.mxu1 %v4057_v24  ;;  %1163 = vst [vmem:[#allocation5 + $0x70] sm:$0xff] %v4643_v40  ;;  %1164 = vst [vmem:[#allocation5 + $0x78] sm:$0xff] %v4643_v40 }
 0x132   : > { %1165 = vst [vmem:[#allocation5 + $0x28] sm:$0xff] %v4643_v40 }
 0x134   : > { %973 = vmatmul.mubr.bf16.vlgmr.msra.gmra.mxu0 %v4058_v25  ;;  %1005 = vmatmul.mubr.bf16.vlgmr.msra.gmra.mxu1 %v4061_v26 }
 0x135   : > { %980 = vmatprep.mubr.bf16.mxu0 %v4064_v27  ;;  %1012 = vmatprep.mubr.bf16.mxu1 %v4066_v28 }
 0x13c   : > { %981 = vmatmul.mubr.bf16.gmra.mxu0 %v4068_v29  ;;  %1013 = vmatmul.mubr.bf16.gmra.mxu1 %v4069_v30 }
 0x13d   : > { %988 = vmatprep.mubr.bf16.mxu0 %v4070_v31  ;;  %1020 = vmatprep.mubr.bf16.mxu1 %v4072_v32 }
 0x144   : > { %989 = vmatmul.mubr.bf16.gmra.mxu0 %v4074_v33  ;;  %1021 = vmatmul.mubr.bf16.gmra.mxu1 %v4075_v34 }
 0x145   : > { %996 = vmatprep.mubr.bf16.mxu0 %v4076_v35  ;;  %1028 = vmatprep.mubr.bf16.mxu1 %v4078_v36 }
 0x14c   : > { %997 = vmatmul.mubr.bf16.gmra.mxu0 %v4080_v37  ;;  %1029 = vmatmul.mubr.bf16.gmra.mxu1 %v4081_v38 }
 0x1f4   : > { %v3545_v41 = vpop.f32.mrf.mxu0  ;;  %v3569_v42 = vpop.f32.mrf.mxu1 }
 0x1f6   : > { %v3546_v43 = vpop.f32.mrf.mxu0  ;;  %v3570_v44 = vpop.f32.mrf.mxu1 }
 0x1f7   : > { %v3547_v47 = vadd.f32 %v3546_v43, %v3545_v41  ;;  %v3571_v48 = vadd.f32 %v3570_v44, %v3569_v42 }
 0x1f8   : > { %v3548_v45 = vpop.f32.mrf.mxu0  ;;  %v3572_v46 = vpop.f32.mrf.mxu1 }
 0x1f9   : > { %v975_v56 = vadd.f32 %v3547_v47, %v5188_v49  ;;  %v1007_v57 = vadd.f32 %v3571_v48, %v5188_v49 }
 0x1fa   : > { %v3549_v50 = vpop.f32.mrf.mxu0  ;;  %v3573_v51 = vpop.f32.mrf.mxu1 }
 0x1fb   : > { %v3550_v52 = vadd.f32 %v3549_v50, %v3548_v45  ;;  %v3574_v53 = vadd.f32 %v3573_v51, %v3572_v46 }
 0x1fc   : > { %v3551_v54 = vpop.f32.mrf.mxu0  ;;  %v3575_v55 = vpop.f32.mrf.mxu1 }
 0x1fd   : > { %v978_v58 = vadd.f32 %v3550_v52, %v5188_v49  ;;  %v1010_v59 = vadd.f32 %v3574_v53, %v5188_v49 }
 0x1fe   : > { %v3552_v60 = vpop.f32.mrf.mxu0  ;;  %v3576_v61 = vpop.f32.mrf.mxu1 }
 0x1ff   : > { %v3485_v62 = vpack.c.bf16 %v978_v58, %v975_v56  ;;  %v3505_v63 = vpack.c.bf16 %v1010_v59, %v1007_v57  ;;  %v3553_v2 = vadd.f32 %v3552_v60, %v3551_v54  ;;  %v3577_v3 = vadd.f32 %v3576_v61, %v3575_v55 }
 0x200   : > { %v3554_v0 = vpop.f32.mrf.mxu0  ;;  %v3578_v1 = vpop.f32.mrf.mxu1 }
 0x201   : > { %3486 = vst [vmem:[#allocation2] sm:$0xff] %v3485_v62   ;;  %3525 = vst [vmem:[#allocation2 + $0x20] sm:$0xff] %v3505_v63   ;;  %v983_v10 = vadd.f32 %v3553_v2, %v5188_v49  ;;  %v1015_v11 = vadd.f32 %v3577_v3, %v5188_v49 }
 0x202   : > { %v3555_v4 = vpop.f32.mrf.mxu0  ;;  %v3579_v5 = vpop.f32.mrf.mxu1 }
 0x203   : > { %v3556_v6 = vadd.f32 %v3555_v4, %v3554_v0  ;;  %v3580_v7 = vadd.f32 %v3579_v5, %v3578_v1 }
 0x204   : > { %v3557_v8 = vpop.f32.mrf.mxu0  ;;  %v3581_v9 = vpop.f32.mrf.mxu1 }
 0x205   : > { %v986_v12 = vadd.f32 %v3556_v6, %v5188_v49  ;;  %v1018_v13 = vadd.f32 %v3580_v7, %v5188_v49 }
 0x206   : > { %v3558_v14 = vpop.f32.mrf.mxu0  ;;  %v3582_v15 = vpop.f32.mrf.mxu1 }
 0x207   : > { %v3490_v16 = vpack.c.bf16 %v986_v12, %v983_v10  ;;  %v3510_v17 = vpack.c.bf16 %v1018_v13, %v1015_v11  ;;  %v3559_v20 = vadd.f32 %v3558_v14, %v3557_v8  ;;  %v3583_v21 = vadd.f32 %v3582_v15, %v3581_v9 }
 0x208   : > { %v3560_v18 = vpop.f32.mrf.mxu0  ;;  %v3584_v19 = vpop.f32.mrf.mxu1 }
 0x209   : > { %3522 = vst [vmem:[#allocation2 + $0x8] sm:$0xff] %v3490_v16   ;;  %3526 = vst [vmem:[#allocation2 + $0x28] sm:$0xff] %v3510_v17   ;;  %v991_v28 = vadd.f32 %v3559_v20, %v5188_v49  ;;  %v1023_v29 = vadd.f32 %v3583_v21, %v5188_v49 }
 0x20a   : > { %v3561_v22 = vpop.f32.mrf.mxu0  ;;  %v3585_v23 = vpop.f32.mrf.mxu1 }
 0x20b   : > { %v3562_v24 = vadd.f32 %v3561_v22, %v3560_v18  ;;  %v3586_v25 = vadd.f32 %v3585_v23, %v3584_v19 }
 0x20c   : > { %v3563_v26 = vpop.f32.mrf.mxu0  ;;  %v3587_v27 = vpop.f32.mrf.mxu1 }
 0x20d   : > { %v994_v30 = vadd.f32 %v3562_v24, %v5188_v49  ;;  %v1026_v31 = vadd.f32 %v3586_v25, %v5188_v49 }
 0x20e   : > { %v3564_v32 = vpop.f32.mrf.mxu0  ;;  %v3588_v33 = vpop.f32.mrf.mxu1 }
 0x20f   : > { %v3495_v34 = vpack.c.bf16 %v994_v30, %v991_v28  ;;  %v3515_v35 = vpack.c.bf16 %v1026_v31, %v1023_v29  ;;  %v3565_v38 = vadd.f32 %v3564_v32, %v3563_v26  ;;  %v3589_v39 = vadd.f32 %v3588_v33, %v3587_v27 }
 0x210   : > { %v3566_v36 = vpop.f32.mrf.mxu0  ;;  %v3590_v37 = vpop.f32.mrf.mxu1 }
 0x211   : > { %3523 = vst [vmem:[#allocation2 + $0x10] sm:$0xff] %v3495_v34   ;;  %3527 = vst [vmem:[#allocation2 + $0x30] sm:$0xff] %v3515_v35   ;;  %v999_v44 = vadd.f32 %v3565_v38, %v5188_v49  ;;  %v1031_v45 = vadd.f32 %v3589_v39, %v5188_v49 }
 0x212   : > { %v3567_v40 = vpop.f32.mrf.mxu0  ;;  %v3591_v41 = vpop.f32.mrf.mxu1 }
 0x213   : > { %v3568_v42 = vadd.f32 %v3567_v40, %v3566_v36  ;;  %v3592_v43 = vadd.f32 %v3591_v41, %v3590_v37 }
 0x215   : > { %v1002_v46 = vadd.f32 %v3568_v42, %v5188_v49  ;;  %v1034_v47 = vadd.f32 %v3592_v43, %v5188_v49 }
 0x217   : > { %v3500_v48 = vpack.c.bf16 %v1002_v46, %v999_v44  ;;  %v3520_v50 = vpack.c.bf16 %v1034_v47, %v1031_v45 }
 0x219   : > { %3524 = vst [vmem:[#allocation2 + $0x18] sm:$0xff] %v3500_v48   ;;  %3528 = vst [vmem:[#allocation2 + $0x38] sm:$0xff] %v3520_v50  }
 0x21a PF: > { %v4084_v51 = vld [vmem:[%s5080_s27 + $0x78] sm:$0xff]   ;;  %v4086_v53 = vld [vmem:[%s5080_s27 + $0x70] sm:$0xff]   ;;  %v4088_v54 = vld [vmem:[%s5080_s27 + $0x68] sm:$0xff]   ;;  %vm2223_vm1 = vcmask 7168   ;;  %s6013_s19 = sld [smem:[#allocation30_spill]] }
 0x21b   : > { %v4085_v52 = vld [vmem:[%s5080_s27 + $0x38] sm:$0xff]   ;;  %3593 = vmatprep.subr.bf16.mxu0 %v4084_v51  ;;  %v4087_v49 = vld [vmem:[%s5080_s27 + $0x30] sm:$0xff]   ;;  %v4089_v55 = vld [vmem:[%s5080_s27 + $0x28] sm:$0xff]  }
 0x21c   : > { %3594 = vmatpush3.bf16.msra.mxu0 %v4085_v52  ;;  %v4090_v56 = vld [vmem:[%s5080_s27 + $0x60] sm:$0xff]   ;;  %v4092_v58 = vld [vmem:[%s5080_s27 + $0x58] sm:$0xff]   ;;  %v4094_v60 = vld [vmem:[%s5080_s27 + $0x50] sm:$0xff]  }
 0x21d   : > { %3595 = vmatprep.subr.bf16.mxu0 %v4086_v53  ;;  %v4091_v57 = vld [vmem:[%s5080_s27 + $0x20] sm:$0xff]   ;;  %v4093_v59 = vld [vmem:[%s5080_s27 + $0x18] sm:$0xff]   ;;  %v4095_v62 = vld [vmem:[%s5080_s27 + $0x10] sm:$0xff]  }
 0x21e   : > { %v4102_v61 = vld [vmem:[%s5067_s14 + $0x4] ss:$8 sps:$4 sm:$0xff]   ;;  %v5224_v3 = vld [vmem:[%s5067_s14] ss:$8 sps:$4 sm:$0xff]   ;;  %v5227_v4 = vld [vmem:[%s5067_s14 + $0x14] ss:$8 sps:$4 sm:$0xff]  }
 0x21f   : > { %1429 = vmatprep.mubr.bf16.mxu0 %v4102_v61  ;;  %v4096_v63 = vld [vmem:[%s5080_s27 + $0x48] sm:$0xff]   ;;  %1669 = vmatprep.mubr.bf16.mxu1 %v4102_v61  ;;  %v4098_v1 = vld [vmem:[%s5080_s27 + $0x40] sm:$0xff]   ;;  %v5232_v5 = vld [vmem:[%s5067_s14 + $0x10] ss:$8 sps:$4 sm:$0xff]  }
 0x220   : > { %3596 = vmatpush3.bf16.msra.mxu0 %v4087_v49  ;;  %v4097_v0 = vld [vmem:[%s5080_s27 + $0x8] sm:$0xff]   ;;  %v4099_v2 = vld [vmem:[%s5080_s27] sm:$0xff]   ;;  %v5243_v8 = vld [vmem:[%s5067_s14 + $0x34] ss:$8 sps:$4 sm:$0xff]   ;;  %p2505_p9 = scmp.eq.s32.totalorder %s6013_s19, 1  ;;  %p3435_p12 = scmp.ne.s32.totalorder %s6013_s19, 1 }
 0x221   : > { %3597 = vmatprep.subr.bf16.mxu0 %v4088_v54  ;;  %v5235_v6 = vld [vmem:[%s5067_s14 + $0x24] ss:$8 sps:$4 sm:$0xff]   ;;  %v5240_v7 = vld [vmem:[%s5067_s14 + $0x20] ss:$8 sps:$4 sm:$0xff]   ;;  %v5248_v9 = vld [vmem:[%s5067_s14 + $0x30] ss:$8 sps:$4 sm:$0xff]  }
 0x222   : > { %v5251_v10 = vld [vmem:[%s5067_s14 + $0x44] ss:$8 sps:$4 sm:$0xff]   ;;  %v5256_v11 = vld [vmem:[%s5067_s14 + $0x40] ss:$8 sps:$4 sm:$0xff]   ;;  %v5259_v12 = vld [vmem:[%s5067_s14 + $0x54] ss:$8 sps:$4 sm:$0xff]  }
 0x223   : > { %v5264_v13 = vld [vmem:[%s5067_s14 + $0x50] ss:$8 sps:$4 sm:$0xff]   ;;  %v5267_v14 = vld [vmem:[%s5067_s14 + $0x64] ss:$8 sps:$4 sm:$0xff]   ;;  %v5272_v15 = vld [vmem:[%s5067_s14 + $0x60] ss:$8 sps:$4 sm:$0xff]  }
 0x224   : > { %3598 = vmatpush3.bf16.msra.mxu0 %v4089_v55  ;;  %v5275_v16 = vld [vmem:[%s5067_s14 + $0x74] ss:$8 sps:$4 sm:$0xff]   ;;  %v5280_v17 = vld [vmem:[%s5067_s14 + $0x70] ss:$8 sps:$4 sm:$0xff]   ;;  %v4124_v18 = vld [vmem:[#allocation2] sm:$0xff]  }
 0x225   : > { %3599 = vmatprep.subr.bf16.mxu0 %v4090_v56  ;;  %v5288_v23 = vld [vmem:[%s650_s22] ss:$0 sm:$0xff]  ;;  %v4132_v51 = vld [vmem:[%s5086_s10 + $0x78] sm:$0xff]   ;;  %v4134_v53 = vld [vmem:[%s5086_s10 + $0x70] sm:$0xff]  }
 0x226   : > { %v4133_v52 = vld [vmem:[%s5086_s10 + $0x38] sm:$0xff]   ;;  %3657 = vmatprep.subr.bf16.mxu1 %v4132_v51  ;;  %v4135_v55 = vld [vmem:[%s5086_s10 + $0x30] sm:$0xff]   ;;  %v4136_v56 = vld [vmem:[%s5086_s10 + $0x68] sm:$0xff]  }
 0x227   : > { %3658 = vmatpush3.bf16.msra.mxu1 %v4133_v52 }
 0x228   : > { %3600 = vmatpush3.bf16.msra.mxu0 %v4091_v57  ;;  %3659 = vmatprep.subr.bf16.mxu1 %v4134_v53 }
 0x229   : > { %3601 = vmatprep.subr.bf16.mxu0 %v4092_v58 }
 0x22b   : > { %3660 = vmatpush3.bf16.msra.mxu1 %v4135_v55 }
 0x22c   : > { %3602 = vmatpush3.bf16.msra.mxu0 %v4093_v59  ;;  %v4137_v59 = vld [vmem:[%s5086_s10 + $0x28] sm:$0xff]   ;;  %3661 = vmatprep.subr.bf16.mxu1 %v4136_v56 }
 0x22d   : > { %3603 = vmatprep.subr.bf16.mxu0 %v4094_v60  ;;  %v4138_v60 = vld [vmem:[%s5086_s10 + $0x60] sm:$0xff]  }
 0x22f   : > { %3662 = vmatpush3.bf16.msra.mxu1 %v4137_v59 }
 0x230   : > { %3604 = vmatpush3.bf16.msra.mxu0 %v4095_v62  ;;  %3663 = vmatprep.subr.bf16.mxu1 %v4138_v60 }
 0x231   : > { %3605 = vmatprep.subr.bf16.mxu0 %v4096_v63  ;;  %v4139_v63 = vld [vmem:[%s5086_s10 + $0x20] sm:$0xff]  }
 0x233   : > { %3664 = vmatpush3.bf16.msra.mxu1 %v4139_v63 }
 0x234   : > { %3606 = vmatpush3.bf16.msra.mxu0 %v4097_v0  ;;  %v4140_v0 = vld [vmem:[%s5086_s10 + $0x58] sm:$0xff]  }
 0x235   : > { %3607 = vmatprep.subr.bf16.mxu0 %v4098_v1  ;;  %3665 = vmatprep.subr.bf16.mxu1 %v4140_v0 }
 0x238   : > { %3608 = vmatpush3.bf16.msra.mxu0 %v4099_v2 }
 0x23b   : > { %1430 = vmatmul.mubr.bf16.vlgmr.msra.gmra.mxu0 %v5224_v3 }
 0x23c   : > { %1437 = vmatprep.mubr.bf16.mxu0 %v5227_v4 }
 0x243   : > { %1438 = vmatmul.mubr.bf16.gmra.mxu0 %v5232_v5 }
 0x244   : > { %1445 = vmatprep.mubr.bf16.mxu0 %v5235_v6 }
 0x24b   : > { %1446 = vmatmul.mubr.bf16.gmra.mxu0 %v5240_v7 }
 0x24c   : > { %1453 = vmatprep.mubr.bf16.mxu0 %v5243_v8 }
 0x253   : > { %1454 = vmatmul.mubr.bf16.gmra.mxu0 %v5248_v9 }
 0x254   : > { %1461 = vmatprep.mubr.bf16.mxu0 %v5251_v10 }
 0x25b   : > { %1462 = vmatmul.mubr.bf16.gmra.mxu0 %v5256_v11 }
 0x25c   : > { %1469 = vmatprep.mubr.bf16.mxu0 %v5259_v12 }
 0x263   : > { %1470 = vmatmul.mubr.bf16.gmra.mxu0 %v5264_v13 }
 0x264   : > { %1477 = vmatprep.mubr.bf16.mxu0 %v5267_v14 }
 0x26b   : > { %1478 = vmatmul.mubr.bf16.gmra.mxu0 %v5272_v15 }
 0x26c   : > { %1485 = vmatprep.mubr.bf16.mxu0 %v5275_v16 }
 0x273   : > { %1486 = vmatmul.mubr.bf16.gmra.mxu0 %v5280_v17 }
 0x274   : > { %3769 = vmatprep.mubr.bf16.mxu0 %v4124_v18  ;;  %v4141_v18 = vld [vmem:[%s5086_s10 + $0x18] sm:$0xff]  }
 0x275   : > { %3666 = vmatpush3.bf16.msra.mxu1 %v4141_v18 }
 0x2fb   : > { %v3609_v19 = vpop.f32.mrf.mxu0 }
 0x2fd   : > { %v3610_v20 = vpop.f32.mrf.mxu0 }
 0x2fe   : > { %v3611_v21 = vadd.f32 %v3610_v20, %v3609_v19  ;;  %v4142_v19 = vld [vmem:[%s5086_s10 + $0x50] sm:$0xff]  }
 0x2ff   : > { %v3612_v22 = vpop.f32.mrf.mxu0  ;;  %3667 = vmatprep.subr.bf16.mxu1 %v4142_v19 }
 0x300   : > { %v1432_v27 = vadd.f32 %v3611_v21, %v5288_v23 }
 0x301   : > { %v3613_v24 = vpop.f32.mrf.mxu0 }
 0x302   : > { %v3614_v25 = vadd.f32 %v3613_v24, %v3612_v22  ;;  %v4143_v22 = vld [vmem:[%s5086_s10 + $0x10] sm:$0xff]   ;;  %v4144_v24 = vld [vmem:[%s5086_s10 + $0x48] sm:$0xff]  }
 0x303   : > { %v3615_v26 = vpop.f32.mrf.mxu0  ;;  %3668 = vmatpush3.bf16.msra.mxu1 %v4143_v22 }
 0x304   : > { %v1435_v28 = vadd.f32 %v3614_v25, %v5288_v23  ;;  %3669 = vmatprep.subr.bf16.mxu1 %v4144_v24 }
 0x305   : > { %v3616_v29 = vpop.f32.mrf.mxu0 }
 0x306   : > { %v3617_v30 = vadd.f32 %v3616_v29, %v3615_v26  ;;  %v5292_v31 = vpack.c.bf16 %v1435_v28, %v1432_v27  ;;  %v4145_v27 = vld [vmem:[%s5086_s10 + $0x8] sm:$0xff]   ;;  %v4146_v28 = vld [vmem:[%s5086_s10 + $0x40] sm:$0xff]  }
 0x307   : > { %v3618_v32 = vpop.f32.mrf.mxu0  ;;  %3670 = vmatpush3.bf16.msra.mxu1 %v4145_v27 }
 0x308   : > { %v1440_v36 = vadd.f32 %v3617_v30, %v5288_v23  ;;  %3671 = vmatprep.subr.bf16.mxu1 %v4146_v28 }
 0x309   : > { %v3619_v33 = vpop.f32.mrf.mxu0 }
 0x30a   : > { %v3620_v34 = vadd.f32 %v3619_v33, %v3618_v32  ;;  %v4147_v32 = vld [vmem:[%s5086_s10] sm:$0xff]  }
 0x30b   : > { %v3621_v35 = vpop.f32.mrf.mxu0  ;;  %3672 = vmatpush3.bf16.msra.mxu1 %v4147_v32 }
 0x30c   : > { %v1443_v37 = vadd.f32 %v3620_v34, %v5288_v23 }
 0x30d   : > { %v3622_v38 = vpop.f32.mrf.mxu0 }
 0x30e   : > { %v3623_v39 = vadd.f32 %v3622_v38, %v3621_v35  ;;  %v5296_v40 = vpack.c.bf16 %v1443_v37, %v1440_v36  ;;  %1670 = vmatmul.mubr.bf16.vlgmr.msra.gmra.mxu1 %v5224_v3 }
 0x30f   : > { %v3624_v41 = vpop.f32.mrf.mxu0  ;;  %1677 = vmatprep.mubr.bf16.mxu1 %v5227_v4 }
 0x310   : > { %v1448_v45 = vadd.f32 %v3623_v39, %v5288_v23 }
 0x311   : > { %v3625_v42 = vpop.f32.mrf.mxu0 }
 0x312   : > { %v3626_v43 = vadd.f32 %v3625_v42, %v3624_v41 }
 0x313   : > { %v5298_v44 = vpop.f32.mrf.mxu0 }
 0x314   : > { %v1451_v46 = vadd.f32 %v3626_v43, %v5288_v23 }
 0x315   : > { %v5302_v47 = vpop.f32.mrf.mxu0 }
 0x316   : > { %v5304_v48 = vpack.c.bf16 %v1451_v46, %v1448_v45  ;;  %1678 = vmatmul.mubr.bf16.gmra.mxu1 %v5232_v5 }
 0x317   : > { %v5306_v50 = vpop.f32.mrf.mxu0  ;;  %1685 = vmatprep.mubr.bf16.mxu1 %v5235_v6 }
 0x319   : > { %v5311_v49 = vpop.f32.mrf.mxu0 }
 0x31a   : > { %v3632_v6 = vadd.f32 %v5311_v49, %v5306_v50 }
 0x31b   : > { %v5313_v54 = vpop.f32.mrf.mxu0 }
 0x31d   : > { %v5317_v57 = vpop.f32.mrf.mxu0 }
 0x31e   : > { %v3635_v59 = vadd.f32 %v5317_v57, %v5313_v54  ;;  %1686 = vmatmul.mubr.bf16.gmra.mxu1 %v5240_v7  ;;  %v1459_v7 = vadd.f32 %v3632_v6, %v5288_v23 }
 0x31f   : > { %v3636_v58 = vpop.f32.mrf.mxu0  ;;  %1693 = vmatprep.mubr.bf16.mxu1 %v5243_v8 }
 0x320   : > { %v1464_v5 = vadd.f32 %v3635_v59, %v5288_v23 }
 0x321   : > { %v3637_v61 = vpop.f32.mrf.mxu0 }
 0x322   : > { %v3638_v55 = vadd.f32 %v3637_v61, %v3636_v58  ;;  %v3629_v58 = vadd.f32 %v5302_v47, %v5298_v44 }
 0x323   : > { %v3639_v62 = vpop.f32.mrf.mxu0 }
 0x324   : > { %v1467_v60 = vadd.f32 %v3638_v55, %v5288_v23  ;;  %v1456_v8 = vadd.f32 %v3629_v58, %v5288_v23  ;;  %v3410_v55 = vld [vmem:[%s653_s25] ss:$0 sm:$0xff] }
 0x325   : > { %v3640_v1 = vpop.f32.mrf.mxu0 }
 0x326   : > { %v3641_v53 = vadd.f32 %v3640_v1, %v3639_v62  ;;  %v1498_v62 = vpack.c.bf16 %v1467_v60, %v1464_v5  ;;  %1694 = vmatmul.mubr.bf16.gmra.mxu1 %v5248_v9  ;;  %v1497_v54 = vpack.c.bf16 %v1459_v7, %v1456_v8  ;;  %v4125_v9 = vld [vmem:[#allocation2 + $0x8] sm:$0xff]  }
 0x327   : > { %v3642_v2 = vpop.f32.mrf.mxu0  ;;  %1701 = vmatprep.mubr.bf16.mxu1 %v5251_v10  ;;  %v4126_v10 = vld [vmem:[#allocation2 + $0x10] sm:$0xff]  }
 0x328   : > { %v1472_v4 = vadd.f32 %v3641_v53, %v5288_v23 }
 0x329   : > { %v3643_v20 = vpop.f32.mrf.mxu0 }
 0x32a   : > { %v3644_v51 = vadd.f32 %v3643_v20, %v3642_v2 }
 0x32b   : > { %v3645_v21 = vpop.f32.mrf.mxu0 }
 0x32c   : > { %v1475_v3 = vadd.f32 %v3644_v51, %v5288_v23  ;;  %v4644_v51 = vmov 0  }
 0x32d   : > { %v3646_v25 = vpop.f32.mrf.mxu0  ;;  %4083 = vset.pattern.permute.xlu1 %v4644_v51  ;;  %4082 = vset.pattern.permute.xlu0 %v4644_v51  ;;  %v5461_v51 = vld [vmem:[#allocation3 + $0x8] sm:$0xff] }
 0x32e   : > { %v3647_v38 = vadd.f32 %v3646_v25, %v3645_v21  ;;  %v1499_v56 = vpack.c.bf16 %v1475_v3, %v1472_v4  ;;  %1702 = vmatmul.mubr.bf16.gmra.mxu1 %v5256_v11  ;;  %v4127_v11 = vld [vmem:[#allocation2 + $0x18] sm:$0xff]  }
 0x32f   : > { %v3648_v26 = vpop.f32.mrf.mxu0  ;;  %1709 = vmatprep.mubr.bf16.mxu1 %v5259_v12  ;;  %v4128_v12 = vld [vmem:[#allocation2 + $0x20] sm:$0xff]  }
 0x330   : > { %v1480_v45 = vadd.f32 %v3647_v38, %v5288_v23 }
 0x331   : > { %v3649_v29 = vpop.f32.mrf.mxu0 }
 0x332   : > { %v3650_v35 = vadd.f32 %v3649_v29, %v3648_v26 }
 0x333   : > { %v3651_v30 = vpop.f32.mrf.mxu0 }
 0x334   : > { %v1483_v41 = vadd.f32 %v3650_v35, %v5288_v23 }
 0x335   : > { %v3652_v33 = vpop.f32.mrf.mxu0 }
 0x336   : > { %v3653_v36 = vadd.f32 %v3652_v33, %v3651_v30  ;;  %v1500_v52 = vpack.c.bf16 %v1483_v41, %v1480_v45  ;;  %1710 = vmatmul.mubr.bf16.gmra.mxu1 %v5264_v13  ;;  %v4129_v13 = vld [vmem:[#allocation2 + $0x28] sm:$0xff]  }
 0x337   : > { %v3654_v34 = vpop.f32.mrf.mxu0  ;;  %1717 = vmatprep.mubr.bf16.mxu1 %v5267_v14  ;;  %v4130_v14 = vld [vmem:[#allocation2 + $0x30] sm:$0xff]  }
 0x338   : > { %v1488_v42 = vadd.f32 %v3653_v36, %v5288_v23 }
 0x339   : > { %v3655_v37 = vpop.f32.mrf.mxu0 }
 0x33a   : > { %v3656_v39 = vadd.f32 %v3655_v37, %v3654_v34 }
 0x33c   : > { %v1491_v43 = vadd.f32 %v3656_v39, %v5288_v23 }
 0x33e   : > { %v1501_v46 = vpack.c.bf16 %v1491_v43, %v1488_v42  ;;  %1718 = vmatmul.mubr.bf16.gmra.mxu1 %v5272_v15  ;;  %v4131_v15 = vld [vmem:[#allocation2 + $0x38] sm:$0xff]  }
 0x33f   : > { %1725 = vmatprep.mubr.bf16.mxu1 %v5275_v16 }
 0x340   : > { %3753 = vmatprep.subr.bf16.mxu0 %v1501_v46 }
 0x341   : > { %3754 = vmatpush3.bf16.xpose.msra.mxu0 %v1501_v46 }
 0x342   : > { %3755 = vmatprep.subr.bf16.mxu0 %v1500_v52 }
 0x346   : > { %1726 = vmatmul.mubr.bf16.gmra.mxu1 %v5280_v17 }
 0x349   : > { %3756 = vmatpush3.bf16.xpose.msra.mxu0 %v1500_v52 }
 0x34a   : > { %3757 = vmatprep.subr.bf16.mxu0 %v1499_v56 }
 0x351   : > { %3758 = vmatpush3.bf16.xpose.msra.mxu0 %v1499_v56 }
 0x352   : > { %3759 = vmatprep.subr.bf16.mxu0 %v1498_v62 }
 0x359   : > { %3760 = vmatpush3.bf16.xpose.msra.mxu0 %v1498_v62 }
 0x35a   : > { %3761 = vmatprep.subr.bf16.mxu0 %v1497_v54 }
 0x361   : > { %3762 = vmatpush3.bf16.xpose.msra.mxu0 %v1497_v54 }
 0x362   : > { %3763 = vmatprep.subr.bf16.mxu0 %v5304_v48 }
 0x369   : > { %3764 = vmatpush3.bf16.xpose.msra.mxu0 %v5304_v48 }
 0x36a   : > { %3765 = vmatprep.subr.bf16.mxu0 %v5296_v40 }
 0x371   : > { %3766 = vmatpush3.bf16.xpose.msra.mxu0 %v5296_v40 }
 0x372   : > { %3767 = vmatprep.subr.bf16.mxu0 %v5292_v31 }
 0x379   : > { %3768 = vmatpush3.bf16.xpose.msra.mxu0 %v5292_v31 }
 0x380   : > { %3770 = vmatmul.mubr.bf16.vlgmr.msra.gmra.mxu0 %v4125_v9 }
 0x381   : > { %3773 = vmatprep.mubr.bf16.mxu0 %v4126_v10 }
 0x388   : > { %3774 = vmatmul.mubr.bf16.gmra.mxu0 %v4127_v11 }
 0x389   : > { %3777 = vmatprep.mubr.bf16.mxu0 %v4128_v12 }
 0x390   : > { %3778 = vmatmul.mubr.bf16.gmra.mxu0 %v4129_v13 }
 0x391   : > { %3781 = vmatprep.mubr.bf16.mxu0 %v4130_v14 }
 0x398   : > { %3782 = vmatmul.mubr.bf16.gmra.mxu0 %v4131_v15 }
 0x3ce   : > { %v3673_v16 = vpop.f32.mrf.mxu1 }
 0x3d0   : > { %v3674_v23 = vpop.f32.mrf.mxu1 }
 0x3d1   : > { %v5367_v40 = vadd.f32 %v3674_v23, %v3673_v16 }
 0x3d2   : > { %v3676_v17 = vpop.f32.mrf.mxu1 }
 0x3d4   : > { %v3677_v31 = vpop.f32.mrf.mxu1 }
 0x3d5   : > { %v5369_v44 = vadd.f32 %v3677_v31, %v3676_v17 }
 0x3d6   : > { %v3679_v47 = vpop.f32.mrf.mxu1 }
 0x3d8   : > { %v3680_v48 = vpop.f32.mrf.mxu1 }
 0x3d9   : > { %v5371_v50 = vadd.f32 %v3680_v48, %v3679_v47 }
 0x3da   : > { %v3682_v49 = vpop.f32.mrf.mxu1 }
 0x3dc   : > { %v3683_v57 = vpop.f32.mrf.mxu1 }
 0x3dd   : > { %v5373_v61 = vadd.f32 %v3683_v57, %v3682_v49 }
 0x3de   : > { %v3685_v63 = vpop.f32.mrf.mxu1 }
 0x3e0   : > { %v3686_v0 = vpop.f32.mrf.mxu1 }
 0x3e1   : > { %v5375_v1 = vadd.f32 %v3686_v0, %v3685_v63 }
 0x3e2   : > { %v5377_v2 = vpop.f32.mrf.mxu1 }
 0x3e4   : > { %v5379_v18 = vpop.f32.mrf.mxu1 }
 0x3e6   : > { %v5381_v19 = vpop.f32.mrf.mxu1 }
 0x3e8   : > { %v5383_v20 = vpop.f32.mrf.mxu1 }
 0x3e9   : > { %v3693_v57 = vadd.f32 %v5383_v20, %v5381_v19  ;;  %v1688_v19 = vadd.f32 %v5375_v1, %v3410_v55  ;;  %v5453_v1 = vld [vmem:[#allocation3 + $0x10] sm:$0xff] }
 0x3ea   : > { %v5385_v21 = vpop.f32.mrf.mxu1 }
 0x3ec   : > { %v5387_v22 = vpop.f32.mrf.mxu1 }
 0x3ed   : > { %v3696_v63 = vadd.f32 %v5387_v22, %v5385_v21  ;;  %v1672_v21 = vadd.f32 %v5367_v40, %v3410_v55  ;;  %v1675_v22 = vadd.f32 %v5369_v44, %v3410_v55 }
 0x3ee   : > { %v3697_v24 = vpop.f32.mrf.mxu1 }
 0x3f0   : > { %v3698_v25 = vpop.f32.mrf.mxu1 }
 0x3f1   : > { %v3699_v23 = vadd.f32 %v3698_v25, %v3697_v24 }
 0x3f2   : > { %v3700_v26 = vpop.f32.mrf.mxu1 }
 0x3f3   : > { %v1704_v0 = vadd.f32 %v3699_v23, %v3410_v55 }
 0x3f4   : > { %v3701_v27 = vpop.f32.mrf.mxu1 }
 0x3f5   : > { %v3702_v17 = vadd.f32 %v3701_v27, %v3700_v26  ;;  %v3690_v26 = vadd.f32 %v5379_v18, %v5377_v2  ;;  %v1696_v27 = vadd.f32 %v3693_v57, %v3410_v55  ;;  %v5494_v57 = vld [vmem:[#allocation3 + $0x50] sm:$0xff] }
 0x3f6   : > { %v3703_v28 = vpop.f32.mrf.mxu1 }
 0x3f7   : > { %v1707_v24 = vadd.f32 %v3702_v17, %v3410_v55  ;;  %v1691_v20 = vadd.f32 %v3690_v26, %v3410_v55 }
 0x3f8   : > { %v3704_v29 = vpop.f32.mrf.mxu1 }
 0x3f9   : > { %v3705_v11 = vadd.f32 %v3704_v29, %v3703_v28  ;;  %v1699_v28 = vadd.f32 %v3696_v63, %v3410_v55  ;;  %v1738_v29 = vpack.c.bf16 %v1707_v24, %v1704_v0  ;;  %v1736_v2 = vpack.c.bf16 %v1691_v20, %v1688_v19 }
 0x3fa   : > { %v3706_v30 = vpop.f32.mrf.mxu1 }
 0x3fb   : > { %v1712_v31 = vadd.f32 %v3705_v11, %v3410_v55  ;;  %v5476_v11 = vld [vmem:[#allocation3 + $0x28] sm:$0xff] }
 0x3fc   : > { %v3707_v32 = vpop.f32.mrf.mxu1 }
 0x3fd   : > { %v3708_v12 = vadd.f32 %v3707_v32, %v3706_v30  ;;  %v1737_v30 = vpack.c.bf16 %v1699_v28, %v1696_v27  ;;  %v1680_v32 = vadd.f32 %v5371_v50, %v3410_v55 }
 0x3fe   : > { %v3709_v33 = vpop.f32.mrf.mxu1 }
 0x3ff   : > { %v1715_v47 = vadd.f32 %v3708_v12, %v3410_v55 }
 0x400   : > { %v3710_v34 = vpop.f32.mrf.mxu1 }
 0x401   : > { %v3711_v58 = vadd.f32 %v3710_v34, %v3709_v33  ;;  %v1739_v25 = vpack.c.bf16 %v1715_v47, %v1712_v31  ;;  %v1683_v33 = vadd.f32 %v5373_v61, %v3410_v55  ;;  %v1734_v34 = vpack.c.bf16 %v1675_v22, %v1672_v21  ;;  %v5488_v31 = vld [vmem:[#allocation3 + $0x58] sm:$0xff] }
 0x402   : > { %v3712_v36 = vpop.f32.mrf.mxu1  ;;  %v5511_v21 = vld [vmem:[#allocation3 + $0x78] sm:$0xff] }
 0x403   : > { %v1720_v13 = vadd.f32 %v3711_v58, %v3410_v55  ;;  %v1735_v18 = vpack.c.bf16 %v1683_v33, %v1680_v32 }
 0x404   : > { %v3713_v39 = vpop.f32.mrf.mxu1 }
 0x405   : > { %v3714_v7 = vadd.f32 %v3713_v39, %v3712_v36  ;;  %v1903_v36 = vld [vmem:[#allocation3] sm:$0xff]  ;;  %v1906_v39 = vld [vmem:[#allocation3 + $0x18] sm:$0xff] }
 0x406   : > { %v3715_v43 = vpop.f32.mrf.mxu1 }
 0x407   : > { %v1723_v14 = vadd.f32 %v3714_v7, %v3410_v55  ;;  %v5472_v7 = vld [vmem:[#allocation3 + $0x30] sm:$0xff] }
 0x408   : > { %v3716_v52 = vpop.f32.mrf.mxu1 }
 0x409   : > { %v3717_v4 = vadd.f32 %v3716_v52, %v3715_v43  ;;  %v1740_v48 = vpack.c.bf16 %v1723_v14, %v1720_v13  ;;  %v5482_v14 = vld [vmem:[#allocation3 + $0x40] sm:$0xff] }
 0x40a   : > { %v3718_v56 = vpop.f32.mrf.mxu1 }
 0x40b   : > { %v1728_v6 = vadd.f32 %v3717_v4, %v3410_v55 }
 0x40c   : > { %v3719_v60 = vpop.f32.mrf.mxu1 }
 0x40d   : > { %v3720_v62 = vadd.f32 %v3719_v60, %v3718_v56  ;;  %v5466_v56 = vld [vmem:[#allocation3 + $0x20] sm:$0xff] }
 0x40f   : > { %v1731_v54 = vadd.f32 %v3720_v62, %v3410_v55 }
 0x411   : > { %v1741_v10 = vpack.c.bf16 %v1731_v54, %v1728_v6  ;;  %v1910_v6 = vld [vmem:[#allocation3 + $0x38] sm:$0xff] }
 0x413   : > { %3785 = vmatprep.subr.bf16.mxu1 %v1741_v10 }
 0x414   : > { %3786 = vmatpush3.bf16.msra.mxu1 %v1741_v10 }
 0x415   : > { %3787 = vmatprep.subr.bf16.mxu1 %v1740_v48 }
 0x418   : > { %3788 = vmatpush3.bf16.msra.mxu1 %v1740_v48 }
 0x419   : > { %3789 = vmatprep.subr.bf16.mxu1 %v1739_v25 }
 0x41c   : > { %3790 = vmatpush3.bf16.msra.mxu1 %v1739_v25  ;;  %v5500_v25 = vld [vmem:[#allocation3 + $0x48] sm:$0xff] }
 0x41d   : > { %3791 = vmatprep.subr.bf16.mxu1 %v1738_v29 }
 0x420   : > { %3792 = vmatpush3.bf16.msra.mxu1 %v1738_v29  ;;  %v5506_v29 = vld [vmem:[#allocation3 + $0x60] sm:$0xff] }
 0x421   : > { %3793 = vmatprep.subr.bf16.mxu1 %v1737_v30 }
 0x424   : > { %3794 = vmatpush3.bf16.msra.mxu1 %v1737_v30 }
 0x425   : > { %3795 = vmatprep.subr.bf16.mxu1 %v1736_v2 }
 0x428   : > { %3796 = vmatpush3.bf16.msra.mxu1 %v1736_v2 }
 0x429   : > { %3797 = vmatprep.subr.bf16.mxu1 %v1735_v18 }
 0x42c   : > { %3798 = vmatpush3.bf16.msra.mxu1 %v1735_v18  ;;  %v5518_v18 = vld [vmem:[#allocation3 + $0x70] sm:$0xff] }
 0x42d   : > { %3799 = vmatprep.subr.bf16.mxu1 %v1734_v34 }
 0x430   : > { %3800 = vmatpush3.bf16.msra.mxu1 %v1734_v34 }
 0x440   : > { %v5389_v35 = vpop.f32.mrf.mxu0 }
 0x441   : > { %1923 = vmax.xlane.f32.xlu1 %v5389_v35 }
 0x442   : > { %v5392_v37 = vpop.f32.mrf.mxu0 }
 0x443   : > { %1919 = vmax.xlane.f32.xlu0 %v5392_v37 }
 0x444   : > { %v5395_v38 = vpop.f32.mrf.mxu0 }
 0x445   : > { %1925 = vmax.xlane.f32.xlu1 %v5395_v38 }
 0x446   : > { %v5398_v41 = vpop.f32.mrf.mxu0 }
 0x447   : > { %1921 = vmax.xlane.f32.xlu0 %v5398_v41 }
 0x448   : > { %v5401_v42 = vpop.f32.mrf.mxu0 }
 0x44a   : > { %v5403_v45 = vpop.f32.mrf.mxu0 }
 0x44b   : > { %1927 = vmax.xlane.f32.xlu0 %v5403_v45 }
 0x44c   : > { %v5406_v46 = vpop.f32.mrf.mxu0 }
 0x44d   : > { %1933 = vmax.xlane.f32.xlu1 %v5406_v46 }
 0x44e   : > { %v5409_v53 = vpop.f32.mrf.mxu0 }
 0x44f   : > { %1931 = vmax.xlane.f32.xlu0 %v5401_v42 }
 0x450   : > { %v5412_v3 = vpop.f32.mrf.mxu0 }
 0x451   : > { %1929 = vmax.xlane.f32.xlu1 %v5409_v53 }
 0x452   : > { %v5420_v59 = vpop.f32.mrf.mxu0 }
 0x453   : > { %1935 = vmax.xlane.f32.xlu0 %v5420_v59 }
 0x454   : > { %v5423_v5 = vpop.f32.mrf.mxu0 }
 0x455   : > { %1941 = vmax.xlane.f32.xlu1 %v5423_v5 }
 0x456   : > { %v5426_v8 = vpop.f32.mrf.mxu0 }
 0x457   : > { %1939 = vmax.xlane.f32.xlu0 %v5412_v3 }
 0x458   : > { %v5429_v9 = vpop.f32.mrf.mxu0 }
 0x459   : > { %1937 = vmax.xlane.f32.xlu1 %v5426_v8 }
 0x45a   : > { %v5432_v15 = vpop.f32.mrf.mxu0 }
 0x45b   : > { %1943 = vmax.xlane.f32.xlu0 %v5432_v15 }
 0x45c   : > { %v5435_v16 = vpop.f32.mrf.mxu0 }
 0x45d   : > { %1949 = vmax.xlane.f32.xlu1 %v5435_v16 }
 0x45e   : > { %v5439_v49 = vpop.f32.mrf.mxu0 }
 0x45f   : > { %1947 = vmax.xlane.f32.xlu0 %v5429_v9 }
 0x461   : > { %1945 = vmax.xlane.f32.xlu1 %v5439_v49 }
 0x4ca   : > { %v1924_v40 = vpop.xlane.xlu1 %1923 }
 0x4cb   : > { %v5456_v44 = vmax.f32 %v5453_v1, %v1924_v40 }
 0x4cc   : > { %v1920_v50 = vpop.xlane.xlu0 %1919 }
 0x4cd   : > { %2491 = vst.msk [vmem:[#allocation3 + $0x10] sm:$0xff] %vm2223_vm1, %v5456_v44  ;;  %v1951_v61 = vmax.f32 %v1903_v36, %v1920_v50  ;;  %2027 = vperm.xlu1 %4083, %v5456_v44   ;;  %v1916_v50 = vld [vmem:[#allocation3 + $0x68] sm:$0xff] }
 0x4ce   : > { %v1926_v43 = vpop.xlane.xlu1 %1925 }
 0x4cf   : > { %2489 = vst.msk [vmem:[#allocation3] sm:$0xff] %vm2223_vm1, %v1951_v61  ;;  %v1954_v52 = vmax.f32 %v1906_v39, %v1926_v43  ;;  %2017 = vperm.xlu0 %4082, %v1951_v61   ;;  %v1967_v63 = vsub.f32 %v1903_v36, %v1951_v61 }
 0x4d0   : > { %v1922_v4 = vpop.xlane.xlu0 %1921 }
 0x4d1   : > { %2492 = vst.msk [vmem:[#allocation3 + $0x18] sm:$0xff] %vm2223_vm1, %v1954_v52  ;;  %v1952_v55 = vmax.f32 %v5461_v51, %v1922_v4  ;;  %2032 = vperm.xlu1 %4083, %v1954_v52   ;;  %v1970_v27 = vsub.f32 %v1906_v39, %v1954_v52  ;;  %v1983_v19 = vmul.f32 1.442695, %v1967_v63  ;;  %v1969_v39 = vsub.f32 %v5453_v1, %v5456_v44 }
 0x4d3   : > { %2490 = vst.msk [vmem:[#allocation3 + $0x8] sm:$0xff] %vm2223_vm1, %v1952_v55  ;;  %v1968_v22 = vsub.f32 %v5461_v51, %v1952_v55  ;;  %v1989_v33 = vmul.f32 1.442695, %v1970_v27  ;;  %4148 = vpow2.f32 %v1983_v19  ;;  %v1987_v44 = vmul.f32 1.442695, %v1969_v39 }
 0x4d4   : > { %v1928_v60 = vpop.xlane.xlu0 %1927 }
 0x4d5   : > { %v5470_v62 = vmax.f32 %v5466_v56, %v1928_v60  ;;  %2022 = vperm.xlu1 %4083, %v1952_v55   ;;  %v1985_v61 = vmul.f32 1.442695, %v1968_v22  ;;  %4150 = vpow2.f32 %v1989_v33 }
 0x4d6   : > { %v1934_v58 = vpop.xlane.xlu1 %1933 }
 0x4d7   : > { %2493 = vst.msk [vmem:[#allocation3 + $0x20] sm:$0xff] %vm2223_vm1, %v5470_v62  ;;  %v1958_v54 = vmax.f32 %v1910_v6, %v1934_v58  ;;  %4152 = vpow2.f32 %v1985_v61 }
 0x4d8   : > { %v1932_v10 = vpop.xlane.xlu0 %1931 }
 0x4d9   : > { %2496 = vst.msk [vmem:[#allocation3 + $0x38] sm:$0xff] %vm2223_vm1, %v1958_v54  ;;  %v5480_v12 = vmax.f32 %v5472_v7, %v1932_v10  ;;  %v1974_v34 = vsub.f32 %v1910_v6, %v1958_v54  ;;  %v1971_v6 = vsub.f32 %v5466_v56, %v5470_v62 }
 0x4da   : > { %v1930_v13 = vpop.xlane.xlu1 %1929 }
 0x4db   : > { %2495 = vst.msk [vmem:[#allocation3 + $0x30] sm:$0xff] %vm2223_vm1, %v5480_v12  ;;  %v1956_v23 = vmax.f32 %v5476_v11, %v1930_v13  ;;  %2047 = vperm.xlu1 %4083, %v5480_v12   ;;  %v1997_v4 = vmul.f32 1.442695, %v1974_v34  ;;  %v1991_v10 = vmul.f32 1.442695, %v1971_v6 }
 0x4dc   : > { %v1936_v17 = vpop.xlane.xlu0 %1935 }
 0x4dd   : > { %2494 = vst.msk [vmem:[#allocation3 + $0x28] sm:$0xff] %vm2223_vm1, %v1956_v23  ;;  %v5492_v47 = vmax.f32 %v5482_v14, %v1936_v17  ;;  %v1972_v55 = vsub.f32 %v5476_v11, %v1956_v23  ;;  %4154 = vpow2.f32 %v1997_v4  ;;  %v1973_v11 = vsub.f32 %v5472_v7, %v5480_v12 }
 0x4de   : > { %v1942_v48 = vpop.xlane.xlu1 %1941  ;;  %4156 = vpow2.f32 %v1987_v44 }
 0x4df   : > { %2497 = vst.msk [vmem:[#allocation3 + $0x40] sm:$0xff] %vm2223_vm1, %v5492_v47  ;;  %v1962_v0 = vmax.f32 %v5488_v31, %v1942_v48  ;;  %2037 = vperm.xlu1 %4083, %v5470_v62   ;;  %v1993_v58 = vmul.f32 1.442695, %v1972_v55  ;;  %v1975_v48 = vsub.f32 %v5482_v14, %v5492_v47 }
 0x4e0   : > { %v1940_v24 = vpop.xlane.xlu0 %1939  ;;  %v5550_v62 = vpop.eup %4148 }
 0x4e1   : > { %2500 = vst.msk [vmem:[#allocation3 + $0x58] sm:$0xff] %vm2223_vm1, %v1962_v0  ;;  %v5504_v26 = vmax.f32 %v5494_v57, %v1940_v24  ;;  %4158 = vpow2.f32 %v1993_v58 }
 0x4e2   : > { %v1938_v28 = vpop.xlane.xlu1 %1937  ;;  %4160 = vpow2.f32 %v1991_v10 }
 0x4e3   : > { %2499 = vst.msk [vmem:[#allocation3 + $0x50] sm:$0xff] %vm2223_vm1, %v5504_v26  ;;  %v1960_v20 = vmax.f32 %v5500_v25, %v1938_v28  ;;  %2042 = vperm.xlu1 %4083, %v1956_v23   ;;  %v1995_v23 = vmul.f32 1.442695, %v1973_v11  ;;  %v1977_v17 = vsub.f32 %v5494_v57, %v5504_v26 }
 0x4e4   : > { %v1944_v30 = vpop.xlane.xlu0 %1943 }
 0x4e5   : > { %2498 = vst.msk [vmem:[#allocation3 + $0x48] sm:$0xff] %vm2223_vm1, %v1960_v20  ;;  %2062 = vperm.xlu0 %4082, %v1960_v20   ;;  %v5516_v32 = vmax.f32 %v5506_v29, %v1944_v30  ;;  %v1976_v56 = vsub.f32 %v5500_v25, %v1960_v20  ;;  %v2003_v63 = vmul.f32 1.442695, %v1977_v17  ;;  %v1999_v25 = vmul.f32 1.442695, %v1975_v48 }
 0x4e6   : > { %v1950_v2 = vpop.xlane.xlu1 %1949 }
 0x4e7   : > { %2501 = vst.msk [vmem:[#allocation3 + $0x60] sm:$0xff] %vm2223_vm1, %v5516_v32  ;;  %v5523_v40 = vmax.f32 %v5511_v21, %v1950_v2  ;;  %2052 = vperm.xlu1 %4083, %v1958_v54   ;;  %v1978_v54 = vsub.f32 %v5488_v31, %v1962_v0  ;;  %v5555_v31 = vpop.eup %4150  ;;  %v2001_v7 = vmul.f32 1.442695, %v1976_v56 }
 0x4e8   : > { %v1948_v36 = vpop.xlane.xlu0 %1947 }
 0x4e9   : > { %v1982_v43 = vsub.f32 %v5511_v21, %v5523_v40  ;;  %2504 = vst.msk [vmem:[#allocation3 + $0x78] sm:$0xff] %vm2223_vm1, %v5523_v40  ;;  %2072 = vperm.xlu0 %4082, %v1962_v0   ;;  %v5532_v51 = vmax.f32 %v5518_v18, %v1948_v36  ;;  %v2005_v13 = vmul.f32 1.442695, %v1978_v54  ;;  %v5561_v0 = vpop.eup %4152 }
 0x4ea   : > { %v1946_v52 = vpop.xlane.xlu1 %1945  ;;  %v5564_v24 = vpop.eup %4154 }
 0x4eb   : > { %v1981_v60 = vsub.f32 %v5518_v18, %v5532_v51  ;;  %2503 = vst.msk [vmem:[#allocation3 + $0x70] sm:$0xff] %vm2223_vm1, %v5532_v51  ;;  %v1964_v1 = vmax.f32 %v1916_v50, %v1946_v52  ;;  %2057 = vperm.xlu1 %4083, %v5492_v47   ;;  %4162 = vpow2.f32 %v2005_v13  ;;  %v5569_v27 = vpop.eup %4156 }
 0x4ec   : > { %4164 = vpow2.f32 %v1995_v23 }
 0x4ed   : > { %2502 = vst.msk [vmem:[#allocation3 + $0x68] sm:$0xff] %vm2223_vm1, %v1964_v1  ;;  %2082 = vperm.xlu0 %4082, %v1964_v1   ;;  %v1980_v12 = vsub.f32 %v1916_v50, %v1964_v1  ;;  %4166 = vpow2.f32 %v2001_v7 }
 0x4ee   : > { %4168 = vpow2.f32 %v2003_v63  ;;  %v5572_v14 = vpop.eup %4158 }
 0x4ef   : > { %2067 = vperm.xlu1 %4083, %v5504_v26   ;;  %v2009_v57 = vmul.f32 1.442695, %v1980_v12  ;;  %v1979_v26 = vsub.f32 %v5506_v29, %v5516_v32  ;;  %v5575_v28 = vpop.eup %4160 }
 0x4f1   : > { %2092 = vperm.xlu0 %4082, %v5523_v40   ;;  %4170 = vpow2.f32 %v2009_v57  ;;  %v2007_v47 = vmul.f32 1.442695, %v1979_v26 }
 0x4f2   : > { %4172 = vpow2.f32 %v1999_v25 }
 0x4f3   : > { %2077 = vperm.xlu1 %4083, %v5516_v32   ;;  %4174 = vpow2.f32 %v2007_v47 }
 0x4f5   : > { %2258 = vperm.xlu0 %4082, %v5550_v62  }
 0x4f7   : > { %2087 = vperm.xlu1 %4083, %v5532_v51  }
 0x4f8   : > { %v5578_v19 = vpop.eup %4162 }
 0x4f9   : > { %2273 = vperm.xlu0 %4082, %v5555_v31   ;;  %v5581_v29 = vpop.eup %4164 }
 0x4fa   : > { %v5584_v20 = vpop.eup %4166 }
 0x4fb   : > { %2263 = vperm.xlu1 %4083, %v5561_v0   ;;  %v5587_v30 = vpop.eup %4168 }
 0x4fd   : > { %2293 = vperm.xlu0 %4082, %v5564_v24  }
 0x4fe   : > { %v5590_v22 = vpop.eup %4170 }
 0x4ff   : > { %2268 = vperm.xlu1 %4083, %v5569_v27   ;;  %v5593_v32 = vpop.eup %4172 }
 0x500   : > { %v5596_v33 = vpop.eup %4174 }
 0x501   : > { %2283 = vperm.xlu0 %4082, %v5572_v14  }
 0x503   : > { %2278 = vperm.xlu1 %4083, %v5575_v28  }
 0x505   : > { %2313 = vperm.xlu0 %4082, %v5578_v19  }
 0x507   : > { %2288 = vperm.xlu1 %4083, %v5581_v29  }
 0x509   : > { %2303 = vperm.xlu0 %4082, %v5584_v20  }
 0x50b   : > { %2308 = vperm.xlu1 %4083, %v5587_v30  }
 0x50d   : > { %2323 = vperm.xlu0 %4082, %v5590_v22  }
 0x50f   : > { %2298 = vperm.xlu1 %4083, %v5593_v32  }
 0x513   : > { %2318 = vperm.xlu1 %4083, %v5596_v33  }
 0x548   : > { %v2028_v2 = vpop.permute.xlu1 %2027 }
 0x549   : > { %v2097_v34 = vsub.f32 %v5389_v35, %v2028_v2 }
 0x54a   : > { %v2018_v36 = vpop.permute.xlu0 %2017 }
 0x54b   : > { %v2115_v50 = vmul.f32 1.442695, %v2097_v34  ;;  %v2095_v39 = vsub.f32 %v5392_v37, %v2018_v36 }
 0x54c   : > { %v2033_v61 = vpop.permute.xlu1 %2032 }
 0x54d   : > { %4176 = vpow2.f32 %v2115_v50  ;;  %v2111_v52 = vmul.f32 1.442695, %v2095_v39  ;;  %v2098_v4 = vsub.f32 %v5395_v38, %v2033_v61 }
 0x54f   : > { %4178 = vpow2.f32 %v2111_v52  ;;  %v2117_v55 = vmul.f32 1.442695, %v2098_v4 }
 0x550   : > { %v2023_v1 = vpop.permute.xlu1 %2022 }
 0x551   : > { %v2096_v44 = vsub.f32 %v5398_v41, %v2023_v1  ;;  %4180 = vpow2.f32 %v2117_v55 }
 0x553   : > { %v2113_v6 = vmul.f32 1.442695, %v2096_v44 }
 0x555   : > { %4182 = vpow2.f32 %v2113_v6 }
 0x556   : > { %v2048_v58 = vpop.permute.xlu1 %2047 }
 0x557   : > { %v2101_v35 = vsub.f32 %v5401_v42, %v2048_v58 }
 0x559   : > { %v2123_v54 = vmul.f32 1.442695, %v2101_v35 }
 0x55a   : > { %v4177_v10 = vpop.eup %4176  ;;  %v2038_v11 = vpop.permute.xlu1 %2037 }
 0x55b   : > { %4184 = vpow2.f32 %v2123_v54  ;;  %v2099_v37 = vsub.f32 %v5403_v45, %v2038_v11  ;;  %2179 = vadd.xlane.f32.xlu0 %v4177_v10 }
 0x55c   : > { %v4179_v13 = vpop.eup %4178 }
 0x55d   : > { %v2119_v38 = vmul.f32 1.442695, %v2099_v37  ;;  %2175 = vadd.xlane.f32.xlu1 %v4179_v13 }
 0x55e   : > { %v2043_v56 = vpop.permute.xlu1 %2042  ;;  %v4181_v23 = vpop.eup %4180 }
 0x55f   : > { %4186 = vpow2.f32 %v2119_v38  ;;  %v2100_v41 = vsub.f32 %v5409_v53, %v2043_v56  ;;  %v2353_v25 = vpack.c.bf16 %v4181_v23, %v4177_v10 }
 0x560   : > { %v2063_v17 = vpop.permute.xlu0 %2062 }
 0x561   : > { %v2121_v7 = vmul.f32 1.442695, %v2100_v41  ;;  %2181 = vadd.xlane.f32.xlu1 %v4181_v23  ;;  %v2104_v42 = vsub.f32 %v5426_v8, %v2063_v17 }
 0x562   : > { %v4183_v12 = vpop.eup %4182  ;;  %v2053_v48 = vpop.permute.xlu1 %2052 }
 0x563   : > { %4188 = vpow2.f32 %v2121_v7  ;;  %v2102_v63 = vsub.f32 %v5406_v46, %v2053_v48  ;;  %2177 = vadd.xlane.f32.xlu0 %v4183_v12  ;;  %v2352_v45 = vpack.c.bf16 %v4183_v12, %v4179_v13  ;;  %v2129_v47 = vmul.f32 1.442695, %v2104_v42 }
 0x564   : > { %v2073_v57 = vpop.permute.xlu0 %2072 }
 0x565   : > { %v2125_v26 = vmul.f32 1.442695, %v2102_v63  ;;  %3801 = vmatprep.mubr.bf16.mxu1 %v2352_v45  ;;  %v2106_v53 = vsub.f32 %v5423_v5, %v2073_v57  ;;  %v2011_v63 = vmul.f32 1.442695, %v1981_v60  ;;  %v2013_v45 = vmul.f32 1.442695, %v1982_v43 }
 0x566   : > { %3802 = vmatmul.mubr.bf16.vlgmr.msra.gmra.mxu1 %v2353_v25  ;;  %v2058_v2 = vpop.permute.xlu1 %2057 }
 0x567   : > { %4190 = vpow2.f32 %v2125_v26  ;;  %v2103_v34 = vsub.f32 %v5420_v59, %v2058_v2  ;;  %v2133_v46 = vmul.f32 1.442695, %v2106_v53 }
 0x568   : > { %v4185_v36 = vpop.eup %4184  ;;  %v2083_v8 = vpop.permute.xlu0 %2082  ;;  %4192 = vpow2.f32 %v2129_v47 }
 0x569   : > { %v2127_v50 = vmul.f32 1.442695, %v2103_v34  ;;  %2187 = vadd.xlane.f32.xlu0 %v4185_v36  ;;  %v2108_v39 = vsub.f32 %v5439_v49, %v2083_v8 }
 0x56a   : > { %v2068_v61 = vpop.permute.xlu1 %2067 }
 0x56b   : > { %4194 = vpow2.f32 %v2127_v50  ;;  %v2105_v52 = vsub.f32 %v5412_v3, %v2068_v61  ;;  %v2137_v1 = vmul.f32 1.442695, %v2108_v39  ;;  %v2145_v50 = vld [vmem:[#allocation4 + $0x10] sm:$0xff]  ;;  %v2143_v39 = vld [vmem:[#allocation4] sm:$0xff] }
 0x56c   : > { %v4187_v4 = vpop.eup %4186  ;;  %v2093_v55 = vpop.permute.xlu0 %2092  ;;  %4196 = vpow2.f32 %v2133_v46  ;;  %v2161_v61 = vmul.f32 %v5569_v27, %v2145_v50 }
 0x56d   : > { %v2131_v5 = vmul.f32 1.442695, %v2105_v52  ;;  %2183 = vadd.xlane.f32.xlu0 %v4187_v4  ;;  %v2110_v59 = vsub.f32 %v5435_v16, %v2093_v55  ;;  %v2159_v55 = vmul.f32 %v5550_v62, %v2143_v39 }
 0x56e   : > { %v2078_v44 = vpop.permute.xlu1 %2077 }
 0x56f   : > { %4198 = vpow2.f32 %v2131_v5  ;;  %v2107_v6 = vsub.f32 %v5432_v15, %v2078_v44  ;;  %v2141_v49 = vmul.f32 1.442695, %v2110_v59  ;;  %v2144_v44 = vld [vmem:[#allocation4 + $0x8] sm:$0xff] }
 0x570   : > { %v4189_v58 = vpop.eup %4188  ;;  %4200 = vpow2.f32 %v2137_v1  ;;  %v5627_v26 = vpop.permute.xlu0 %2258  ;;  %v2146_v1 = vld [vmem:[#allocation4 + $0x18] sm:$0xff] }
 0x571   : > { %v2135_v35 = vmul.f32 1.442695, %v2107_v6  ;;  %v2354_v54 = vpack.c.bf16 %v4189_v58, %v4187_v4  ;;  %v2162_v6 = vmul.f32 %v5555_v31, %v2146_v1 }
 0x572   : > { %v2088_v10 = vpop.permute.xlu1 %2087 }
 0x573   : > { %4202 = vpow2.f32 %v2135_v35  ;;  %v2109_v3 = vsub.f32 %v5429_v9, %v2088_v10  ;;  %3805 = vmatprep.mubr.bf16.mxu1 %v2354_v54  ;;  %v2160_v54 = vmul.f32 %v5561_v0, %v2144_v44  ;;  %v2149_v10 = vld [vmem:[#allocation4 + $0x30] sm:$0xff]  ;;  %v2150_v0 = vld [vmem:[#allocation4 + $0x38] sm:$0xff] }
 0x574   : > { %v4191_v11 = vpop.eup %4190  ;;  %4204 = vpow2.f32 %v2141_v49  ;;  %v5631_v51 = vpop.permute.xlu0 %2273  ;;  %v2165_v62 = vmul.f32 %v5581_v29, %v2149_v10 }
 0x575   : > { %v2139_v37 = vmul.f32 1.442695, %v2109_v3  ;;  %2189 = vadd.xlane.f32.xlu1 %v4191_v11  ;;  %v2355_v13 = vpack.c.bf16 %v4191_v11, %v4185_v36  ;;  %v4193_v16 = vpop.eup %4192  ;;  %v2147_v11 = vld [vmem:[#allocation4 + $0x20] sm:$0xff] }
 0x576   : > { %v5629_v18 = vpop.permute.xlu1 %2263  ;;  %v2163_v31 = vmul.f32 %v5575_v28, %v2147_v11  ;;  %v2243_v11 = vld [vmem:[#allocation5 + $0x18] sm:$0xff] }
 0x577   : > { %4206 = vpow2.f32 %v2139_v37  ;;  %3806 = vmatmul.mubr.bf16.gmra.mxu1 %v2355_v13 }
 0x578   : > { %v4195_v38 = vpop.eup %4194  ;;  %4208 = vpow2.f32 %v2011_v63  ;;  %v5635_v47 = vpop.permute.xlu0 %2293  ;;  %v2152_v63 = vld [vmem:[#allocation4 + $0x48] sm:$0xff] }
 0x579   : > { %2185 = vadd.xlane.f32.xlu1 %v4189_v58  ;;  %v2356_v15 = vpack.c.bf16 %v4193_v16, %v4195_v38  ;;  %v4197_v56 = vpop.eup %4196  ;;  %4210 = vpow2.f32 %v2013_v45  ;;  %v2168_v39 = vmul.f32 %v5584_v20, %v2152_v63 }
 0x57a   : > { %v5633_v60 = vpop.permute.xlu1 %2268 }
 0x57b   : > { %3809 = vmatprep.mubr.bf16.mxu1 %v2356_v15 }
 0x57c   : > { %v4199_v41 = vpop.eup %4198  ;;  %v5639_v40 = vpop.permute.xlu0 %2283 }
 0x57d   : > { %2197 = vadd.xlane.f32.xlu1 %v4197_v56  ;;  %2195 = vadd.xlane.f32.xlu0 %v4199_v41  ;;  %v2357_v23 = vpack.c.bf16 %v4197_v56, %v4199_v41  ;;  %v4201_v17 = vpop.eup %4200  ;;  %v2148_v56 = vld [vmem:[#allocation4 + $0x28] sm:$0xff] }
 0x57e   : > { %v5637_v21 = vpop.permute.xlu1 %2278  ;;  %v2164_v29 = vmul.f32 %v5572_v14, %v2148_v56 }
 0x57f   : > { %3810 = vmatmul.mubr.bf16.gmra.mxu1 %v2357_v23 }
 0x580   : > { %v4203_v9 = vpop.eup %4202  ;;  %v5644_v53 = vpop.permute.xlu0 %2313 }
 0x581   : > { %2193 = vadd.xlane.f32.xlu1 %v4193_v16  ;;  %2191 = vadd.xlane.f32.xlu0 %v4195_v38  ;;  %v2358_v7 = vpack.c.bf16 %v4201_v17, %v4203_v9  ;;  %v4205_v12 = vpop.eup %4204  ;;  %v2166_v38 = vmul.f32 %v5564_v24, %v2150_v0  ;;  %v2151_v24 = vld [vmem:[#allocation4 + $0x40] sm:$0xff] }
 0x582   : > { %v5641_v43 = vpop.permute.xlu1 %2288  ;;  %v2167_v14 = vmul.f32 %v5593_v32, %v2151_v24  ;;  %v2156_v32 = vld [vmem:[#allocation4 + $0x68] sm:$0xff] }
 0x583   : > { %3813 = vmatprep.mubr.bf16.mxu1 %v2358_v7 }
 0x584   : > { %v4207_v42 = vpop.eup %4206  ;;  %v5648_v34 = vpop.permute.xlu0 %2303 }
 0x585   : > { %2205 = vadd.xlane.f32.xlu1 %v4205_v12  ;;  %2203 = vadd.xlane.f32.xlu0 %v4207_v42  ;;  %v2359_v48 = vpack.c.bf16 %v4205_v12, %v4207_v42  ;;  %v5621_v57 = vpop.eup %4208 }
 0x586   : > { %v5624_v25 = vpop.eup %4210  ;;  %v5646_v2 = vpop.permute.xlu1 %2308 }
 0x587   : > { %3814 = vmatmul.mubr.bf16.gmra.mxu1 %v2359_v48 }
 0x588   : > { %v5652_v8 = vpop.permute.xlu0 %2323 }
 0x589   : > { %2201 = vadd.xlane.f32.xlu1 %v4201_v17  ;;  %2199 = vadd.xlane.f32.xlu0 %v4203_v9  ;;  %v2153_v17 = vld [vmem:[#allocation4 + $0x50] sm:$0xff]  ;;  %v2154_v9 = vld [vmem:[#allocation4 + $0x58] sm:$0xff] }
 0x58a   : > { %v5650_v36 = vpop.permute.xlu1 %2298  ;;  %v2169_v28 = vmul.f32 %v5587_v30, %v2153_v17  ;;  %v2170_v12 = vmul.f32 %v5578_v19, %v2154_v9  ;;  %v2158_v30 = vld [vmem:[#allocation4 + $0x78] sm:$0xff]  ;;  %v2247_v17 = vld [vmem:[#allocation5 + $0x48] sm:$0xff] }
 0x58b   : > { %v2174_v1 = vmul.f32 %v5624_v25, %v2158_v30 }
 0x58e   : > { %v5654_v46 = vpop.permute.xlu1 %2318 }
 0x59a   : > { %2328 = vperm.xlu1 %4083, %v5621_v57  }
 0x59f   : > { %2333 = vperm.xlu0 %4082, %v5624_v25   ;;  %v2242_v25 = vld [vmem:[#allocation5 + $0x58] sm:$0xff] }
 0x5e4   : > { %v2180_v52 = vpop.xlane.xlu0 %2179 }
 0x5e5   : > { %v2209_v4 = vadd.f32 %v2180_v52, %v2161_v61 }
 0x5e6   : > { %v2176_v5 = vpop.xlane.xlu1 %2175 }
 0x5e7   : > { %2226 = vst.msk [vmem:[#allocation4 + $0x10] sm:$0xff] %vm2223_vm1, %v2209_v4  ;;  %v2207_v59 = vadd.f32 %v2176_v5, %v2159_v55  ;;  %v2157_v4 = vld [vmem:[#allocation4 + $0x70] sm:$0xff] }
 0x5e8   : > { %v2173_v5 = vmul.f32 %v5621_v57, %v2157_v4  ;;  %v2249_v4 = vld [vmem:[#allocation5 + $0x20] sm:$0xff] }
 0x5e9   : > { %2224 = vst.msk [vmem:[#allocation4] sm:$0xff] %vm2223_vm1, %v2207_v59 }
 0x5ea   : > { %v2182_v58 = vpop.xlane.xlu1 %2181 }
 0x5eb   : > { %v2210_v35 = vadd.f32 %v2182_v58, %v2162_v6  ;;  %v2155_v6 = vld [vmem:[#allocation4 + $0x60] sm:$0xff] }
 0x5ec   : > { %v2178_v49 = vpop.xlane.xlu0 %2177 }
 0x5ed   : > { %2227 = vst.msk [vmem:[#allocation4 + $0x18] sm:$0xff] %vm2223_vm1, %v2210_v35  ;;  %v2208_v27 = vadd.f32 %v2178_v49, %v2160_v54  ;;  %v2171_v35 = vmul.f32 %v5596_v33, %v2155_v6  ;;  %v2172_v54 = vmul.f32 %v5590_v22, %v2156_v32  ;;  %v2241_v33 = vld [vmem:[#allocation5] sm:$0xff]  ;;  %v2339_v22 = vmul.f32 %v5631_v51, %v2243_v11 }
 0x5ef   : > { %2225 = vst.msk [vmem:[#allocation4 + $0x8] sm:$0xff] %vm2223_vm1, %v2208_v27 }
 0x5f2   : > { %v2188_v3 = vpop.xlane.xlu0 %2187 }
 0x5f3   : > { %v2213_v37 = vadd.f32 %v2188_v3, %v2165_v62  ;;  %v2240_v62 = vld [vmem:[#allocation5 + $0x30] sm:$0xff]  ;;  %v2338_v3 = vmul.f32 %v5633_v60, %v2242_v25  ;;  %v2246_v60 = vld [vmem:[#allocation5 + $0x8] sm:$0xff] }
 0x5f5   : > { %2230 = vst.msk [vmem:[#allocation4 + $0x30] sm:$0xff] %vm2223_vm1, %v2213_v37 }
 0x5f6   : > { %v2184_v13 = vpop.xlane.xlu0 %2183 }
 0x5f7   : > { %v2211_v16 = vadd.f32 %v2184_v13, %v2163_v31  ;;  %v2336_v31 = vmul.f32 %v5627_v26, %v2240_v62  ;;  %v2342_v26 = vmul.f32 %v5641_v43, %v2246_v60 }
 0x5f9   : > { %2228 = vst.msk [vmem:[#allocation4 + $0x20] sm:$0xff] %vm2223_vm1, %v2211_v16 }
 0x5fe   : > { %v2190_v15 = vpop.xlane.xlu1 %2189 }
 0x5ff   : > { %v2214_v41 = vadd.f32 %v2190_v15, %v2166_v38  ;;  %v2337_v15 = vmul.f32 %v5629_v18, %v2241_v33 }
 0x601   : > { %2231 = vst.msk [vmem:[#allocation4 + $0x38] sm:$0xff] %vm2223_vm1, %v2214_v41 }
 0x602   : > { %v2186_v23 = vpop.xlane.xlu1 %2185 }
 0x603   : > { %v2212_v7 = vadd.f32 %v2186_v23, %v2164_v29  ;;  %v2244_v23 = vld [vmem:[#allocation5 + $0x50] sm:$0xff] }
 0x605   : > { %2229 = vst.msk [vmem:[#allocation4 + $0x28] sm:$0xff] %vm2223_vm1, %v2212_v7  ;;  %v2340_v7 = vmul.f32 %v5637_v21, %v2244_v23  ;;  %v2251_v21 = vld [vmem:[#allocation5 + $0x38] sm:$0xff] }
 0x606   : > { %v2196_v42 = vpop.xlane.xlu0 %2195  ;;  %v2198_v48 = vpop.xlane.xlu1 %2197 }
 0x607   : > { %v2217_v45 = vadd.f32 %v2196_v42, %v2169_v28  ;;  %v2218_v50 = vadd.f32 %v2198_v48, %v2170_v12  ;;  %v2245_v28 = vld [vmem:[#allocation5 + $0x68] sm:$0xff]  ;;  %v2343_v42 = vmul.f32 %v5635_v47, %v2247_v17  ;;  %v2250_v48 = vld [vmem:[#allocation5 + $0x10] sm:$0xff] }
 0x608   : > { %v2341_v63 = vmul.f32 %v5639_v40, %v2245_v28  ;;  %v2346_v43 = vmul.f32 %v5646_v2, %v2250_v48 }
 0x609   : > { %2234 = vst.msk [vmem:[#allocation4 + $0x50] sm:$0xff] %vm2223_vm1, %v2217_v45  ;;  %2235 = vst.msk [vmem:[#allocation4 + $0x58] sm:$0xff] %vm2223_vm1, %v2218_v50  ;;  %v2248_v50 = vld [vmem:[#allocation5 + $0x40] sm:$0xff] }
 0x60a   : > { %v2192_v61 = vpop.xlane.xlu0 %2191  ;;  %v2194_v52 = vpop.xlane.xlu1 %2193 }
 0x60b   : > { %v2215_v55 = vadd.f32 %v2192_v61, %v2167_v14  ;;  %v2216_v19 = vadd.f32 %v2194_v52, %v2168_v39  ;;  %v2344_v52 = vmul.f32 %v5650_v36, %v2248_v50 }
 0x60d   : > { %2232 = vst.msk [vmem:[#allocation4 + $0x40] sm:$0xff] %vm2223_vm1, %v2215_v55  ;;  %2233 = vst.msk [vmem:[#allocation4 + $0x48] sm:$0xff] %vm2223_vm1, %v2216_v19  ;;  %v2347_v55 = vmul.f32 %v5644_v53, %v2251_v21  ;;  %v2254_v19 = vld [vmem:[#allocation5 + $0x78] sm:$0xff] }
 0x60e   : > { %v2204_v59 = vpop.xlane.xlu0 %2203  ;;  %v2206_v44 = vpop.xlane.xlu1 %2205 }
 0x60f   : > { %v2221_v58 = vadd.f32 %v2204_v59, %v2173_v5  ;;  %v2222_v20 = vadd.f32 %v2206_v44, %v2174_v1  ;;  %v2345_v59 = vmul.f32 %v5648_v34, %v2249_v4  ;;  %v2252_v44 = vld [vmem:[#allocation5 + $0x60] sm:$0xff] }
 0x611   : > { %2238 = vst.msk [vmem:[#allocation4 + $0x70] sm:$0xff] %vm2223_vm1, %v2221_v58  ;;  %2239 = vst.msk [vmem:[#allocation4 + $0x78] sm:$0xff] %vm2223_vm1, %v2222_v20  ;;  %v2255_v58 = vld [vmem:[#allocation5 + $0x28] sm:$0xff] }
 0x612   : > { %v2200_v49 = vpop.xlane.xlu0 %2199  ;;  %v2202_v27 = vpop.xlane.xlu1 %2201 }
 0x613   : > { %v2219_v10 = vadd.f32 %v2200_v49, %v2171_v35  ;;  %v2220_v57 = vadd.f32 %v2202_v27, %v2172_v54  ;;  %v2348_v54 = vmul.f32 %v5654_v46, %v2252_v44  ;;  %v2253_v49 = vld [vmem:[#allocation5 + $0x70] sm:$0xff] }
 0x614   : > { %v2349_v25 = vmul.f32 %v5652_v8, %v2253_v49 }
 0x615   : > { %2236 = vst.msk [vmem:[#allocation4 + $0x60] sm:$0xff] %vm2223_vm1, %v2219_v10  ;;  %2237 = vst.msk [vmem:[#allocation4 + $0x68] sm:$0xff] %vm2223_vm1, %v2220_v57 }
 0x616   : > { %v2329_v5 = vpop.permute.xlu1 %2328 }
 0x617   : > { %v2350_v32 = vmul.f32 %v2329_v5, %v2254_v19 }
 0x61a   : > { %v2334_v20 = vpop.permute.xlu0 %2333 }
 0x61b   : > { %v2351_v10 = vmul.f32 %v2334_v20, %v2255_v58 }
 0x626   : > { %v3803_v37 = vpop.f32.mrf.mxu1 }
 0x627   : > { %v2459_v13 = vadd.f32 %v3803_v37, %v2338_v3 }
 0x628   : > { %v2394_v16 = vpop.f32.mrf.mxu1 }
 0x629   : > { %2475 = vst [vmem:[#allocation5 + $0x58] sm:$0xff] %v2459_v13  ;;  %v2457_v0 = vadd.f32 %v2394_v16, %v2336_v31 }
 0x62a   : > { %v3804_v38 = vpop.f32.mrf.mxu1 }
 0x62b   : > { %2473 = vst [vmem:[#allocation5 + $0x30] sm:$0xff] %v2457_v0  ;;  %v2460_v56 = vadd.f32 %v3804_v38, %v2339_v22 }
 0x62c   : > { %v2397_v41 = vpop.f32.mrf.mxu1 }
 0x62d   : > { %2476 = vst [vmem:[#allocation5 + $0x18] sm:$0xff] %v2460_v56  ;;  %v2458_v29 = vadd.f32 %v2397_v41, %v2337_v15 }
 0x62f   : > { %2474 = vst [vmem:[#allocation5] sm:$0xff] %v2458_v29 }
 0x637   : > { %v3807_v9 = vpop.f32.mrf.mxu1 }
 0x638   : > { %v2463_v51 = vadd.f32 %v3807_v9, %v2342_v26 }
 0x639   : > { %v2410_v12 = vpop.f32.mrf.mxu1 }
 0x63a   : > { %2479 = vst [vmem:[#allocation5 + $0x8] sm:$0xff] %v2463_v51  ;;  %v2461_v18 = vadd.f32 %v2410_v12, %v2340_v7 }
 0x63b   : > { %v3808_v24 = vpop.f32.mrf.mxu1 }
 0x63c   : > { %2477 = vst [vmem:[#allocation5 + $0x50] sm:$0xff] %v2461_v18  ;;  %v2464_v45 = vadd.f32 %v3808_v24, %v2343_v42 }
 0x63d   : > { %v2413_v14 = vpop.f32.mrf.mxu1 }
 0x63e   : > { %2480 = vst [vmem:[#allocation5 + $0x48] sm:$0xff] %v2464_v45  ;;  %v2462_v39 = vadd.f32 %v2413_v14, %v2341_v63 }
 0x63f   : > { %v3811_v61 = vpop.f32.mrf.mxu1 }
 0x640   : > { %2478 = vst [vmem:[#allocation5 + $0x68] sm:$0xff] %v2462_v39  ;;  %v2467_v47 = vadd.f32 %v3811_v61, %v2346_v43 }
 0x641   : > { %v2426_v30 = vpop.f32.mrf.mxu1 }
 0x642   : > { %2483 = vst [vmem:[#allocation5 + $0x10] sm:$0xff] %v2467_v47  ;;  %v2465_v40 = vadd.f32 %v2426_v30, %v2344_v52 }
 0x643   : > { %v3812_v1 = vpop.f32.mrf.mxu1 }
 0x644   : > { %2481 = vst [vmem:[#allocation5 + $0x40] sm:$0xff] %v2465_v40  ;;  %v2468_v2 = vadd.f32 %v3812_v1, %v2347_v55 }
 0x645   : > { %v2429_v6 = vpop.f32.mrf.mxu1 }
 0x646   : > { %2484 = vst [vmem:[#allocation5 + $0x38] sm:$0xff] %v2468_v2  ;;  %v2466_v36 = vadd.f32 %v2429_v6, %v2345_v59 }
 0x647   : > { %v3815_v35 = vpop.f32.mrf.mxu1 }
 0x648   : > { %2482 = vst [vmem:[#allocation5 + $0x20] sm:$0xff] %v2466_v36  ;;  %v2471_v53 = vadd.f32 %v3815_v35, %v2350_v32 }
 0x649   : > { %v2442_v27 = vpop.f32.mrf.mxu1 }
 0x64a   : > { %2487 = vst [vmem:[#allocation5 + $0x78] sm:$0xff] %v2471_v53  ;;  %v2469_v57 = vadd.f32 %v2442_v27, %v2348_v54 }
 0x64b   : > { %v3816_v34 = vpop.f32.mrf.mxu1 }
 0x64c   : > { %2485 = vst [vmem:[#allocation5 + $0x60] sm:$0xff] %v2469_v57  ;;  %v2472_v62 = vadd.f32 %v3816_v34, %v2351_v10  ;;  %2508 = sbr.rel (%p3435_p12) target bundleno = 1991 (0x7c7), region = 96 }
 0x64d   : > { %v2445_v3 = vpop.f32.mrf.mxu1 }
 0x64e   : > { %2488 = vst [vmem:[#allocation5 + $0x28] sm:$0xff] %v2472_v62  ;;  %v2470_v11 = vadd.f32 %v2445_v3, %v2349_v25 }
 0x650   : > { %2486 = vst [vmem:[#allocation5 + $0x70] sm:$0xff] %v2470_v11 }
 0x651   : > { %v2533_v46 = vld [vmem:[#allocation4 + $0x40] sm:$0xff]  ;;  %v2534_v31 = vld [vmem:[#allocation4 + $0x48] sm:$0xff]  ;;  %v4645_v13 = vmov 0   ;;  %v2528_v33 = vld [vmem:[#allocation4 + $0x18] sm:$0xff] }
 0x652   : > { %v2525_v37 = vld [vmem:[#allocation4] sm:$0xff]  ;;  %4213 = vset.pattern.permute.xlu1 %v4645_v13  ;;  %4212 = vset.pattern.permute.xlu0 %v4645_v13  ;;  %4238 = vrcp.f32 %v2533_v46  ;;  %v2526_v8 = vld [vmem:[#allocation4 + $0x8] sm:$0xff]  ;;  %v2527_v16 = vld [vmem:[#allocation4 + $0x10] sm:$0xff] }
 0x653   : > { %4240 = vrcp.f32 %v2525_v37  ;;  %2821 = vmatprep.mubr.bf16.mxu0 %v4645_v13  ;;  %2861 = vmatprep.mubr.bf16.mxu1 %v4645_v13  ;;  %v4214_v22 = vld [vmem:[%s5088_s4 + $0x74] ss:$8 sps:$4 sm:$0xff]   ;;  %v4216_v0 = vld [vmem:[%s5088_s4 + $0x70] ss:$8 sps:$4 sm:$0xff]   ;;  %v4217_v15 = vld [vmem:[%s5088_s4 + $0x64] ss:$8 sps:$4 sm:$0xff]  }
 0x654   : > { %4242 = vrcp.f32 %v2534_v31  ;;  %v2536_v38 = vld [vmem:[#allocation4 + $0x58] sm:$0xff]  ;;  %v2535_v56 = vld [vmem:[#allocation4 + $0x50] sm:$0xff]  ;;  %2789 = vmatprep.subr.bf16.mxu0 %v4214_v22  ;;  %3833 = vmatprep.subr.bf16.mxu1 %v4214_v22  ;;  %v4219_v41 = vld [vmem:[%s5088_s4 + $0x60] ss:$8 sps:$4 sm:$0xff]  }
 0x655   : > { %4244 = vrcp.f32 %v2526_v8  ;;  %2790 = vmatpush1.bf16.msra.mxu0 %v4216_v0  ;;  %3841 = vmatpush1.bf16.msra.mxu1 %v4216_v0  ;;  %v4220_v29 = vld [vmem:[%s5088_s4 + $0x54] ss:$8 sps:$4 sm:$0xff]   ;;  %v2530_v60 = vld [vmem:[#allocation4 + $0x28] sm:$0xff]  ;;  %v2529_v23 = vld [vmem:[#allocation4 + $0x20] sm:$0xff] }
 0x656   : > { %4246 = vrcp.f32 %v2528_v33  ;;  %2791 = vmatprep.subr.bf16.mxu0 %v4217_v15  ;;  %3834 = vmatprep.subr.bf16.mxu1 %v4217_v15  ;;  %v4222_v26 = vld [vmem:[%s5088_s4 + $0x50] ss:$8 sps:$4 sm:$0xff]   ;;  %v4223_v9 = vld [vmem:[%s5088_s4 + $0x44] ss:$8 sps:$4 sm:$0xff]   ;;  %v4225_v18 = vld [vmem:[%s5088_s4 + $0x40] ss:$8 sps:$4 sm:$0xff]  }
 0x657   : > { %4248 = vrcp.f32 %v2527_v16  ;;  %v2538_v28 = vld [vmem:[#allocation4 + $0x68] sm:$0xff]  ;;  %v2537_v42 = vld [vmem:[#allocation4 + $0x60] sm:$0xff]  ;;  %v4226_v48 = vld [vmem:[%s5088_s4 + $0x34] ss:$8 sps:$4 sm:$0xff]  }
 0x658   : > { %4250 = vrcp.f32 %v2536_v38  ;;  %v2532_v63 = vld [vmem:[#allocation4 + $0x38] sm:$0xff]  ;;  %v2531_v50 = vld [vmem:[#allocation4 + $0x30] sm:$0xff]  ;;  %v4229_v43 = vld [vmem:[%s5088_s4 + $0x24] ss:$8 sps:$4 sm:$0xff]  }
 0x659   : > { %4252 = vrcp.f32 %v2535_v56  ;;  %2792 = vmatpush1.bf16.msra.mxu0 %v4219_v41  ;;  %3842 = vmatpush1.bf16.msra.mxu1 %v4219_v41  ;;  %v4228_v14 = vld [vmem:[%s5088_s4 + $0x30] ss:$8 sps:$4 sm:$0xff]   ;;  %v4231_v47 = vld [vmem:[%s5088_s4 + $0x20] ss:$8 sps:$4 sm:$0xff]   ;;  %v4232_v4 = vld [vmem:[%s5088_s4 + $0x14] ss:$8 sps:$4 sm:$0xff]  }
 0x65a   : > { %2793 = vmatprep.subr.bf16.mxu0 %v4220_v29  ;;  %3835 = vmatprep.subr.bf16.mxu1 %v4220_v29  ;;  %4254 = vrcp.f32 %v2530_v60  ;;  %v2540_v21 = vld [vmem:[#allocation4 + $0x78] sm:$0xff]  ;;  %v2539_v52 = vld [vmem:[#allocation4 + $0x70] sm:$0xff]  ;;  %v4235_v19 = vld [vmem:[%s5088_s4 + $0x4] ss:$8 sps:$4 sm:$0xff]  }
 0x65b   : > { %4256 = vrcp.f32 %v2529_v23  ;;  %v4234_v40 = vld [vmem:[%s5088_s4 + $0x10] ss:$8 sps:$4 sm:$0xff]   ;;  %v4237_v59 = vld [vmem:[%s5088_s4] ss:$8 sps:$4 sm:$0xff]  }
 0x65c   : > { %4258 = vrcp.f32 %v2538_v28  ;;  %v2517_v20 = vld [vmem:[#allocation5 + $0x40] sm:$0xff]  ;;  %v2509_v54 = vld [vmem:[#allocation5 + $0x30] sm:$0xff]  ;;  %v2512_v46 = vld [vmem:[#allocation5 + $0x18] sm:$0xff] }
 0x65d   : > { %2794 = vmatpush1.bf16.msra.mxu0 %v4222_v26  ;;  %3843 = vmatpush1.bf16.msra.mxu1 %v4222_v26  ;;  %4260 = vrcp.f32 %v2537_v42  ;;  %v2518_v35 = vld [vmem:[#allocation5 + $0x20] sm:$0xff]  ;;  %v2511_v31 = vld [vmem:[#allocation5 + $0x58] sm:$0xff]  ;;  %v2519_v33 = vld [vmem:[#allocation5 + $0x10] sm:$0xff] }
 0x65e   : > { %2795 = vmatprep.subr.bf16.mxu0 %v4223_v9  ;;  %3836 = vmatprep.subr.bf16.mxu1 %v4223_v9  ;;  %4262 = vrcp.f32 %v2532_v63  ;;  %v2510_v53 = vld [vmem:[#allocation5] sm:$0xff]  ;;  %v2520_v8 = vld [vmem:[#allocation5 + $0x38] sm:$0xff]  ;;  %v2514_v23 = vld [vmem:[#allocation5 + $0x68] sm:$0xff] }
 0x65f   : > { %v4239_v17 = vpop.eup %4238  ;;  %4264 = vrcp.f32 %v2531_v50  ;;  %v2522_v9 = vld [vmem:[#allocation5 + $0x70] sm:$0xff]  ;;  %v2516_v50 = vld [vmem:[#allocation5 + $0x48] sm:$0xff] }
 0x660   : > { %v4241_v7 = vpop.eup %4240  ;;  %2599 = vperm.xlu1 %4213, %v4239_v17   ;;  %4266 = vrcp.f32 %v2540_v21  ;;  %v2513_v17 = vld [vmem:[#allocation5 + $0x50] sm:$0xff]  ;;  %v2523_v21 = vld [vmem:[#allocation5 + $0x78] sm:$0xff] }
 0x661   : > { %v4243_v51 = vpop.eup %4242  ;;  %2559 = vperm.xlu0 %4212, %v4241_v7   ;;  %2796 = vmatpush1.bf16.msra.mxu0 %v4225_v18  ;;  %4268 = vrcp.f32 %v2539_v52  ;;  %v2521_v7 = vld [vmem:[#allocation5 + $0x60] sm:$0xff] }
 0x662   : > { %v4245_v12 = vpop.eup %4244  ;;  %3844 = vmatpush1.bf16.msra.mxu1 %v4225_v18  ;;  %2797 = vmatprep.subr.bf16.mxu0 %v4226_v48 }
 0x663   : > { %v4247_v24 = vpop.eup %4246  ;;  %3837 = vmatprep.subr.bf16.mxu1 %v4226_v48 }
 0x664   : > { %2604 = vperm.xlu1 %4213, %v4243_v51   ;;  %v4249_v45 = vpop.eup %4248 }
 0x665   : > { %2564 = vperm.xlu0 %4212, %v4245_v12   ;;  %v4251_v39 = vpop.eup %4250  ;;  %2798 = vmatpush1.bf16.msra.mxu0 %v4228_v14 }
 0x666   : > { %v4253_v61 = vpop.eup %4252  ;;  %3845 = vmatpush1.bf16.msra.mxu1 %v4228_v14  ;;  %2799 = vmatprep.subr.bf16.mxu0 %v4229_v43 }
 0x667   : > { %3838 = vmatprep.subr.bf16.mxu1 %v4229_v43  ;;  %v4255_v30 = vpop.eup %4254  ;;  %v2515_v43 = vld [vmem:[#allocation5 + $0x8] sm:$0xff] }
 0x668   : > { %2574 = vperm.xlu1 %4213, %v4247_v24   ;;  %v4257_v55 = vpop.eup %4256 }
 0x669   : > { %2569 = vperm.xlu0 %4212, %v4249_v45   ;;  %2800 = vmatpush1.bf16.msra.mxu0 %v4231_v47  ;;  %v4259_v5 = vpop.eup %4258 }
 0x66a   : > { %3846 = vmatpush1.bf16.msra.mxu1 %v4231_v47  ;;  %2801 = vmatprep.subr.bf16.mxu0 %v4232_v4  ;;  %v4261_v1 = vpop.eup %4260 }
 0x66b   : > { %3839 = vmatprep.subr.bf16.mxu1 %v4232_v4  ;;  %v4263_v2 = vpop.eup %4262 }
 0x66c   : > { %2614 = vperm.xlu1 %4213, %v4251_v39   ;;  %v4265_v44 = vpop.eup %4264  ;;  %v2524_v39 = vld [vmem:[#allocation5 + $0x28] sm:$0xff] }
 0x66d   : > { %2609 = vperm.xlu0 %4212, %v4253_v61   ;;  %2802 = vmatpush1.bf16.msra.mxu0 %v4234_v40  ;;  %v4267_v6 = vpop.eup %4266 }
 0x66e   : > { %3847 = vmatpush1.bf16.msra.mxu1 %v4234_v40  ;;  %2803 = vmatprep.subr.bf16.mxu0 %v4235_v19  ;;  %v4269_v32 = vpop.eup %4268 }
 0x66f   : > { %3840 = vmatprep.subr.bf16.mxu1 %v4235_v19 }
 0x670   : > { %2584 = vperm.xlu1 %4213, %v4255_v30  }
 0x671   : > { %2579 = vperm.xlu0 %4212, %v4257_v55   ;;  %2804 = vmatpush1.bf16.msra.mxu0 %v4237_v59 }
 0x672   : > { %3848 = vmatpush1.bf16.msra.mxu1 %v4237_v59 }
 0x674   : > { %2624 = vperm.xlu1 %4213, %v4259_v5   ;;  %v2669_v5 = vld [vmem:[#allocation6 + $0xb8] sm:$0xff] }
 0x675   : > { %2619 = vperm.xlu0 %4212, %v4261_v1   ;;  %v2653_v1 = vld [vmem:[#allocation6 + $0xa8] sm:$0xff] }
 0x678   : > { %2594 = vperm.xlu1 %4213, %v4263_v2   ;;  %v2670_v2 = vld [vmem:[#allocation6 + $0xd0] sm:$0xff] }
 0x679   : > { %2589 = vperm.xlu0 %4212, %v4265_v44  }
 0x67c   : > { %2634 = vperm.xlu1 %4213, %v4267_v6  }
 0x67d   : > { %2629 = vperm.xlu0 %4212, %v4269_v32   ;;  %v2654_v32 = vld [vmem:[#allocation6 + $0x68] sm:$0xff] }
 0x6db   : > { %v2600_v36 = vpop.permute.xlu1 %2599 }
 0x6dc   : > { %v2560_v58 = vpop.permute.xlu0 %2559  ;;  %v2645_v27 = vmul.f32 %v2600_v36, %v2517_v20 }
 0x6dd   : > { %v2637_v34 = vmul.f32 %v2560_v58, %v2509_v54  ;;  %v2655_v54 = vld [vmem:[#allocation6 + $0x10] sm:$0xff] }
 0x6df   : > { %v2605_v49 = vpop.permute.xlu1 %2604 }
 0x6e0   : > { %v2646_v10 = vmul.f32 %v2605_v49, %v2518_v35  ;;  %v2565_v57 = vpop.permute.xlu0 %2564 }
 0x6e1   : > { %v2638_v25 = vmul.f32 %v2565_v57, %v2510_v53 }
 0x6e2   : > { %v2689_v62 = vpack.c.bf16 %v2646_v10, %v2645_v27  ;;  %v2672_v27 = vld [vmem:[#allocation6 + $0x58] sm:$0xff] }
 0x6e3   : > { %v2685_v3 = vpack.c.bf16 %v2638_v25, %v2637_v34  ;;  %v2575_v11 = vpop.permute.xlu1 %2574  ;;  %v2656_v34 = vld [vmem:[#allocation6 + $0xc0] sm:$0xff] }
 0x6e4   : > { %v2570_v37 = vpop.permute.xlu0 %2569  ;;  %2862 = vmatmul.mubr.bf16.vlgmr.msra.gmra.mxu1 %v2689_v62  ;;  %v2640_v16 = vmul.f32 %v2575_v11, %v2512_v46  ;;  %v2657_v46 = vld [vmem:[#allocation6 + $0xc8] sm:$0xff] }
 0x6e5   : > { %2822 = vmatmul.mubr.bf16.vlgmr.msra.gmra.mxu0 %v2685_v3  ;;  %2871 = vmatprep.mubr.bf16.mxu1 %v4645_v13  ;;  %v2639_v22 = vmul.f32 %v2570_v37, %v2511_v31  ;;  %v2673_v37 = vld [vmem:[#allocation6 + $0x80] sm:$0xff] }
 0x6e6   : > { %2831 = vmatprep.mubr.bf16.mxu0 %v4645_v13 }
 0x6e7   : > { %v2615_v0 = vpop.permute.xlu1 %2614  ;;  %v2686_v41 = vpack.c.bf16 %v2640_v16, %v2639_v22  ;;  %v2658_v16 = vld [vmem:[#allocation6 + $0xb0] sm:$0xff]  ;;  %v2674_v22 = vld [vmem:[#allocation6 + $0x40] sm:$0xff] }
 0x6e8   : > { %v2648_v38 = vmul.f32 %v2615_v0, %v2520_v8  ;;  %v2610_v15 = vpop.permute.xlu0 %2609 }
 0x6e9   : > { %v2647_v56 = vmul.f32 %v2610_v15, %v2519_v33 }
 0x6eb   : > { %v2690_v29 = vpack.c.bf16 %v2648_v38, %v2647_v56  ;;  %v2585_v60 = vpop.permute.xlu1 %2584 }
 0x6ec   : > { %v2580_v26 = vpop.permute.xlu0 %2579  ;;  %v2642_v51 = vmul.f32 %v2585_v60, %v2514_v23 }
 0x6ed   : > { %2832 = vmatmul.mubr.bf16.gmra.mxu0 %v2686_v41  ;;  %2872 = vmatmul.mubr.bf16.gmra.mxu1 %v2690_v29  ;;  %v2641_v28 = vmul.f32 %v2580_v26, %v2513_v17  ;;  %v2659_v41 = vld [vmem:[#allocation6 + $0x70] sm:$0xff]  ;;  %v2675_v29 = vld [vmem:[#allocation6 + $0x28] sm:$0xff] }
 0x6ee   : > { %2841 = vmatprep.mubr.bf16.mxu0 %v4645_v13  ;;  %2881 = vmatprep.mubr.bf16.mxu1 %v4645_v13 }
 0x6ef   : > { %v2625_v12 = vpop.permute.xlu1 %2624  ;;  %v2687_v24 = vpack.c.bf16 %v2642_v51, %v2641_v28 }
 0x6f0   : > { %v2650_v42 = vmul.f32 %v2625_v12, %v2522_v9  ;;  %v2620_v18 = vpop.permute.xlu0 %2619  ;;  %v2660_v9 = vld [vmem:[#allocation6 + $0x38] sm:$0xff] }
 0x6f1   : > { %v2649_v48 = vmul.f32 %v2620_v18, %v2521_v7  ;;  %v2676_v7 = vld [vmem:[#allocation6] sm:$0xff]  ;;  %v2661_v18 = vld [vmem:[#allocation6 + $0x48] sm:$0xff] }
 0x6f3   : > { %v2691_v63 = vpack.c.bf16 %v2650_v42, %v2649_v48  ;;  %v2595_v45 = vpop.permute.xlu1 %2594  ;;  %v2677_v48 = vld [vmem:[#allocation6 + $0x90] sm:$0xff] }
 0x6f4   : > { %v2590_v14 = vpop.permute.xlu0 %2589  ;;  %v2644_v61 = vmul.f32 %v2595_v45, %v2516_v50 }
 0x6f5   : > { %2842 = vmatmul.mubr.bf16.gmra.mxu0 %v2687_v24  ;;  %2882 = vmatmul.mubr.bf16.gmra.mxu1 %v2691_v63  ;;  %v2643_v52 = vmul.f32 %v2590_v14, %v2515_v43  ;;  %v2662_v14 = vld [vmem:[#allocation6 + $0xf8] sm:$0xff]  ;;  %v2678_v43 = vld [vmem:[#allocation6 + $0xe8] sm:$0xff] }
 0x6f6   : > { %2851 = vmatprep.mubr.bf16.mxu0 %v4645_v13  ;;  %2891 = vmatprep.mubr.bf16.mxu1 %v4645_v13  ;;  %v2671_v13 = vld [vmem:[#allocation6 + $0xd8] sm:$0xff] }
 0x6f7   : > { %v2635_v47 = vpop.permute.xlu1 %2634  ;;  %v2688_v40 = vpack.c.bf16 %v2644_v61, %v2643_v52 }
 0x6f8   : > { %v2652_v4 = vmul.f32 %v2635_v47, %v2524_v39  ;;  %v2630_v30 = vpop.permute.xlu0 %2629  ;;  %v2663_v47 = vld [vmem:[#allocation6 + $0x78] sm:$0xff] }
 0x6f9   : > { %v2651_v55 = vmul.f32 %v2630_v30, %v2523_v21 }
 0x6fb   : > { %v2692_v19 = vpack.c.bf16 %v2652_v4, %v2651_v55  ;;  %v2679_v4 = vld [vmem:[#allocation6 + $0xa0] sm:$0xff] }
 0x6fd   : > { %2852 = vmatmul.mubr.bf16.gmra.mxu0 %v2688_v40  ;;  %2892 = vmatmul.mubr.bf16.gmra.mxu1 %v2692_v19 }
 0x7a4   : > { %v2863_v59 = vpop.f32.mrf.mxu1 }
 0x7a5   : > { %v2823_v44 = vpop.f32.mrf.mxu0  ;;  %v2918_v6 = vadd.f32 %v2863_v59, %v2669_v5  ;;  %v2664_v5 = vld [vmem:[#allocation6 + $0x88] sm:$0xff] }
 0x7a6   : > { %v2902_v36 = vadd.f32 %v2823_v44, %v2653_v1  ;;  %v2865_v58 = vpop.f32.mrf.mxu1  ;;  %v2680_v1 = vld [vmem:[#allocation6 + $0x20] sm:$0xff] }
 0x7a7   : > { %2950 = vst [vmem:[#allocation6 + $0xb8] sm:$0xff] %v2918_v6  ;;  %v2825_v20 = vpop.f32.mrf.mxu0  ;;  %v2919_v35 = vadd.f32 %v2865_v58, %v2670_v2 }
 0x7a8   : > { %2934 = vst [vmem:[#allocation6 + $0xa8] sm:$0xff] %v2902_v36  ;;  %v2903_v53 = vadd.f32 %v2825_v20, %v2654_v32  ;;  %v2867_v49 = vpop.f32.mrf.mxu1  ;;  %v2665_v32 = vld [vmem:[#allocation6 + $0xf0] sm:$0xff]  ;;  %v2681_v36 = vld [vmem:[#allocation6 + $0x8] sm:$0xff] }
 0x7a9   : > { %2951 = vst [vmem:[#allocation6 + $0xd0] sm:$0xff] %v2919_v35  ;;  %v2827_v10 = vpop.f32.mrf.mxu0  ;;  %v2920_v57 = vadd.f32 %v2867_v49, %v2671_v13 }
 0x7aa   : > { %2935 = vst [vmem:[#allocation6 + $0x68] sm:$0xff] %v2903_v53  ;;  %v2904_v25 = vadd.f32 %v2827_v10, %v2655_v54  ;;  %v2869_v62 = vpop.f32.mrf.mxu1  ;;  %v2666_v54 = vld [vmem:[#allocation6 + $0x18] sm:$0xff]  ;;  %v2682_v53 = vld [vmem:[#allocation6 + $0xe0] sm:$0xff] }
 0x7ab   : > { %2952 = vst [vmem:[#allocation6 + $0xd8] sm:$0xff] %v2920_v57  ;;  %v2829_v3 = vpop.f32.mrf.mxu0  ;;  %v2921_v11 = vadd.f32 %v2869_v62, %v2672_v27 }
 0x7ac   : > { %2936 = vst [vmem:[#allocation6 + $0x10] sm:$0xff] %v2904_v25  ;;  %v2905_v31 = vadd.f32 %v2829_v3, %v2656_v34  ;;  %v2667_v34 = vld [vmem:[#allocation6 + $0x30] sm:$0xff]  ;;  %v2683_v25 = vld [vmem:[#allocation6 + $0x60] sm:$0xff] }
 0x7ad   : > { %2953 = vst [vmem:[#allocation6 + $0x58] sm:$0xff] %v2921_v11  ;;  %v2833_v8 = vpop.f32.mrf.mxu0  ;;  %v2873_v33 = vpop.f32.mrf.mxu1 }
 0x7ae   : > { %2937 = vst [vmem:[#allocation6 + $0xc0] sm:$0xff] %v2905_v31  ;;  %v2906_v0 = vadd.f32 %v2833_v8, %v2657_v46  ;;  %v2922_v38 = vadd.f32 %v2873_v33, %v2673_v37  ;;  %v2668_v37 = vld [vmem:[#allocation6 + $0x50] sm:$0xff]  ;;  %v2684_v31 = vld [vmem:[#allocation6 + $0x98] sm:$0xff] }
 0x7af   : > { %v2835_v15 = vpop.f32.mrf.mxu0  ;;  %v2875_v56 = vpop.f32.mrf.mxu1 }
 0x7b0   : > { %2938 = vst [vmem:[#allocation6 + $0xc8] sm:$0xff] %v2906_v0  ;;  %2954 = vst [vmem:[#allocation6 + $0x80] sm:$0xff] %v2922_v38  ;;  %v2907_v60 = vadd.f32 %v2835_v15, %v2658_v16  ;;  %v2923_v23 = vadd.f32 %v2875_v56, %v2674_v22 }
 0x7b1   : > { %v2837_v26 = vpop.f32.mrf.mxu0  ;;  %v2877_v17 = vpop.f32.mrf.mxu1 }
 0x7b2   : > { %2939 = vst [vmem:[#allocation6 + $0xb0] sm:$0xff] %v2907_v60  ;;  %2955 = vst [vmem:[#allocation6 + $0x40] sm:$0xff] %v2923_v23  ;;  %v2908_v51 = vadd.f32 %v2837_v26, %v2659_v41  ;;  %v2924_v28 = vadd.f32 %v2877_v17, %v2675_v29 }
 0x7b3   : > { %v2839_v12 = vpop.f32.mrf.mxu0  ;;  %v2879_v42 = vpop.f32.mrf.mxu1 }
 0x7b4   : > { %2940 = vst [vmem:[#allocation6 + $0x70] sm:$0xff] %v2908_v51  ;;  %2956 = vst [vmem:[#allocation6 + $0x28] sm:$0xff] %v2924_v28  ;;  %v2909_v24 = vadd.f32 %v2839_v12, %v2660_v9  ;;  %v2925_v63 = vadd.f32 %v2879_v42, %v2676_v7 }
 0x7b5   : > { %v2843_v45 = vpop.f32.mrf.mxu0  ;;  %v2883_v50 = vpop.f32.mrf.mxu1 }
 0x7b6   : > { %2941 = vst [vmem:[#allocation6 + $0x38] sm:$0xff] %v2909_v24  ;;  %2957 = vst [vmem:[#allocation6] sm:$0xff] %v2925_v63  ;;  %v2910_v39 = vadd.f32 %v2843_v45, %v2661_v18  ;;  %v2926_v21 = vadd.f32 %v2883_v50, %v2677_v48 }
 0x7b7   : > { %v2845_v61 = vpop.f32.mrf.mxu0  ;;  %v2885_v52 = vpop.f32.mrf.mxu1 }
 0x7b8   : > { %2942 = vst [vmem:[#allocation6 + $0x48] sm:$0xff] %v2910_v39  ;;  %2958 = vst [vmem:[#allocation6 + $0x90] sm:$0xff] %v2926_v21  ;;  %v2911_v30 = vadd.f32 %v2845_v61, %v2662_v14  ;;  %v2927_v55 = vadd.f32 %v2885_v52, %v2678_v43 }
 0x7b9   : > { %v2847_v40 = vpop.f32.mrf.mxu0  ;;  %v2887_v19 = vpop.f32.mrf.mxu1 }
 0x7ba   : > { %2943 = vst [vmem:[#allocation6 + $0xf8] sm:$0xff] %v2911_v30  ;;  %2959 = vst [vmem:[#allocation6 + $0xe8] sm:$0xff] %v2927_v55  ;;  %v2912_v59 = vadd.f32 %v2847_v40, %v2663_v47  ;;  %v2928_v2 = vadd.f32 %v2887_v19, %v2679_v4 }
 0x7bb   : > { %v2849_v44 = vpop.f32.mrf.mxu0  ;;  %v2889_v6 = vpop.f32.mrf.mxu1 }
 0x7bc   : > { %2944 = vst [vmem:[#allocation6 + $0x78] sm:$0xff] %v2912_v59  ;;  %2960 = vst [vmem:[#allocation6 + $0xa0] sm:$0xff] %v2928_v2  ;;  %v2913_v58 = vadd.f32 %v2849_v44, %v2664_v5  ;;  %v2929_v13 = vadd.f32 %v2889_v6, %v2680_v1 }
 0x7bd   : > { %v2853_v20 = vpop.f32.mrf.mxu0  ;;  %v2893_v35 = vpop.f32.mrf.mxu1 }
 0x7be   : > { %2945 = vst [vmem:[#allocation6 + $0x88] sm:$0xff] %v2913_v58  ;;  %2961 = vst [vmem:[#allocation6 + $0x20] sm:$0xff] %v2929_v13  ;;  %v2914_v49 = vadd.f32 %v2853_v20, %v2665_v32  ;;  %v2930_v27 = vadd.f32 %v2893_v35, %v2681_v36 }
 0x7bf   : > { %v2855_v10 = vpop.f32.mrf.mxu0  ;;  %v2895_v57 = vpop.f32.mrf.mxu1 }
 0x7c0   : > { %2946 = vst [vmem:[#allocation6 + $0xf0] sm:$0xff] %v2914_v49  ;;  %2962 = vst [vmem:[#allocation6 + $0x8] sm:$0xff] %v2930_v27  ;;  %v2915_v62 = vadd.f32 %v2855_v10, %v2666_v54  ;;  %v2931_v3 = vadd.f32 %v2895_v57, %v2682_v53 }
 0x7c1   : > { %v2857_v11 = vpop.f32.mrf.mxu0  ;;  %v2897_v46 = vpop.f32.mrf.mxu1 }
 0x7c2   : > { %2947 = vst [vmem:[#allocation6 + $0x18] sm:$0xff] %v2915_v62  ;;  %2963 = vst [vmem:[#allocation6 + $0xe0] sm:$0xff] %v2931_v3  ;;  %v2916_v8 = vadd.f32 %v2857_v11, %v2667_v34  ;;  %v2932_v33 = vadd.f32 %v2897_v46, %v2683_v25 }
 0x7c3   : > { %v2859_v16 = vpop.f32.mrf.mxu0  ;;  %v2899_v22 = vpop.f32.mrf.mxu1 }
 0x7c4   : > { %2948 = vst [vmem:[#allocation6 + $0x30] sm:$0xff] %v2916_v8  ;;  %2964 = vst [vmem:[#allocation6 + $0x60] sm:$0xff] %v2932_v33  ;;  %v2917_v0 = vadd.f32 %v2859_v16, %v2668_v37  ;;  %v2933_v38 = vadd.f32 %v2899_v22, %v2684_v31 }
 0x7c6   : > { %2949 = vst [vmem:[#allocation6 + $0x50] sm:$0xff] %v2917_v0  ;;  %2965 = vst [vmem:[#allocation6 + $0x98] sm:$0xff] %v2933_v38 }
 0x7c7 PF: > { %s6014_s4 = sld [smem:[#allocation31_spill]] }
 0x7cd   : > { %p2966_p10 = scmp.eq.s32.totalorder %s6014_s4, 1 }
 0x7cf   : > { %p2967_p8 = pnand %p2966_p10, %p2505_p9 }
 0x7d1   : > { %2970 = sbr.rel (%p2967_p8) target bundleno = 2023 (0x7e7), region = 100 }
 0x7d6   : > { %v2971_v15 = vld [vmem:[#allocation6 + $0xa8] sm:$0xff]  ;;  %v2973_v41 = vld [vmem:[#allocation6 + $0x10] sm:$0xff]  ;;  %v2974_v29 = vld [vmem:[#allocation6 + $0xc0] sm:$0xff] }
 0x7d7   : > { %v2972_v56 = vld [vmem:[#allocation6 + $0x68] sm:$0xff]  ;;  %3003 = vst [vmem:[%s5113_s5] sm:$0xff] %v2971_v15  ;;  %3005 = vst [vmem:[%s5113_s5 + $0x10] sm:$0xff] %v2973_v41  ;;  %v2976_v23 = vld [vmem:[#allocation6 + $0xb0] sm:$0xff] }
 0x7d8   : > { %3004 = vst [vmem:[%s5113_s5 + $0x8] sm:$0xff] %v2972_v56  ;;  %v2975_v60 = vld [vmem:[#allocation6 + $0xc8] sm:$0xff]  ;;  %3006 = vst [vmem:[%s5113_s5 + $0x18] sm:$0xff] %v2974_v29  ;;  %v2977_v26 = vld [vmem:[#allocation6 + $0x70] sm:$0xff] }
 0x7d9   : > { %3007 = vst [vmem:[%s5113_s5 + $0x20] sm:$0xff] %v2975_v60  ;;  %3008 = vst [vmem:[%s5113_s5 + $0x28] sm:$0xff] %v2976_v23  ;;  %v2978_v17 = vld [vmem:[#allocation6 + $0x38] sm:$0xff]  ;;  %v2979_v9 = vld [vmem:[#allocation6 + $0x48] sm:$0xff] }
 0x7da   : > { %3009 = vst [vmem:[%s5113_s5 + $0x30] sm:$0xff] %v2977_v26  ;;  %3010 = vst [vmem:[%s5113_s5 + $0x38] sm:$0xff] %v2978_v17  ;;  %v2980_v7 = vld [vmem:[#allocation6 + $0xf8] sm:$0xff]  ;;  %v2982_v28 = vld [vmem:[#allocation6 + $0x88] sm:$0xff] }
 0x7db   : > { %3011 = vst [vmem:[%s5113_s5 + $0x40] sm:$0xff] %v2979_v9  ;;  %v2981_v51 = vld [vmem:[#allocation6 + $0x78] sm:$0xff]  ;;  %3012 = vst [vmem:[%s5113_s5 + $0x48] sm:$0xff] %v2980_v7  ;;  %v2983_v12 = vld [vmem:[#allocation6 + $0xf0] sm:$0xff] }
 0x7dc   : > { %3013 = vst [vmem:[%s5113_s5 + $0x50] sm:$0xff] %v2981_v51  ;;  %3014 = vst [vmem:[%s5113_s5 + $0x58] sm:$0xff] %v2982_v28  ;;  %v2984_v42 = vld [vmem:[#allocation6 + $0x18] sm:$0xff]  ;;  %v2985_v18 = vld [vmem:[#allocation6 + $0x30] sm:$0xff] }
 0x7dd   : > { %3015 = vst [vmem:[%s5113_s5 + $0x60] sm:$0xff] %v2983_v12  ;;  %3016 = vst [vmem:[%s5113_s5 + $0x68] sm:$0xff] %v2984_v42  ;;  %v2986_v48 = vld [vmem:[#allocation6 + $0x50] sm:$0xff]  ;;  %v2987_v24 = vld [vmem:[#allocation6 + $0xb8] sm:$0xff] }
 0x7de   : > { %3017 = vst [vmem:[%s5113_s5 + $0x70] sm:$0xff] %v2985_v18  ;;  %v2988_v63 = vld [vmem:[#allocation6 + $0xd0] sm:$0xff]  ;;  %3018 = vst [vmem:[%s5113_s5 + $0x78] sm:$0xff] %v2986_v48  ;;  %v2989_v45 = vld [vmem:[#allocation6 + $0xd8] sm:$0xff] }
 0x7df   : > { %3019 = vst [vmem:[%s5113_s5 + $0x80] sm:$0xff] %v2987_v24  ;;  %3020 = vst [vmem:[%s5113_s5 + $0x88] sm:$0xff] %v2988_v63  ;;  %v2990_v50 = vld [vmem:[#allocation6 + $0x58] sm:$0xff]  ;;  %v2991_v14 = vld [vmem:[#allocation6 + $0x80] sm:$0xff] }
 0x7e0   : > { %3021 = vst [vmem:[%s5113_s5 + $0x90] sm:$0xff] %v2989_v45  ;;  %3022 = vst [vmem:[%s5113_s5 + $0x98] sm:$0xff] %v2990_v50  ;;  %v2992_v43 = vld [vmem:[#allocation6 + $0x40] sm:$0xff]  ;;  %v2993_v39 = vld [vmem:[#allocation6 + $0x28] sm:$0xff] }
 0x7e1   : > { %3023 = vst [vmem:[%s5113_s5 + $0xa0] sm:$0xff] %v2991_v14  ;;  %v2994_v21 = vld [vmem:[#allocation6] sm:$0xff]  ;;  %3024 = vst [vmem:[%s5113_s5 + $0xa8] sm:$0xff] %v2992_v43  ;;  %v2995_v61 = vld [vmem:[#allocation6 + $0x90] sm:$0xff] }
 0x7e2   : > { %3025 = vst [vmem:[%s5113_s5 + $0xb0] sm:$0xff] %v2993_v39  ;;  %3026 = vst [vmem:[%s5113_s5 + $0xb8] sm:$0xff] %v2994_v21  ;;  %v2996_v52 = vld [vmem:[#allocation6 + $0xe8] sm:$0xff]  ;;  %v2997_v47 = vld [vmem:[#allocation6 + $0xa0] sm:$0xff] }
 0x7e3   : > { %3027 = vst [vmem:[%s5113_s5 + $0xc0] sm:$0xff] %v2995_v61  ;;  %3028 = vst [vmem:[%s5113_s5 + $0xc8] sm:$0xff] %v2996_v52  ;;  %v2998_v4 = vld [vmem:[#allocation6 + $0x20] sm:$0xff]  ;;  %v2999_v30 = vld [vmem:[#allocation6 + $0x8] sm:$0xff] }
 0x7e4   : > { %3029 = vst [vmem:[%s5113_s5 + $0xd0] sm:$0xff] %v2997_v47  ;;  %v3000_v55 = vld [vmem:[#allocation6 + $0xe0] sm:$0xff]  ;;  %3030 = vst [vmem:[%s5113_s5 + $0xd8] sm:$0xff] %v2998_v4  ;;  %v3002_v19 = vld [vmem:[#allocation6 + $0x98] sm:$0xff] }
 0x7e5   : > { %3031 = vst [vmem:[%s5113_s5 + $0xe0] sm:$0xff] %v2999_v30  ;;  %3032 = vst [vmem:[%s5113_s5 + $0xe8] sm:$0xff] %v3000_v55  ;;  %v3001_v40 = vld [vmem:[#allocation6 + $0x60] sm:$0xff] }
 0x7e6   : > { %3033 = vst [vmem:[%s5113_s5 + $0xf0] sm:$0xff] %v3001_v40  ;;  %3034 = vst [vmem:[%s5113_s5 + $0xf8] sm:$0xff] %v3002_v19 }
 0x7e7 PF: > { %s6016_s17 = sld [smem:[#allocation32_spill]]  ;;  %s3052_s24 = sshll.u32 %s5113_s5, 4  ;;  %s5767_s24 = int_to_ptr.vmem [resolvable:$true] %s3052_s24 }
 0x7e8   : > { %s6017_s3 = sld [smem:[#allocation33_spill]]  ;;  %s3036_s0 = scalar_lea.sflag [#allocation9], %s5055_s23 }
 0x7e9   : > { %s6018_s16 = sld [smem:[#allocation48_spill]]  ;;  %s4438_s27 = scalar_lea.vmem %s5767_s24, 4096 }
 0x7ea   : > { %s6019_s28 = sld [smem:[#allocation61_spill]]  ;;  %p4439_p4 = scmp.ne.s32.totalorder %s5767_s24, %s4438_s27 }
 0x7eb   : > { %s4646_s12 = smov [#allocation18]  }
 0x7ec   : > { %s4442_s5 = sshll.u32 %s4646_s12, 4  ;;  %s4443_s5 = int_to_ptr.vmem [resolvable:$false] %s4442_s5 }
 0x7ed   : > { %s3481_s1 = sshll.u32 %s6016_s17, 5  ;;  %s4444_s13 = scalar_lea.vmem %s4443_s5, 8192 }
 0x7ee   : > { %s3455_s22 = sshll.u32 %s6017_s3, 6  ;;  %p4445_p2 = scmp.lt.s32.totalorder %s5767_s24, %s4443_s5 }
 0x7ef   : > { %s3049_s20 = sadd.s32 %s3481_s1, %s3455_s22  ;;  %p6021_p11 = scmp.ne.s32.totalorder %s6018_s16, 0 }
 0x7f0   : > { %s3456_s9 = sshll.u32 %s3049_s20, 7  ;;  %s6020_s8 = smov %s6019_s28 }
 0x7f1   : > { %s5772_s29 = scalar_lea.hbm %s6019_s28, %s3456_s9  ;;  %p4440_p1 = pnand %p4439_p4, %p6021_p11 }
 0x7f2   : > { %p4446_p6 = scmp.lt.s32.totalorder %s4444_s13, %s4438_s27 }
 0x7f3   : > { %p4441_p5 = pneg %p4440_p1 }
 0x7f4   : > { %p4447_p3 = por %p4446_p6, %p4445_p2 }
 0x7f6   : > { %p4448_p0 = pnand %p4447_p3, %p4441_p5 }
 0x7f8   : > { %4451 = shalt.err (!%p4448_p0)
}
 0x7f9   : > { %s4452_s14 = scalar_lea.hbm %s5772_s29, 4096  ;;  %s4456_s19 = scalar_lea.hbm %s6020_s8, 16384 }
 0x7fa   : > { %p4453_p7 = scmp.ne.s32.totalorder %s5772_s29, %s4452_s14  ;;  %p4457_p12 = scmp.lt.s32.totalorder %s5772_s29, %s6020_s8 }
 0x7fb   : > { %p4458_p10 = scmp.lt.s32.totalorder %s4456_s19, %s4452_s14 }
 0x7fc   : > { %p4454_p13 = pnand %p4453_p7, %p6021_p11 }
 0x7fd   : > { %p4459_p8 = por %p4458_p10, %p4457_p12 }
 0x7fe   : > { %p4455_p9 = pneg %p4454_p13 }
 0x800   : > { %p4460_p4 = pnand %p4459_p8, %p4455_p9 }
 0x802   : > { %4463 = shalt.err (!%p4460_p4)
}
 0x803   : > { %s4647_s17 = smov 256   ;;  %s4648_s3 = smov 16  }
 0x804   : > { %3861 = dma.vmem_to_hbm [thread:$0]  (%p6021_p11), %s5767_s24, 4096, %s5772_s29, %s3036_s0, %s4647_s17, %s4647_s17, %s4648_s3  }
 0x805 PF: > { %s6022_s1 = sld [smem:[#allocation28_spill]]  ;;  %p3887_p1 = scmp.ge.s32.totalorder %s4630_s30, 2 }
 0x806   : > { %s6023_s22 = sld [smem:[#allocation50_spill]] }
 0x80b   : > { %s3067_s20 = sand.u32 1, %s6022_s1  }
 0x80c   : > { %p6024_p5 = scmp.ne.s32.totalorder %s6023_s22, 0  ;;  %s3068_s9 = scalar_lea.sflag [#allocation9], %s3067_s20 }
 0x80e   : > { %p3883_p2 = pnand %p3887_p1, %p6024_p5 }
 0x810   : > { %p3884_p6 = pneg %p3883_p2 }
 0x812   : > { %4557 = dma.done.wait (%p3884_p6), %s3068_s9, 4096  }
 0x813   : > { %4559 = vsyncadd (%p3884_p6), %s3068_s9, 4294963200  ;;  %s35_s30 = sadd.s32 1, %s4630_s30   ;;  %s6026_s13 = sld [smem:[#allocation25_spill]] }
 0x814   : > { %p5802_p3 = scmp.ge.s32.totalorder %s35_s30, 18   ;;  %s6027_s14 = sld [smem:[#allocation26_spill]] }
 0x815   : > { %s6028_s15 = sld [smem:[#allocation44_spill]]  ;;  %s6039_s17 = smov %s4582_s18 }
 0x816   : > { %s6029_s16 = sld [smem:[#allocation27_spill]]  ;;  %s6040_s18 = smov %s4982_s11 }
 0x817   : > { %s6030_s19 = sld [smem:[#allocation29_spill]]  ;;  %s6041_s20 = smov %s4594_s21 }
 0x818   : > { %s6031_s23 = sld [smem:[#allocation34_spill]]  ;;  %s6042_s21 = smov %s4977_s2 }
 0x819   : > { %s6032_s24 = sld [smem:[#allocation35_spill]]  ;;  %s6043_s22 = smov %s4614_s26 }
 0x81a   : > { %s6033_s28 = sld [smem:[#allocation36_spill]] }
 0x81b   : > { %s6034_s29 = sld [smem:[#allocation38_spill]] }
 0x81c   : > { %s6035_s27 = sld [smem:[#allocation42_spill]] }
 0x81d   : > { %s6036_s0 = sld [smem:[#allocation46_spill]] }
 0x81e   : > { %s6037_s12 = sld [smem:[#allocation49_spill]] }
 0x820   : > { %s6044_s25 = smov %s6033_s28  ;;  %34 = sbr.rel (!%p5802_p3) target bundleno = 30 (0x1e), region = 191 }
 0x821   : > { %s6045_s26 = smov %s6034_s29 }
 0x823   : > { %s6046_s28 = smov %s6036_s0 }
 0x824   : > { %s6047_s29 = smov %s6037_s12 }
 0x825   :  { %3073 = vsyncpa [#allocation8], 1 }
 0x826   :  { %3075 = vsyncpa [#allocation8 + $0x1], 1 }
 0x827   :  { %3076 = vsyncpa [#allocation11], 1 }
 0x828   :  { %3078 = vsyncpa [#allocation11 + $0x1], 1 }
 0x829   :  { %3079 = vsyncpa [#allocation14], 1 }
 0x82a   :  { %3081 = vsyncpa [#allocation14 + $0x1], 1 }
 0x82b   :  { %3082 = vsyncpa [#allocation17], 1 }
 0x82c   :  { %3084 = vsyncpa [#allocation17 + $0x1], 1 }
 0x82d   :  { %3085 = vsyncpa [#allocation9], 1 }
 0x82e   :  { %3087 = vsyncpa [#allocation9 + $0x1], 1 }

</bundles_post_ra>
